<compile_context>
chip_gen: v5e
topology: v5e:2x2
jax: 0.10.0
libtpu: 0.0.40
codegen_flags: <defaults>
</compile_context>

<pallas_src>
import functools

import jax
import jax.numpy as jnp
from jax.experimental import pallas as pl
from jax.experimental.pallas import tpu as pltpu


# -----------------------------------------------------------------------------
# Fused kernel:
#   x -> VMEM padded scratch -> conv1+BN1+ReLU -> VMEM padded mid
#     -> conv2+BN2 + residual + ReLU -> out
# -----------------------------------------------------------------------------
def fused_basic_block_kernel(x_ref, w1_ref, s1_ref, b1_ref,
                             w2_ref, s2_ref, b2_ref, o_ref,
                             xpad_ref, mid_ref):
    _, H, W, Cin = x_ref.shape
    Hp, Wp = H + 2, W + 2
    Cout = o_ref.shape[-1]

    # ---- Zero ONLY the halo strips of both padded scratches. ----------------
    # Re-zeroed every grid step (cheap: 2*(Hp+Wp) rows/cols), NOT under a
    # program_id==0 guard: with a "parallel" batch axis each TensorCore owns its
    # own scratch and starts at a different program_id.
    xz_row = jnp.zeros((1, Wp, Cin), xpad_ref.dtype)
    xz_col = jnp.zeros((Hp, 1, Cin), xpad_ref.dtype)
    xpad_ref[0:1, :, :] = xz_row
    xpad_ref[Hp - 1:Hp, :, :] = xz_row
    xpad_ref[:, 0:1, :] = xz_col
    xpad_ref[:, Wp - 1:Wp, :] = xz_col

    mz_row = jnp.zeros((1, Wp, Cout), mid_ref.dtype)
    mz_col = jnp.zeros((Hp, 1, Cout), mid_ref.dtype)
    mid_ref[0:1, :, :] = mz_row
    mid_ref[Hp - 1:Hp, :, :] = mz_row
    mid_ref[:, 0:1, :] = mz_col
    mid_ref[:, Wp - 1:Wp, :] = mz_col

    # ---- Bring the unpadded input into the padded VMEM scratch (SAME pad). --
    x = x_ref[...]                                   # (1, H, W, Cin), f32
    xpad_ref[1:H + 1, 1:W + 1, :] = x[0]

    # ---- conv1 + BN1 + ReLU : one (H*W, 9*Cin) x (9*Cin, Cout) MXU matmul ---
    xp = xpad_ref[...]                               # (Hp, Wp, Cin), halo = 0
    cols = [xp[kh:kh + H, kw:kw + W, :].reshape(H * W, Cin)
            for kh in range(3) for kw in range(3)]
    patch = jnp.concatenate(cols, axis=-1).astype(w1_ref.dtype)   # (H*W, 9*Cin)
    y = jnp.dot(patch, w1_ref[...], preferred_element_type=jnp.float32)
    y = jnp.maximum(y * s1_ref[...] + b1_ref[...], 0.0)           # BN1 + ReLU
    mid_ref[1:H + 1, 1:W + 1, :] = y.reshape(H, W, Cout)          # interior only

    # ---- conv2 + BN2 + residual + ReLU over the VMEM-resident intermediate --
    mid = mid_ref[...]                               # (Hp, Wp, Cout), halo = 0
    cols2 = [mid[kh:kh + H, kw:kw + W, :].reshape(H * W, Cout)
             for kh in range(3) for kw in range(3)]
    patch2 = jnp.concatenate(cols2, axis=-1).astype(w2_ref.dtype)  # (H*W, 9*Cout)
    z = jnp.dot(patch2, w2_ref[...], preferred_element_type=jnp.float32)
    z = z * s2_ref[...] + b2_ref[...]                              # BN2 affine
    z = z.reshape(H, W, Cout) + x[0].astype(jnp.float32)           # identity
    o_ref[...] = jnp.maximum(z, 0.0).reshape(1, H, W, Cout).astype(o_ref.dtype)


# -----------------------------------------------------------------------------
# Wrappers
# -----------------------------------------------------------------------------
def _fold_bn(gamma, beta, mean, var, eps=1e-5):
    scale = gamma / jnp.sqrt(var + eps)
    shift = beta - mean * scale
    return (scale.reshape(1, -1).astype(jnp.float32),
            shift.reshape(1, -1).astype(jnp.float32))


def _reshape_weight(w_oihw, dtype):
    # PyTorch (Cout, Cin, 3, 3) -> (9*Cin, Cout); row index = (kh*3 + kw)*Cin + c
    cout, cin, _, _ = w_oihw.shape
    return jnp.transpose(w_oihw, (2, 3, 1, 0)).reshape(9 * cin, cout).astype(dtype)


def _vmem_limit_bytes():
    """Generation-aware VMEM cap (v5e/v6e: 128 MiB, v7x: 64 MiB per TC)."""
    try:
        cap = int(pltpu.get_tpu_info().vmem_capacity_bytes)
    except Exception:
        cap = 64 * 1024 * 1024  # conservative fallback (v7x per-TC size)
    # Leave headroom for compiler scratch / double buffers.
    return max(32 * 1024 * 1024, min(int(cap * 3 // 4), 100 * 1024 * 1024))


def _fused_block_call(x, w1, s1, b1, w2, s2, b2, out_dtype):
    N, H, W, Cin = x.shape
    Cout = w1.shape[-1]

    flops = 2 * N * H * W * 9 * (Cin * Cout + Cout * Cout)
    # One read of the activation, one write of the output, weights/scales once
    # (constant index_map blocks are fetched a single time, not per grid step).
    bytes_accessed = int(x.size) * x.dtype.itemsize
    bytes_accessed += int(N * H * W * Cout) * jnp.dtype(out_dtype).itemsize
    bytes_accessed += sum(int(a.size) * a.dtype.itemsize
                          for a in (w1, s1, b1, w2, s2, b2))

    return pl.pallas_call(
        fused_basic_block_kernel,
        out_shape=jax.ShapeDtypeStruct((N, H, W, Cout), out_dtype),
        grid=(N,),
        in_specs=[
            pl.BlockSpec((1, H, W, Cin), lambda n: (n, 0, 0, 0)),   # x (unpadded)
            pl.BlockSpec((9 * Cin, Cout), lambda n: (0, 0)),        # w1 (im2col)
            pl.BlockSpec((1, Cout), lambda n: (0, 0)),              # bn1 scale
            pl.BlockSpec((1, Cout), lambda n: (0, 0)),              # bn1 shift
            pl.BlockSpec((9 * Cout, Cout), lambda n: (0, 0)),       # w2 (im2col)
            pl.BlockSpec((1, Cout), lambda n: (0, 0)),              # bn2 scale
            pl.BlockSpec((1, Cout), lambda n: (0, 0)),              # bn2 shift
        ],
        out_specs=pl.BlockSpec((1, H, W, Cout), lambda n: (n, 0, 0, 0)),
        scratch_shapes=[
            pltpu.VMEM((H + 2, W + 2, Cin), x.dtype),       # padded input
            pltpu.VMEM((H + 2, W + 2, Cout), jnp.float32),  # padded intermediate
        ],
        compiler_params=pltpu.CompilerParams(
            dimension_semantics=("parallel",),
            vmem_limit_bytes=_vmem_limit_bytes()),
        cost_estimate=pl.CostEstimate(flops=int(flops), transcendentals=0,
                                      bytes_accessed=int(bytes_accessed)),
    )(x, w1, s1, b1, w2, s2, b2)


def basic_block_forward(x_nchw, params, matmul_dtype=jnp.bfloat16):
    """BasicBlock forward, stride=1, downsample=None (identity shortcut).

    x: NCHW float32.  The MXU matmuls run in `matmul_dtype` (default bf16 on all
    TPU generations — the MXU is bf16-native); accumulation, BN, ReLU and the
    residual add stay in f32.  Pass matmul_dtype=jnp.float32 for a tighter
    accuracy contract.
    """
    if params["conv1_w"].shape[0] != params["conv1_w"].shape[1]:
        # TODO(synk): stride=2 / downsample shortcut not implemented.
        raise NotImplementedError("identity shortcut requires in_ch == out_ch")

    # NCHW -> NHWC at the module boundary only; no HBM-side padding.
    x = jnp.transpose(x_nchw, (0, 2, 3, 1))

    s1, b1 = _fold_bn(params["bn1_gamma"], params["bn1_beta"],
                      params["bn1_mean"], params["bn1_var"])
    s2, b2 = _fold_bn(params["bn2_gamma"], params["bn2_beta"],
                      params["bn2_mean"], params["bn2_var"])
    w1 = _reshape_weight(params["conv1_w"], matmul_dtype)
    w2 = _reshape_weight(params["conv2_w"], matmul_dtype)

    out = _fused_block_call(x, w1, s1, b1, w2, s2, b2, x.dtype)
    return jnp.transpose(out, (0, 3, 1, 2))  # NHWC -> NCHW


# -----------------------------------------------------------------------------
# Pure-JAX reference (eval-mode BN) for a correctness check.
# -----------------------------------------------------------------------------
def _reference_forward(x_nchw, params):
    def conv(x_nhwc, w_oihw):
        w_hwio = jnp.transpose(w_oihw, (2, 3, 1, 0))
        return jax.lax.conv_general_dilated(
            x_nhwc, w_hwio, window_strides=(1, 1), padding="SAME",
            dimension_numbers=("NHWC", "HWIO", "NHWC"))

    x = jnp.transpose(x_nchw, (0, 2, 3, 1))
    identity = x
    s1, b1 = _fold_bn(params["bn1_gamma"], params["bn1_beta"],
                      params["bn1_mean"], params["bn1_var"])
    out = jnp.maximum(conv(x, params["conv1_w"]) * s1 + b1, 0.0)
    s2, b2 = _fold_bn(params["bn2_gamma"], params["bn2_beta"],
                      params["bn2_mean"], params["bn2_var"])
    out = jnp.maximum(conv(out, params["conv2_w"]) * s2 + b2 + identity, 0.0)
    return jnp.transpose(out, (0, 3, 1, 2))


def make_params(key, in_ch, out_ch):
    ks = jax.random.split(key, 10)
    return {
        "conv1_w": 0.1 * jax.random.normal(ks[0], (out_ch, in_ch, 3, 3), jnp.float32),
        "bn1_gamma": 1.0 + 0.1 * jax.random.normal(ks[1], (out_ch,), jnp.float32),
        "bn1_beta": 0.1 * jax.random.normal(ks[2], (out_ch,), jnp.float32),
        "bn1_mean": 0.1 * jax.random.normal(ks[3], (out_ch,), jnp.float32),
        "bn1_var": jnp.abs(jax.random.normal(ks[4], (out_ch,), jnp.float32)) + 0.5,
        "conv2_w": 0.1 * jax.random.normal(ks[5], (out_ch, out_ch, 3, 3), jnp.float32),
        "bn2_gamma": 1.0 + 0.1 * jax.random.normal(ks[6], (out_ch,), jnp.float32),
        "bn2_beta": 0.1 * jax.random.normal(ks[7], (out_ch,), jnp.float32),
        "bn2_mean": 0.1 * jax.random.normal(ks[8], (out_ch,), jnp.float32),
        "bn2_var": jnp.abs(jax.random.normal(ks[9], (out_ch,), jnp.float32)) + 0.5,
    }


if __name__ == "__main__":
    key = jax.random.PRNGKey(0)
    k_x, k_p = jax.random.split(key)

    N, C, H, W = 2, 4, 16, 16  # stride=1, downsample=None => in_ch == out_ch
    x = jax.random.normal(k_x, (N, C, H, W), jnp.float32)
    params = make_params(k_p, C, C)

    fwd_bf16 = jax.jit(functools.partial(basic_block_forward,
                                         matmul_dtype=jnp.bfloat16))
    fwd_f32 = jax.jit(functools.partial(basic_block_forward,
                                        matmul_dtype=jnp.float32))

    ref = jax.block_until_ready(_reference_forward(x, params))

    # f32-matmul path: tight tolerance.
    out_f32 = jax.block_until_ready(fwd_f32(x, params))
    assert out_f32.shape == (N, C, H, W)
    assert jnp.allclose(out_f32, ref, atol=1e-4, rtol=1e-4), "f32 mismatch vs reference"

    # Default bf16-matmul path (all generations): f32 accumulation, looser tolerance.
    out_bf16 = jax.block_until_ready(fwd_bf16(x, params))
    assert out_bf16.shape == (N, C, H, W)
    assert jnp.allclose(out_bf16, ref, atol=1e-1, rtol=1e-1), "bf16 mismatch vs reference"

    print("KERNEL_OK")
</pallas_src>

<mosaic_0001>
module attributes {stable_mosaic.version = 11 : i64} {
  func.func @fused_basic_block_kernel(%arg0: i32, %arg1: memref<1x16x16x4xf32, #tpu.memory_space<vmem>>, %arg2: memref<36x4xf32, #tpu.memory_space<vmem>>, %arg3: memref<1x4xf32, #tpu.memory_space<vmem>>, %arg4: memref<1x4xf32, #tpu.memory_space<vmem>>, %arg5: memref<36x4xf32, #tpu.memory_space<vmem>>, %arg6: memref<1x4xf32, #tpu.memory_space<vmem>>, %arg7: memref<1x4xf32, #tpu.memory_space<vmem>>, %arg8: memref<1x16x16x4xf32, #tpu.memory_space<vmem>>, %arg9: memref<18x18x4xf32, #tpu.memory_space<vmem>>, %arg10: memref<18x18x4xf32, #tpu.memory_space<vmem>>) attributes {dimension_semantics = [#tpu.dimension_semantics<parallel>], iteration_bounds = array<i64: 2>, scalar_prefetch = 0 : i64, scratch_operands = 2 : i64, tpu.core_type = #tpu.core_type<tc>, window_params = [{transform_indices = @transform_0, window_bounds = array<i64: 1, 16, 16, 4>}, {pipeline_mode = #tpu.pipeline_mode<synchronous>, transform_indices = @transform_1, window_bounds = array<i64: 36, 4>}, {pipeline_mode = #tpu.pipeline_mode<synchronous>, transform_indices = @transform_2, window_bounds = array<i64: 1, 4>}, {pipeline_mode = #tpu.pipeline_mode<synchronous>, transform_indices = @transform_3, window_bounds = array<i64: 1, 4>}, {pipeline_mode = #tpu.pipeline_mode<synchronous>, transform_indices = @transform_4, window_bounds = array<i64: 36, 4>}, {pipeline_mode = #tpu.pipeline_mode<synchronous>, transform_indices = @transform_5, window_bounds = array<i64: 1, 4>}, {pipeline_mode = #tpu.pipeline_mode<synchronous>, transform_indices = @transform_6, window_bounds = array<i64: 1, 4>}, {transform_indices = @transform_7, window_bounds = array<i64: 1, 16, 16, 4>}]} {
    %cst = arith.constant 0.000000e+00 : f32
    %0 = vector.broadcast %cst : f32 to vector<1x18x4xf32>
    %cst_0 = arith.constant 0.000000e+00 : f32
    %1 = vector.broadcast %cst_0 : f32 to vector<18x1x4xf32>
    %c0 = arith.constant 0 : index
    %c0_1 = arith.constant 0 : index
    %c0_2 = arith.constant 0 : index
    %2 = vector.load %arg9[%c0, %c0_1, %c0_2] : memref<18x18x4xf32, #tpu.memory_space<vmem>>, vector<1x18x4xf32>
    tpu.vector_store %arg9[%c0, %c0_1, %c0_2], %0 {strides = array<i32>} : memref<18x18x4xf32, #tpu.memory_space<vmem>>, vector<1x18x4xf32>,
    %c17 = arith.constant 17 : index
    %c0_3 = arith.constant 0 : index
    %c0_4 = arith.constant 0 : index
    %3 = vector.load %arg9[%c17, %c0_3, %c0_4] : memref<18x18x4xf32, #tpu.memory_space<vmem>>, vector<1x18x4xf32>
    tpu.vector_store %arg9[%c17, %c0_3, %c0_4], %0 {strides = array<i32>} : memref<18x18x4xf32, #tpu.memory_space<vmem>>, vector<1x18x4xf32>,
    %c0_5 = arith.constant 0 : index
    %c0_6 = arith.constant 0 : index
    %c0_7 = arith.constant 0 : index
    %4 = vector.load %arg9[%c0_5, %c0_6, %c0_7] : memref<18x18x4xf32, #tpu.memory_space<vmem>>, vector<18x1x4xf32>
    tpu.vector_store %arg9[%c0_5, %c0_6, %c0_7], %1 {strides = array<i32>} : memref<18x18x4xf32, #tpu.memory_space<vmem>>, vector<18x1x4xf32>,
    %c0_8 = arith.constant 0 : index
    %c17_9 = arith.constant 17 : index
    %c0_10 = arith.constant 0 : index
    %5 = vector.load %arg9[%c0_8, %c17_9, %c0_10] : memref<18x18x4xf32, #tpu.memory_space<vmem>>, vector<18x1x4xf32>
    tpu.vector_store %arg9[%c0_8, %c17_9, %c0_10], %1 {strides = array<i32>} : memref<18x18x4xf32, #tpu.memory_space<vmem>>, vector<18x1x4xf32>,
    %cst_11 = arith.constant 0.000000e+00 : f32
    %6 = vector.broadcast %cst_11 : f32 to vector<1x18x4xf32>
    %cst_12 = arith.constant 0.000000e+00 : f32
    %7 = vector.broadcast %cst_12 : f32 to vector<18x1x4xf32>
    %c0_13 = arith.constant 0 : index
    %c0_14 = arith.constant 0 : index
    %c0_15 = arith.constant 0 : index
    %8 = vector.load %arg10[%c0_13, %c0_14, %c0_15] : memref<18x18x4xf32, #tpu.memory_space<vmem>>, vector<1x18x4xf32>
    tpu.vector_store %arg10[%c0_13, %c0_14, %c0_15], %6 {strides = array<i32>} : memref<18x18x4xf32, #tpu.memory_space<vmem>>, vector<1x18x4xf32>,
    %c17_16 = arith.constant 17 : index
    %c0_17 = arith.constant 0 : index
    %c0_18 = arith.constant 0 : index
    %9 = vector.load %arg10[%c17_16, %c0_17, %c0_18] : memref<18x18x4xf32, #tpu.memory_space<vmem>>, vector<1x18x4xf32>
    tpu.vector_store %arg10[%c17_16, %c0_17, %c0_18], %6 {strides = array<i32>} : memref<18x18x4xf32, #tpu.memory_space<vmem>>, vector<1x18x4xf32>,
    %c0_19 = arith.constant 0 : index
    %c0_20 = arith.constant 0 : index
    %c0_21 = arith.constant 0 : index
    %10 = vector.load %arg10[%c0_19, %c0_20, %c0_21] : memref<18x18x4xf32, #tpu.memory_space<vmem>>, vector<18x1x4xf32>
    tpu.vector_store %arg10[%c0_19, %c0_20, %c0_21], %7 {strides = array<i32>} : memref<18x18x4xf32, #tpu.memory_space<vmem>>, vector<18x1x4xf32>,
    %c0_22 = arith.constant 0 : index
    %c17_23 = arith.constant 17 : index
    %c0_24 = arith.constant 0 : index
    %11 = vector.load %arg10[%c0_22, %c17_23, %c0_24] : memref<18x18x4xf32, #tpu.memory_space<vmem>>, vector<18x1x4xf32>
    tpu.vector_store %arg10[%c0_22, %c17_23, %c0_24], %7 {strides = array<i32>} : memref<18x18x4xf32, #tpu.memory_space<vmem>>, vector<18x1x4xf32>,
    %c0_25 = arith.constant 0 : index
    %c0_26 = arith.constant 0 : index
    %c0_27 = arith.constant 0 : index
    %c0_28 = arith.constant 0 : index
    %12 = vector.load %arg1[%c0_25, %c0_26, %c0_27, %c0_28] : memref<1x16x16x4xf32, #tpu.memory_space<vmem>>, vector<1x16x16x4xf32>
    %13 = vector.shape_cast %12 : vector<1x16x16x4xf32> to vector<16x16x4xf32>
    %c1 = arith.constant 1 : index
    %c1_29 = arith.constant 1 : index
    %c0_30 = arith.constant 0 : index
    %14 = vector.load %arg9[%c1, %c1_29, %c0_30] : memref<18x18x4xf32, #tpu.memory_space<vmem>>, vector<16x16x4xf32>
    tpu.vector_store %arg9[%c1, %c1_29, %c0_30], %13 {strides = array<i32>} : memref<18x18x4xf32, #tpu.memory_space<vmem>>, vector<16x16x4xf32>,
    %c0_31 = arith.constant 0 : index
    %c0_32 = arith.constant 0 : index
    %c0_33 = arith.constant 0 : index
    %15 = vector.load %arg9[%c0_31, %c0_32, %c0_33] : memref<18x18x4xf32, #tpu.memory_space<vmem>>, vector<18x18x4xf32>
    %16 = vector.extract_strided_slice %15 {offsets = [0, 0, 0], sizes = [16, 16, 4], strides = [1, 1, 1]} : vector<18x18x4xf32> to vector<16x16x4xf32>
    %17 = vector.shape_cast %16 : vector<16x16x4xf32> to vector<256x4xf32>
    %18 = vector.extract_strided_slice %15 {offsets = [0, 1, 0], sizes = [16, 16, 4], strides = [1, 1, 1]} : vector<18x18x4xf32> to vector<16x16x4xf32>
    %19 = vector.shape_cast %18 : vector<16x16x4xf32> to vector<256x4xf32>
    %20 = vector.extract_strided_slice %15 {offsets = [0, 2, 0], sizes = [16, 16, 4], strides = [1, 1, 1]} : vector<18x18x4xf32> to vector<16x16x4xf32>
    %21 = vector.shape_cast %20 : vector<16x16x4xf32> to vector<256x4xf32>
    %22 = vector.extract_strided_slice %15 {offsets = [1, 0, 0], sizes = [16, 16, 4], strides = [1, 1, 1]} : vector<18x18x4xf32> to vector<16x16x4xf32>
    %23 = vector.shape_cast %22 : vector<16x16x4xf32> to vector<256x4xf32>
    %24 = vector.extract_strided_slice %15 {offsets = [1, 1, 0], sizes = [16, 16, 4], strides = [1, 1, 1]} : vector<18x18x4xf32> to vector<16x16x4xf32>
    %25 = vector.shape_cast %24 : vector<16x16x4xf32> to vector<256x4xf32>
    %26 = vector.extract_strided_slice %15 {offsets = [1, 2, 0], sizes = [16, 16, 4], strides = [1, 1, 1]} : vector<18x18x4xf32> to vector<16x16x4xf32>
    %27 = vector.shape_cast %26 : vector<16x16x4xf32> to vector<256x4xf32>
    %28 = vector.extract_strided_slice %15 {offsets = [2, 0, 0], sizes = [16, 16, 4], strides = [1, 1, 1]} : vector<18x18x4xf32> to vector<16x16x4xf32>
    %29 = vector.shape_cast %28 : vector<16x16x4xf32> to vector<256x4xf32>
    %30 = vector.extract_strided_slice %15 {offsets = [2, 1, 0], sizes = [16, 16, 4], strides = [1, 1, 1]} : vector<18x18x4xf32> to vector<16x16x4xf32>
    %31 = vector.shape_cast %30 : vector<16x16x4xf32> to vector<256x4xf32>
    %32 = vector.extract_strided_slice %15 {offsets = [2, 2, 0], sizes = [16, 16, 4], strides = [1, 1, 1]} : vector<18x18x4xf32> to vector<16x16x4xf32>
    %33 = vector.shape_cast %32 : vector<16x16x4xf32> to vector<256x4xf32>
    %34 = tpu.concatenate %17, %19, %21, %23, %25, %27, %29, %31, %33 in 1 : vector<256x4xf32>, vector<256x4xf32>, vector<256x4xf32>, vector<256x4xf32>, vector<256x4xf32>, vector<256x4xf32>, vector<256x4xf32>, vector<256x4xf32>, vector<256x4xf32> -> vector<256x36xf32>
    %c0_34 = arith.constant 0 : index
    %c0_35 = arith.constant 0 : index
    %35 = vector.load %arg2[%c0_34, %c0_35] : memref<36x4xf32, #tpu.memory_space<vmem>>, vector<36x4xf32>
    %cst_36 = arith.constant dense<0.000000e+00> : vector<256x4xf32>
    %36 = tpu.matmul %34, %35, %cst_36 {dimension_numbers = #tpu.dot_dimension_numbers<[1], [0], [0], [1], [0, 0, 1, 1], [], []>} : vector<256x36xf32>, vector<36x4xf32>, vector<256x4xf32> -> vector<256x4xf32>
    %c0_37 = arith.constant 0 : index
    %c0_38 = arith.constant 0 : index
    %37 = vector.load %arg3[%c0_37, %c0_38] : memref<1x4xf32, #tpu.memory_space<vmem>>, vector<1x4xf32>
    %38 = vector.broadcast %37 : vector<1x4xf32> to vector<256x4xf32>
    %39 = arith.mulf %36, %38 : vector<256x4xf32>
    %c0_39 = arith.constant 0 : index
    %c0_40 = arith.constant 0 : index
    %40 = vector.load %arg4[%c0_39, %c0_40] : memref<1x4xf32, #tpu.memory_space<vmem>>, vector<1x4xf32>
    %41 = vector.broadcast %40 : vector<1x4xf32> to vector<256x4xf32>
    %42 = arith.addf %39, %41 : vector<256x4xf32>
    %cst_41 = arith.constant 0.000000e+00 : f32
    %43 = vector.broadcast %cst_41 : f32 to vector<256x4xf32>
    %44 = arith.maximumf %42, %43 : vector<256x4xf32>
    %45 = vector.shape_cast %44 : vector<256x4xf32> to vector<16x16x4xf32>
    %c1_42 = arith.constant 1 : index
    %c1_43 = arith.constant 1 : index
    %c0_44 = arith.constant 0 : index
    %46 = vector.load %arg10[%c1_42, %c1_43, %c0_44] : memref<18x18x4xf32, #tpu.memory_space<vmem>>, vector<16x16x4xf32>
    tpu.vector_store %arg10[%c1_42, %c1_43, %c0_44], %45 {strides = array<i32>} : memref<18x18x4xf32, #tpu.memory_space<vmem>>, vector<16x16x4xf32>,
    %c0_45 = arith.constant 0 : index
    %c0_46 = arith.constant 0 : index
    %c0_47 = arith.constant 0 : index
    %47 = vector.load %arg10[%c0_45, %c0_46, %c0_47] : memref<18x18x4xf32, #tpu.memory_space<vmem>>, vector<18x18x4xf32>
    %48 = vector.extract_strided_slice %47 {offsets = [0, 0, 0], sizes = [16, 16, 4], strides = [1, 1, 1]} : vector<18x18x4xf32> to vector<16x16x4xf32>
    %49 = vector.shape_cast %48 : vector<16x16x4xf32> to vector<256x4xf32>
    %50 = vector.extract_strided_slice %47 {offsets = [0, 1, 0], sizes = [16, 16, 4], strides = [1, 1, 1]} : vector<18x18x4xf32> to vector<16x16x4xf32>
    %51 = vector.shape_cast %50 : vector<16x16x4xf32> to vector<256x4xf32>
    %52 = vector.extract_strided_slice %47 {offsets = [0, 2, 0], sizes = [16, 16, 4], strides = [1, 1, 1]} : vector<18x18x4xf32> to vector<16x16x4xf32>
    %53 = vector.shape_cast %52 : vector<16x16x4xf32> to vector<256x4xf32>
    %54 = vector.extract_strided_slice %47 {offsets = [1, 0, 0], sizes = [16, 16, 4], strides = [1, 1, 1]} : vector<18x18x4xf32> to vector<16x16x4xf32>
    %55 = vector.shape_cast %54 : vector<16x16x4xf32> to vector<256x4xf32>
    %56 = vector.extract_strided_slice %47 {offsets = [1, 1, 0], sizes = [16, 16, 4], strides = [1, 1, 1]} : vector<18x18x4xf32> to vector<16x16x4xf32>
    %57 = vector.shape_cast %56 : vector<16x16x4xf32> to vector<256x4xf32>
    %58 = vector.extract_strided_slice %47 {offsets = [1, 2, 0], sizes = [16, 16, 4], strides = [1, 1, 1]} : vector<18x18x4xf32> to vector<16x16x4xf32>
    %59 = vector.shape_cast %58 : vector<16x16x4xf32> to vector<256x4xf32>
    %60 = vector.extract_strided_slice %47 {offsets = [2, 0, 0], sizes = [16, 16, 4], strides = [1, 1, 1]} : vector<18x18x4xf32> to vector<16x16x4xf32>
    %61 = vector.shape_cast %60 : vector<16x16x4xf32> to vector<256x4xf32>
    %62 = vector.extract_strided_slice %47 {offsets = [2, 1, 0], sizes = [16, 16, 4], strides = [1, 1, 1]} : vector<18x18x4xf32> to vector<16x16x4xf32>
    %63 = vector.shape_cast %62 : vector<16x16x4xf32> to vector<256x4xf32>
    %64 = vector.extract_strided_slice %47 {offsets = [2, 2, 0], sizes = [16, 16, 4], strides = [1, 1, 1]} : vector<18x18x4xf32> to vector<16x16x4xf32>
    %65 = vector.shape_cast %64 : vector<16x16x4xf32> to vector<256x4xf32>
    %66 = tpu.concatenate %49, %51, %53, %55, %57, %59, %61, %63, %65 in 1 : vector<256x4xf32>, vector<256x4xf32>, vector<256x4xf32>, vector<256x4xf32>, vector<256x4xf32>, vector<256x4xf32>, vector<256x4xf32>, vector<256x4xf32>, vector<256x4xf32> -> vector<256x36xf32>
    %c0_48 = arith.constant 0 : index
    %c0_49 = arith.constant 0 : index
    %67 = vector.load %arg5[%c0_48, %c0_49] : memref<36x4xf32, #tpu.memory_space<vmem>>, vector<36x4xf32>
    %cst_50 = arith.constant dense<0.000000e+00> : vector<256x4xf32>
    %68 = tpu.matmul %66, %67, %cst_50 {dimension_numbers = #tpu.dot_dimension_numbers<[1], [0], [0], [1], [0, 0, 1, 1], [], []>} : vector<256x36xf32>, vector<36x4xf32>, vector<256x4xf32> -> vector<256x4xf32>
    %c0_51 = arith.constant 0 : index
    %c0_52 = arith.constant 0 : index
    %69 = vector.load %arg6[%c0_51, %c0_52] : memref<1x4xf32, #tpu.memory_space<vmem>>, vector<1x4xf32>
    %70 = vector.broadcast %69 : vector<1x4xf32> to vector<256x4xf32>
    %71 = arith.mulf %68, %70 : vector<256x4xf32>
    %c0_53 = arith.constant 0 : index
    %c0_54 = arith.constant 0 : index
    %72 = vector.load %arg7[%c0_53, %c0_54] : memref<1x4xf32, #tpu.memory_space<vmem>>, vector<1x4xf32>
    %73 = vector.broadcast %72 : vector<1x4xf32> to vector<256x4xf32>
    %74 = arith.addf %71, %73 : vector<256x4xf32>
    %75 = vector.shape_cast %74 : vector<256x4xf32> to vector<16x16x4xf32>
    %76 = vector.shape_cast %12 : vector<1x16x16x4xf32> to vector<16x16x4xf32>
    %77 = arith.addf %75, %76 : vector<16x16x4xf32>
    %cst_55 = arith.constant 0.000000e+00 : f32
    %78 = vector.broadcast %cst_55 : f32 to vector<16x16x4xf32>
    %79 = arith.maximumf %77, %78 : vector<16x16x4xf32>
    %80 = vector.shape_cast %79 : vector<16x16x4xf32> to vector<1x16x16x4xf32>
    %c0_56 = arith.constant 0 : index
    %c0_57 = arith.constant 0 : index
    %c0_58 = arith.constant 0 : index
    %c0_59 = arith.constant 0 : index
    %81 = vector.load %arg8[%c0_56, %c0_57, %c0_58, %c0_59] : memref<1x16x16x4xf32, #tpu.memory_space<vmem>>, vector<1x16x16x4xf32>
    tpu.vector_store %arg8[%c0_56, %c0_57, %c0_58, %c0_59], %80 {strides = array<i32>} : memref<1x16x16x4xf32, #tpu.memory_space<vmem>>, vector<1x16x16x4xf32>,
    return
  }
  func.func @transform_0(%arg0: i32) -> (i32, i32, i32, i32) {
    %c0_i32 = arith.constant 0 : i32
    %c0_i32_0 = arith.constant 0 : i32
    %c0_i32_1 = arith.constant 0 : i32
    %c0_i32_2 = arith.constant 0 : i32
    return %arg0, %c0_i32, %c0_i32_0, %c0_i32_1 : i32, i32, i32, i32
  }
  func.func @transform_1(%arg0: i32) -> (i32, i32) {
    %c0_i32 = arith.constant 0 : i32
    %c0_i32_0 = arith.constant 0 : i32
    %c0_i32_1 = arith.constant 0 : i32
    return %c0_i32, %c0_i32_0 : i32, i32
  }
  func.func @transform_2(%arg0: i32) -> (i32, i32) {
    %c0_i32 = arith.constant 0 : i32
    %c0_i32_0 = arith.constant 0 : i32
    %c0_i32_1 = arith.constant 0 : i32
    return %c0_i32, %c0_i32_0 : i32, i32
  }
  func.func @transform_3(%arg0: i32) -> (i32, i32) {
    %c0_i32 = arith.constant 0 : i32
    %c0_i32_0 = arith.constant 0 : i32
    %c0_i32_1 = arith.constant 0 : i32
    return %c0_i32, %c0_i32_0 : i32, i32
  }
  func.func @transform_4(%arg0: i32) -> (i32, i32) {
    %c0_i32 = arith.constant 0 : i32
    %c0_i32_0 = arith.constant 0 : i32
    %c0_i32_1 = arith.constant 0 : i32
    return %c0_i32, %c0_i32_0 : i32, i32
  }
  func.func @transform_5(%arg0: i32) -> (i32, i32) {
    %c0_i32 = arith.constant 0 : i32
    %c0_i32_0 = arith.constant 0 : i32
    %c0_i32_1 = arith.constant 0 : i32
    return %c0_i32, %c0_i32_0 : i32, i32
  }
  func.func @transform_6(%arg0: i32) -> (i32, i32) {
    %c0_i32 = arith.constant 0 : i32
    %c0_i32_0 = arith.constant 0 : i32
    %c0_i32_1 = arith.constant 0 : i32
    return %c0_i32, %c0_i32_0 : i32, i32
  }
  func.func @transform_7(%arg0: i32) -> (i32, i32, i32, i32) {
    %c0_i32 = arith.constant 0 : i32
    %c0_i32_0 = arith.constant 0 : i32
    %c0_i32_1 = arith.constant 0 : i32
    %c0_i32_2 = arith.constant 0 : i32
    return %arg0, %c0_i32, %c0_i32_0, %c0_i32_1 : i32, i32, i32, i32
  }
}

</mosaic_0001>

<bundles_post_ra>
// kernel: basic_block_forward.1
= control target key start
LH: loop header
LB: loop body
LE: loop exit
PB: predicated region body
PF: predicated region fallthrough
CT: control target
= control target key end

     0   :  { %s4090_s24 = smov 0   ;;  %s8412_s0 = inlined_call_operand.vmem [shape: f32[2,16,16,4], index: 0, kind: input, shape index: {}]   ;;  %s8413_s1 = inlined_call_operand.vmem [shape: f32[36,4], index: 1, kind: input, shape index: {}]   ;;  %s8414_s2 = inlined_call_operand.vmem [shape: f32[1,4], index: 2, kind: input, shape index: {}]   ;;  %s8415_s3 = inlined_call_operand.vmem [shape: f32[1,4], index: 3, kind: input, shape index: {}]   ;;  %s8416_s4 = inlined_call_operand.vmem [shape: f32[36,4], index: 4, kind: input, shape index: {}]   ;;  %s8417_s5 = inlined_call_operand.vmem [shape: f32[1,4], index: 5, kind: input, shape index: {}]   ;;  %s8418_s6 = inlined_call_operand.vmem [shape: f32[1,4], index: 6, kind: input, shape index: {}]   ;;  %s8419_s7 = inlined_call_operand.vmem [shape: f32[2,16,16,4], index: 7, kind: output, shape index: {}]  }
   0x1 LB: > { %s3862_s25 = sadd.s32 4294967295, %s4039_s24   ;;  %p3866_p0 = scmp.ge.s32.totalorder %s4039_s24, 1  ;;  %s4039_s24 = sphi %s4090_s24, %s17_s24  }
   0x2   : > { %p237_p1 = scmp.lt.s32.totalorder %s4039_s24, 3 }
   0x4   : > { %p238_p2 = pnand %p3866_p0, %p237_p1 }
   0x6   : > { %241 = sbr.rel (%p238_p2) target bundleno = 1971 (0x7b3), region = 48 }
   0xb   : > { %vm279_vm0 = vcmask 31744   ;;  %vm288_vm1 = vcmask 24576   ;;  %v4041_v0 = vmov 0.0   ;;  %vm535_vm2 = vcmask 1046528   ;;  %s4042_s26 = smov 4   ;;  %p269_p3 = scmp.lt.s32.totalorder %s3862_s25, 1 }
   0xc   : > { %280 = vst.msk [vmem:[#allocation2] sm:$0xff] %vm279_vm0, %v4041_v0  ;;  %vm282_vm3 = vcmask 25600   ;;  %vm616_vm4 = vcmask 1045504   ;;  %s4043_s8 = smov 8   ;;  %s4044_s9 = smov 12   ;;  %vm1856_vm5 = vcmask 1043456  }
   0xd   : > { %281 = vst.msk [vmem:[#allocation2 + $0x8] sm:$0xff] %vm279_vm0, %v4041_v0  ;;  %s9473_s25 = smov (!%p269_p3, %s3862_s25), 1  ;;  %s4045_s10 = smov 16   ;;  %vm1523_vm6 = vcmask 64512   ;;  %vm1556_vm7 = vcmask 97280   ;;  %vm1622_vm8 = vcmask 162816  }
   0xe   : > { %289 = vst.msk [vmem:[#allocation2] sm:$0x1] %vm288_vm1, %v4041_v0  ;;  %s3939_s27 = sshll.u32 %s9473_s25, 8  ;;  %s4046_s11 = smov 20   ;;  %vm1589_vm9 = vcmask 130048   ;;  %vm1655_vm10 = vcmask 195584  }
   0xf   : > { %285 = vst.msk [vmem:[#allocation2 + $0x198] sm:$0xff] %vm279_vm0, %v4041_v0  ;;  %s4256_s30 = scalar_lea.vmem %s8412_s0, %s3939_s27  ;;  %s4047_s12 = smov 24   ;;  %vm1721_vm11 = vcmask 261120   ;;  %vm1688_vm12 = vcmask 228352   ;;  %vm1759_vm13 = vcmask 293888  }
  0x10   : > { %286 = vst.msk [vmem:[#allocation2 + $0x1a0] sm:$0xff] %vm279_vm0, %v4041_v0  ;;  %v4265_v6 = vld [vmem:[%s4256_s30 + $0x10] sm:$0xff]  ;;  %v4270_v7 = vld [vmem:[%s4256_s30 + $0x18] sm:$0xff]  ;;  %v4281_v8 = vld [vmem:[%s4256_s30] sm:$0xff]  ;;  %s4048_s13 = smov 28   ;;  %s4049_s14 = smov 32  }
  0x11   : > { %290 = vst.msk [vmem:[#allocation2 + $0x18] sm:$0x1] %vm288_vm1, %v4041_v0  ;;  %v4286_v9 = vld [vmem:[%s4256_s30 + $0x8] sm:$0xff]  ;;  %v4318_v17 = vld [vmem:[%s4256_s30 + $0x20] sm:$0xff]  ;;  %v4333_v23 = vld [vmem:[%s4256_s30 + $0x30] sm:$0xff]  ;;  %s8088_s16 = scalar_lea.vmem %s8419_s7, %s3939_s27 }
  0x12   : > { %291 = vst.msk [vmem:[#allocation2 + $0x30] sm:$0x1] %vm288_vm1, %v4041_v0  ;;  %v4327_v21 = vld [vmem:[%s4256_s30 + $0x28] sm:$0xff]  ;;  %v4342_v26 = vld [vmem:[%s4256_s30 + $0x38] sm:$0xff]  ;;  %v4351_v29 = vld [vmem:[%s4256_s30 + $0x40] sm:$0xff] }
  0x13   : > { %292 = vst.msk [vmem:[#allocation2 + $0x48] sm:$0x1] %vm288_vm1, %v4041_v0  ;;  %v4361_v31 = vld [vmem:[%s4256_s30 + $0x48] sm:$0xff]  ;;  %v4370_v34 = vld [vmem:[%s4256_s30 + $0x50] sm:$0xff]  ;;  %v4376_v35 = vld [vmem:[%s4256_s30 + $0x58] sm:$0xff] }
  0x14   : > { %v4114_v1 = vld [vmem:[#allocation2 + $0x8] sm:$0xff]  ;;  %293 = vst.msk [vmem:[#allocation2 + $0x60] sm:$0x1] %vm288_vm1, %v4041_v0  ;;  %v4383_v36 = vld [vmem:[%s4256_s30 + $0x60] sm:$0xff]  ;;  %v4398_v40 = vld [vmem:[%s4256_s30 + $0x70] sm:$0xff] }
  0x15   : > { %v4118_v2 = vld [vmem:[#allocation2] sm:$0xff]  ;;  %v537_v3 = vrot.slane %v4114_v1, 1  ;;  %294 = vst.msk [vmem:[#allocation2 + $0x78] sm:$0x1] %vm288_vm1, %v4041_v0  ;;  %v4388_v37 = vld [vmem:[%s4256_s30 + $0x68] sm:$0xff]  ;;  %v4408_v44 = vld [vmem:[%s4256_s30 + $0x78] sm:$0xff] }
  0x16   : > { %v536_v4 = vrot.slane %v4118_v2, 1  ;;  %295 = vst.msk [vmem:[#allocation2 + $0x90] sm:$0x1] %vm288_vm1, %v4041_v0  ;;  %v4416_v47 = vld [vmem:[%s4256_s30 + $0x80] sm:$0xff]  ;;  %v4428_v51 = vld [vmem:[%s4256_s30 + $0x88] sm:$0xff]  ;;  %v4438_v55 = vld [vmem:[%s4256_s30 + $0x90] sm:$0xff] }
  0x17   : > { %296 = vst.msk [vmem:[#allocation2 + $0xa8] sm:$0x1] %vm288_vm1, %v4041_v0  ;;  %v4449_v58 = vld [vmem:[%s4256_s30 + $0x98] sm:$0xff]  ;;  %v4462_v61 = vld [vmem:[%s4256_s30 + $0xa0] sm:$0xff] }
  0x18   : > { %v538_v5 = vsel %vm535_vm2, %v536_v4, %v537_v3  ;;  %297 = vst.msk [vmem:[#allocation2 + $0xc0] sm:$0x1] %vm288_vm1, %v4041_v0 }
  0x19   : > { %723 = vrot.lane.b32.xlu0 %v538_v5, %s4042_s26  ;;  %298 = vst.msk [vmem:[#allocation2 + $0xd8] sm:$0x1] %vm288_vm1, %v4041_v0 }
  0x1a   : > { %299 = vst.msk [vmem:[#allocation2 + $0xf0] sm:$0x1] %vm288_vm1, %v4041_v0 }
  0x1b   : > { %300 = vst.msk [vmem:[#allocation2 + $0x108] sm:$0x1] %vm288_vm1, %v4041_v0 }
  0x1c   : > { %301 = vst.msk [vmem:[#allocation2 + $0x120] sm:$0x1] %vm288_vm1, %v4041_v0 }
  0x1d   : > { %302 = vst.msk [vmem:[#allocation2 + $0x138] sm:$0x1] %vm288_vm1, %v4041_v0 }
  0x1e   : > { %303 = vst.msk [vmem:[#allocation2 + $0x150] sm:$0x1] %vm288_vm1, %v4041_v0 }
  0x1f   : > { %304 = vst.msk [vmem:[#allocation2 + $0x168] sm:$0x1] %vm288_vm1, %v4041_v0 }
  0x20   : > { %305 = vst.msk [vmem:[#allocation2 + $0x180] sm:$0x1] %vm288_vm1, %v4041_v0 }
  0x21   : > { %308 = vst.msk [vmem:[#allocation2 + $0x29] sm:$0x1] %vm288_vm1, %v4041_v0 }
  0x22   : > { %309 = vst.msk [vmem:[#allocation2 + $0x41] sm:$0x1] %vm288_vm1, %v4041_v0 }
  0x23   : > { %310 = vst.msk [vmem:[#allocation2 + $0x59] sm:$0x1] %vm288_vm1, %v4041_v0 }
  0x24   : > { %311 = vst.msk [vmem:[#allocation2 + $0x71] sm:$0x1] %vm288_vm1, %v4041_v0 }
  0x25   : > { %312 = vst.msk [vmem:[#allocation2 + $0x89] sm:$0x1] %vm288_vm1, %v4041_v0 }
  0x26   : > { %313 = vst.msk [vmem:[#allocation2 + $0xa1] sm:$0x1] %vm288_vm1, %v4041_v0 }
  0x27   : > { %314 = vst.msk [vmem:[#allocation2 + $0xb9] sm:$0x1] %vm288_vm1, %v4041_v0 }
  0x28   : > { %315 = vst.msk [vmem:[#allocation2 + $0xd1] sm:$0x1] %vm288_vm1, %v4041_v0 }
  0x29   : > { %316 = vst.msk [vmem:[#allocation2 + $0xe9] sm:$0x1] %vm288_vm1, %v4041_v0 }
  0x2a   : > { %317 = vst.msk [vmem:[#allocation2 + $0x101] sm:$0x1] %vm288_vm1, %v4041_v0 }
  0x2b   : > { %318 = vst.msk [vmem:[#allocation2 + $0x119] sm:$0x1] %vm288_vm1, %v4041_v0 }
  0x2c   : > { %319 = vst.msk [vmem:[#allocation2 + $0x131] sm:$0x1] %vm288_vm1, %v4041_v0 }
  0x2d   : > { %320 = vst.msk [vmem:[#allocation2 + $0x149] sm:$0x1] %vm288_vm1, %v4041_v0 }
  0x2e   : > { %321 = vst.msk [vmem:[#allocation2 + $0x161] sm:$0x1] %vm288_vm1, %v4041_v0 }
  0x2f   : > { %322 = vst.msk [vmem:[#allocation2 + $0x179] sm:$0x1] %vm288_vm1, %v4041_v0 }
  0x30   : > { %323 = vst.msk [vmem:[#allocation2 + $0x191] sm:$0x1] %vm288_vm1, %v4041_v0 }
  0x31   : > { %325 = vst.msk [vmem:[#allocation3] sm:$0xff] %vm279_vm0, %v4041_v0 }
  0x32   : > { %326 = vst.msk [vmem:[#allocation3 + $0x8] sm:$0xff] %vm279_vm0, %v4041_v0 }
  0x33   : > { %329 = vst.msk [vmem:[#allocation3 + $0x198] sm:$0xff] %vm279_vm0, %v4041_v0 }
  0x34   : > { %330 = vst.msk [vmem:[#allocation3 + $0x1a0] sm:$0xff] %vm279_vm0, %v4041_v0 }
  0x35   : > { %333 = vst.msk [vmem:[#allocation3 + $0x18] sm:$0x1] %vm288_vm1, %v4041_v0 }
  0x36   : > { %334 = vst.msk [vmem:[#allocation3 + $0x30] sm:$0x1] %vm288_vm1, %v4041_v0 }
  0x37   : > { %335 = vst.msk [vmem:[#allocation3 + $0x48] sm:$0x1] %vm288_vm1, %v4041_v0 }
  0x38   : > { %336 = vst.msk [vmem:[#allocation3 + $0x60] sm:$0x1] %vm288_vm1, %v4041_v0 }
  0x39   : > { %337 = vst.msk [vmem:[#allocation3 + $0x78] sm:$0x1] %vm288_vm1, %v4041_v0 }
  0x3a   : > { %338 = vst.msk [vmem:[#allocation3 + $0x90] sm:$0x1] %vm288_vm1, %v4041_v0 }
  0x3b   : > { %339 = vst.msk [vmem:[#allocation3 + $0xa8] sm:$0x1] %vm288_vm1, %v4041_v0 }
  0x3c   : > { %340 = vst.msk [vmem:[#allocation3 + $0xc0] sm:$0x1] %vm288_vm1, %v4041_v0 }
  0x3d   : > { %341 = vst.msk [vmem:[#allocation3 + $0xd8] sm:$0x1] %vm288_vm1, %v4041_v0 }
  0x3e   : > { %342 = vst.msk [vmem:[#allocation3 + $0xf0] sm:$0x1] %vm288_vm1, %v4041_v0 }
  0x3f   : > { %343 = vst.msk [vmem:[#allocation3 + $0x108] sm:$0x1] %vm288_vm1, %v4041_v0 }
  0x40   : > { %344 = vst.msk [vmem:[#allocation3 + $0x120] sm:$0x1] %vm288_vm1, %v4041_v0 }
  0x41   : > { %345 = vst.msk [vmem:[#allocation3 + $0x138] sm:$0x1] %vm288_vm1, %v4041_v0 }
  0x42   : > { %346 = vst.msk [vmem:[#allocation3 + $0x150] sm:$0x1] %vm288_vm1, %v4041_v0 }
  0x43   : > { %347 = vst.msk [vmem:[#allocation3 + $0x168] sm:$0x1] %vm288_vm1, %v4041_v0 }
  0x44   : > { %348 = vst.msk [vmem:[#allocation3 + $0x180] sm:$0x1] %vm288_vm1, %v4041_v0 }
  0x45   : > { %351 = vst.msk [vmem:[#allocation3 + $0x29] sm:$0x1] %vm288_vm1, %v4041_v0 }
  0x46   : > { %352 = vst.msk [vmem:[#allocation3 + $0x41] sm:$0x1] %vm288_vm1, %v4041_v0 }
  0x47   : > { %353 = vst.msk [vmem:[#allocation3 + $0x59] sm:$0x1] %vm288_vm1, %v4041_v0 }
  0x48   : > { %354 = vst.msk [vmem:[#allocation3 + $0x71] sm:$0x1] %vm288_vm1, %v4041_v0 }
  0x49   : > { %355 = vst.msk [vmem:[#allocation3 + $0x89] sm:$0x1] %vm288_vm1, %v4041_v0 }
  0x4a   : > { %356 = vst.msk [vmem:[#allocation3 + $0xa1] sm:$0x1] %vm288_vm1, %v4041_v0 }
  0x4b   : > { %357 = vst.msk [vmem:[#allocation3 + $0xb9] sm:$0x1] %vm288_vm1, %v4041_v0 }
  0x4c   : > { %358 = vst.msk [vmem:[#allocation3 + $0xd1] sm:$0x1] %vm288_vm1, %v4041_v0 }
  0x4d   : > { %359 = vst.msk [vmem:[#allocation3 + $0xe9] sm:$0x1] %vm288_vm1, %v4041_v0 }
  0x4e   : > { %360 = vst.msk [vmem:[#allocation3 + $0x101] sm:$0x1] %vm288_vm1, %v4041_v0 }
  0x4f   : > { %361 = vst.msk [vmem:[#allocation3 + $0x119] sm:$0x1] %vm288_vm1, %v4041_v0 }
  0x50   : > { %362 = vst.msk [vmem:[#allocation3 + $0x131] sm:$0x1] %vm288_vm1, %v4041_v0 }
  0x51   : > { %363 = vst.msk [vmem:[#allocation3 + $0x149] sm:$0x1] %vm288_vm1, %v4041_v0 }
  0x52   : > { %364 = vst.msk [vmem:[#allocation3 + $0x161] sm:$0x1] %vm288_vm1, %v4041_v0 }
  0x53   : > { %8627 = vst [vmem:[#allocation4_spill] sm:$0xff] %v4265_v6 }
  0x54   : > { %365 = vst.msk [vmem:[#allocation3 + $0x179] sm:$0x1] %vm288_vm1, %v4041_v0 }
  0x55   : > { %8628 = vst [vmem:[#allocation5_spill] sm:$0xff] %v4270_v7 }
  0x56   : > { %366 = vst.msk [vmem:[#allocation3 + $0x191] sm:$0x1] %vm288_vm1, %v4041_v0 }
  0x57   : > { %403 = vst.msk [vmem:[#allocation2 + $0x31] sm:$0xff] %vm279_vm0, %v4265_v6 }
  0x58   : > { %404 = vst.msk [vmem:[#allocation2 + $0x39] sm:$0xff] %vm279_vm0, %v4270_v7 }
  0x59   : > { %306 = vst.msk [vmem:[#allocation2 + $0x198] sm:$0x1] %vm288_vm1, %v4041_v0 }
  0x5a   : > { %8629 = vst [vmem:[#allocation6_spill] sm:$0xff] %v4281_v8 }
  0x5b   : > { %332 = vst.msk [vmem:[#allocation3] sm:$0x1] %vm288_vm1, %v4041_v0 }
  0x5c   : > { %8630 = vst [vmem:[#allocation7_spill] sm:$0xff] %v4286_v9 }
  0x5d   : > { %349 = vst.msk [vmem:[#allocation3 + $0x198] sm:$0x1] %vm288_vm1, %v4041_v0 }
  0x5e   : > { %401 = vst.msk [vmem:[#allocation2 + $0x19] sm:$0xff] %vm279_vm0, %v4281_v8  ;;  %v4294_v10 = vld [vmem:[#allocation2 + $0x30] sm:$0xff] }
  0x5f   : > { %402 = vst.msk [vmem:[#allocation2 + $0x21] sm:$0xff] %vm279_vm0, %v4286_v9  ;;  %v4297_v11 = vld [vmem:[#allocation2 + $0x38] sm:$0xff]  ;;  %v546_v12 = vrot.slane %v4294_v10, 1  ;;  %v4305_v14 = vld [vmem:[#allocation2 + $0x40] sm:$0x3] }
  0x60   : > { %283 = vst.msk [vmem:[#allocation2 + $0x10] sm:$0x3] %vm282_vm3, %v4041_v0  ;;  %v547_v13 = vrot.slane %v4297_v11, 1  ;;  %v549_v20 = vrot.slane %v4305_v14, 1 }
  0x61   : > { %307 = vst.msk [vmem:[#allocation2 + $0x11] sm:$0x1] %vm288_vm1, %v4041_v0 }
  0x62   : > { %287 = vst.msk [vmem:[#allocation2 + $0x1a8] sm:$0x3] %vm282_vm3, %v4041_v0  ;;  %v4308_v15 = vsel %vm535_vm2, %v546_v12, %v547_v13  ;;  %v4356_v30 = vsel %vm535_vm2, %v547_v13, %v549_v20  ;;  %v4484_v12 = vld [vmem:[%s4256_s30 + $0xb0] sm:$0xff]  ;;  %v4487_v13 = vld [vmem:[%s4256_s30 + $0xb8] sm:$0xff] }
  0x63   : > { %327 = vst.msk [vmem:[#allocation3 + $0x10] sm:$0x3] %vm282_vm3, %v4041_v0  ;;  %731 = vrot.lane.b32.xlu2 %v4308_v15, %s4042_s26 }
  0x64   : > { %331 = vst.msk [vmem:[#allocation3 + $0x1a8] sm:$0x3] %vm282_vm3, %v4041_v0 }
  0x65   : > { %v4313_v16 = vld [vmem:[#allocation2 + $0x18] sm:$0xff]  ;;  %324 = vst.msk [vmem:[#allocation2 + $0x1a9] sm:$0x1] %vm288_vm1, %v4041_v0 }
  0x66   : > { %8631 = vst [vmem:[#allocation8_spill] sm:$0xff] %v4318_v17  ;;  %v4320_v18 = vld [vmem:[#allocation2 + $0x20] sm:$0xff]  ;;  %v541_v19 = vrot.slane %v4313_v16, 1  ;;  %v4337_v25 = vld [vmem:[#allocation2 + $0x28] sm:$0x3] }
  0x67   : > { %350 = vst.msk [vmem:[#allocation3 + $0x11] sm:$0x1] %vm288_vm1, %v4041_v0  ;;  %v542_v22 = vrot.slane %v4320_v18, 1  ;;  %v544_v33 = vrot.slane %v4337_v25, 1 }
  0x68   : > { %8632 = vst [vmem:[#allocation9_spill] sm:$0xff] %v4327_v21  ;;  %v4335_v24 = vld [vmem:[#allocation2 + $0x10] sm:$0x3] }
  0x69   : > { %367 = vst.msk [vmem:[#allocation3 + $0x1a9] sm:$0x1] %vm288_vm1, %v4041_v0  ;;  %v4345_v27 = vsel %vm535_vm2, %v541_v19, %v542_v22  ;;  %v539_v28 = vrot.slane %v4335_v24, 1  ;;  %v4391_v38 = vsel %vm535_vm2, %v542_v22, %v544_v33 }
  0x6a   : > { %8633 = vst [vmem:[#allocation10_spill] sm:$0xff] %v4333_v23  ;;  %727 = vrot.lane.b32.xlu1 %v4345_v27, %s4042_s26 }
  0x6b   : > { %405 = vst.msk [vmem:[#allocation2 + $0x49] sm:$0xff] %vm279_vm0, %v4318_v17  ;;  %v540_v32 = vsel %vm535_vm2, %v537_v3, %v539_v28  ;;  %733 = vrot.lane.b32.xlu2 %v4356_v30, %s4042_s26  ;;  %v4472_v3 = vld [vmem:[%s4256_s30 + $0xa8] sm:$0xff] }
  0x6c   : > { %8634 = vst [vmem:[#allocation11_spill] sm:$0xff] %v4342_v26  ;;  %725 = vrot.lane.b32.xlu0 %v540_v32, %s4042_s26 }
  0x6d   : > { %406 = vst.msk [vmem:[#allocation2 + $0x51] sm:$0xff] %vm279_vm0, %v4327_v21 }
  0x6e   : > { %8635 = vst [vmem:[#allocation12_spill] sm:$0xff] %v4351_v29 }
  0x6f   : > { %407 = vst.msk [vmem:[#allocation2 + $0x61] sm:$0xff] %vm279_vm0, %v4333_v23 }
  0x70   : > { %8636 = vst [vmem:[#allocation13_spill] sm:$0xff] %v4361_v31 }
  0x71   : > { %408 = vst.msk [vmem:[#allocation2 + $0x69] sm:$0xff] %vm279_vm0, %v4342_v26 }
  0x72   : > { %8637 = vst [vmem:[#allocation14_spill] sm:$0xff] %v4370_v34  ;;  %v4393_v39 = vld [vmem:[#allocation2 + $0x48] sm:$0xff]  ;;  %729 = vrot.lane.b32.xlu1 %v4391_v38, %s4042_s26 }
  0x73   : > { %409 = vst.msk [vmem:[#allocation2 + $0x79] sm:$0xff] %vm279_vm0, %v4351_v29  ;;  %v551_v42 = vrot.slane %v4393_v39, 1  ;;  %v4559_v29 = vld [vmem:[%s4256_s30 + $0xd8] sm:$0xff] }
  0x74   : > { %8638 = vst [vmem:[#allocation15_spill] sm:$0xff] %v4376_v35  ;;  %v4400_v41 = vld [vmem:[#allocation2 + $0x50] sm:$0xff]  ;;  %v4403_v43 = vld [vmem:[#allocation2 + $0x58] sm:$0x3] }
  0x75   : > { %410 = vst.msk [vmem:[#allocation2 + $0x81] sm:$0xff] %vm279_vm0, %v4361_v31  ;;  %v552_v45 = vrot.slane %v4400_v41, 1  ;;  %v554_v54 = vrot.slane %v4403_v43, 1 }
  0x76   : > { %8639 = vst [vmem:[#allocation16_spill] sm:$0xff] %v4383_v36  ;;  %v4411_v46 = vld [vmem:[#allocation2 + $0x60] sm:$0xff] }
  0x77   : > { %411 = vst.msk [vmem:[#allocation2 + $0x91] sm:$0xff] %vm279_vm0, %v4370_v34  ;;  %v556_v49 = vrot.slane %v4411_v46, 1  ;;  %v4431_v52 = vsel %vm535_vm2, %v551_v42, %v552_v45  ;;  %v4465_v62 = vsel %vm535_vm2, %v552_v45, %v554_v54  ;;  %v4551_v34 = vld [vmem:[%s4256_s30 + $0xd0] sm:$0xff] }
  0x78   : > { %8640 = vst [vmem:[#allocation17_spill] sm:$0xff] %v4388_v37  ;;  %v4420_v48 = vld [vmem:[#allocation2 + $0x68] sm:$0xff]  ;;  %v4423_v50 = vld [vmem:[#allocation2 + $0x70] sm:$0x3]  ;;  %735 = vrot.lane.b32.xlu0 %v4431_v52, %s4042_s26 }
  0x79   : > { %412 = vst.msk [vmem:[#allocation2 + $0x99] sm:$0xff] %vm279_vm0, %v4376_v35  ;;  %v557_v53 = vrot.slane %v4420_v48, 1  ;;  %v559_v60 = vrot.slane %v4423_v50, 1 }
  0x7a   : > { %8641 = vst [vmem:[#allocation18_spill] sm:$0xff] %v4398_v40  ;;  %v4474_v4 = vld [vmem:[#allocation2 + $0x78] sm:$0xff]  ;;  %737 = vrot.lane.b32.xlu1 %v4465_v62, %s4042_s26 }
  0x7b   : > { %413 = vst.msk [vmem:[#allocation2 + $0xa9] sm:$0xff] %vm279_vm0, %v4383_v36  ;;  %v4452_v59 = vsel %vm535_vm2, %v556_v49, %v557_v53  ;;  %v4479_v5 = vsel %vm535_vm2, %v557_v53, %v559_v60  ;;  %v561_v28 = vrot.slane %v4474_v4, 1  ;;  %v4514_v49 = vld [vmem:[%s4256_s30 + $0xc0] sm:$0xff] }
  0x7c   : > { %8642 = vst [vmem:[#allocation19_spill] sm:$0xff] %v4408_v44  ;;  %v4442_v56 = vld [vmem:[#allocation2 + $0x80] sm:$0xff]  ;;  %v4444_v57 = vld [vmem:[#allocation2 + $0x88] sm:$0x3]  ;;  %739 = vrot.lane.b32.xlu2 %v4452_v59, %s4042_s26 }
  0x7d   : > { %414 = vst.msk [vmem:[#allocation2 + $0xb1] sm:$0xff] %vm279_vm0, %v4388_v37  ;;  %v562_v63 = vrot.slane %v4442_v56, 1  ;;  %v564_v0 = vrot.slane %v4444_v57, 1 }
  0x7e   : > { %8643 = vst [vmem:[#allocation20_spill] sm:$0xff] %v4416_v47  ;;  %v4491_v19 = vld [vmem:[#allocation2 + $0x90] sm:$0xff] }
  0x7f   : > { %415 = vst.msk [vmem:[#allocation2 + $0xc1] sm:$0xff] %vm279_vm0, %v4398_v40  ;;  %v4498_v22 = vsel %vm535_vm2, %v562_v63, %v564_v0  ;;  %v566_v42 = vrot.slane %v4491_v19, 1  ;;  %v4517_v53 = vsel %vm535_vm2, %v561_v28, %v562_v63  ;;  %v4522_v0 = vld [vmem:[%s4256_s30 + $0xc8] sm:$0xff] }
  0x80   : > { %8644 = vst [vmem:[#allocation21_spill] sm:$0xff] %v4428_v51  ;;  %v4493_v20 = vld [vmem:[#allocation2 + $0x98] sm:$0xff]  ;;  %741 = vrot.lane.b32.xlu0 %v4479_v5, %s4042_s26 }
  0x81   : > { %416 = vst.msk [vmem:[#allocation2 + $0xc9] sm:$0xff] %vm279_vm0, %v4408_v44  ;;  %v567_v45 = vrot.slane %v4493_v20, 1  ;;  %v4526_v44 = vld [vmem:[#allocation2 + $0xa0] sm:$0x3] }
  0x82   : > { %8645 = vst [vmem:[#allocation22_spill] sm:$0xff] %v4438_v55  ;;  %v4505_v32 = vld [vmem:[#allocation2 + $0xa8] sm:$0xff]  ;;  %743 = vrot.lane.b32.xlu1 %v4517_v53, %s4042_s26  ;;  %v569_v37 = vrot.slane %v4526_v44, 1 }
  0x83   : > { %417 = vst.msk [vmem:[#allocation2 + $0xd9] sm:$0xff] %vm279_vm0, %v4416_v47  ;;  %v571_v54 = vrot.slane %v4505_v32, 1  ;;  %v4531_v40 = vsel %vm535_vm2, %v566_v42, %v567_v45 }
  0x84   : > { %8646 = vst [vmem:[#allocation23_spill] sm:$0xff] %v4449_v58  ;;  %v4507_v33 = vld [vmem:[#allocation2 + $0xb0] sm:$0xff]  ;;  %745 = vrot.lane.b32.xlu2 %v4498_v22, %s4042_s26  ;;  %v4535_v63 = vld [vmem:[#allocation2 + $0xb8] sm:$0x3] }
  0x85   : > { %8647 = vst [vmem:[#allocation24_spill] sm:$0xff] %v4452_v59  ;;  %v572_v60 = vrot.slane %v4507_v33, 1  ;;  %v574_v42 = vrot.slane %v4535_v63, 1 }
  0x86   : > { %418 = vst.msk [vmem:[#allocation2 + $0xe1] sm:$0xff] %vm279_vm0, %v4428_v51 }
  0x87   : > { %419 = vst.msk [vmem:[#allocation2 + $0xf1] sm:$0xff] %vm279_vm0, %v4438_v55  ;;  %v4538_v28 = vsel %vm535_vm2, %v571_v54, %v572_v60  ;;  %v4554_v54 = vsel %vm535_vm2, %v567_v45, %v569_v37  ;;  %v4568_v26 = vsel %vm535_vm2, %v572_v60, %v574_v42  ;;  %v4574_v37 = vld [vmem:[%s4256_s30 + $0xe8] sm:$0xff] }
  0x88   : > { %8648 = vst [vmem:[#allocation25_spill] sm:$0xff] %v4462_v61  ;;  %747 = vrot.lane.b32.xlu0 %v4531_v40, %s4042_s26  ;;  %v4543_v36 = vld [vmem:[#allocation2 + $0xc8] sm:$0xff]  ;;  %v4545_v35 = vld [vmem:[#allocation2 + $0xd0] sm:$0x3] }
  0x89   : > { %420 = vst.msk [vmem:[#allocation2 + $0xf9] sm:$0xff] %vm279_vm0, %v4449_v58  ;;  %v577_v31 = vrot.slane %v4543_v36, 1 }
  0x8a   : > { %8649 = vst [vmem:[#allocation26_spill] sm:$0xff] %v4472_v3  ;;  %749 = vrot.lane.b32.xlu1 %v4554_v54, %s4042_s26  ;;  %v4578_v45 = vld [vmem:[#allocation2 + $0xd8] sm:$0xff] }
  0x8b   : > { %421 = vst.msk [vmem:[#allocation2 + $0x109] sm:$0xff] %vm279_vm0, %v4462_v61 }
  0x8c   : > { %8650 = vst [vmem:[#allocation27_spill] sm:$0xff] %v4479_v5  ;;  %751 = vrot.lane.b32.xlu2 %v4538_v28, %s4042_s26 }
  0x8d   : > { %422 = vst.msk [vmem:[#allocation2 + $0x111] sm:$0xff] %vm279_vm0, %v4472_v3  ;;  %v4580_v23 = vld [vmem:[#allocation2 + $0xe0] sm:$0xff]  ;;  %v4605_v3 = vld [vmem:[#allocation2 + $0xe8] sm:$0x3] }
  0x8e   : > { %8651 = vst [vmem:[#allocation28_spill] sm:$0xff] %v4484_v12  ;;  %v4592_v42 = vld [vmem:[#allocation2 + $0xf0] sm:$0xff]  ;;  %v582_v21 = vrot.slane %v4580_v23, 1 }
  0x8f   : > { %8652 = vst [vmem:[#allocation29_spill] sm:$0xff] %v4487_v13 }
  0x90   : > { %423 = vst.msk [vmem:[#allocation2 + $0x121] sm:$0xff] %vm279_vm0, %v4484_v12  ;;  %753 = vrot.lane.b32.xlu0 %v4568_v26, %s4042_s26  ;;  %v581_v12 = vrot.slane %v4578_v45, 1  ;;  %v4612_v61 = vld [vmem:[#allocation2 + $0x100] sm:$0x3] }
  0x91   : > { %8653 = vst [vmem:[#allocation30_spill] sm:$0xff] %v4498_v22 }
  0x92   : > { %424 = vst.msk [vmem:[#allocation2 + $0x129] sm:$0xff] %vm279_vm0, %v4487_v13  ;;  %v4571_v13 = vld [vmem:[%s4256_s30 + $0xe0] sm:$0xff]  ;;  %v4608_v17 = vsel %vm535_vm2, %v581_v12, %v582_v21  ;;  %v589_v12 = vrot.slane %v4612_v61, 1  ;;  %v4632_v9 = vld [vmem:[#allocation2 + $0x108] sm:$0xff] }
  0x93   : > { %8654 = vst [vmem:[#allocation31_spill] sm:$0xff] %v4514_v49 }
  0x94   : > { %8655 = vst [vmem:[#allocation32_spill] sm:$0xff] %v4517_v53  ;;  %v4622_v58 = vld [vmem:[#allocation2 + $0x118] sm:$0x3] }
  0x95   : > { %8656 = vst [vmem:[#allocation33_spill] sm:$0xff] %v4522_v0  ;;  %v594_v55 = vrot.slane %v4622_v58, 1 }
  0x96   : > { %425 = vst.msk [vmem:[#allocation2 + $0x139] sm:$0xff] %vm279_vm0, %v4514_v49  ;;  %v4563_v49 = vld [vmem:[#allocation2 + $0xc0] sm:$0xff] }
  0x97   : > { %426 = vst.msk [vmem:[#allocation2 + $0x141] sm:$0xff] %vm279_vm0, %v4522_v0  ;;  %v579_v0 = vrot.slane %v4545_v35, 1  ;;  %v576_v60 = vrot.slane %v4563_v49, 1  ;;  %v4639_v8 = vld [vmem:[#allocation2 + $0x120] sm:$0xff] }
  0x98   : > { %8657 = vst [vmem:[#allocation34_spill] sm:$0xff] %v4531_v40  ;;  %759 = vrot.lane.b32.xlu0 %v4608_v17, %s4042_s26 }
  0x99   : > { %8658 = vst [vmem:[#allocation35_spill] sm:$0xff] %v4538_v28  ;;  %v4641_v47 = vld [vmem:[#allocation2 + $0x128] sm:$0xff] }
  0x9a   : > { %8659 = vst [vmem:[#allocation36_spill] sm:$0xff] %v4551_v34 }
  0x9b   : > { %8660 = vst [vmem:[#allocation37_spill] sm:$0xff] %v4554_v54 }
  0x9c   : > { %8661 = vst [vmem:[#allocation38_spill] sm:$0xff] %v4559_v29 }
  0x9d   : > { %427 = vst.msk [vmem:[#allocation2 + $0x151] sm:$0xff] %vm279_vm0, %v4551_v34  ;;  %v4585_v34 = vsel %vm535_vm2, %v577_v31, %v579_v0  ;;  %v4601_v0 = vsel %vm535_vm2, %v576_v60, %v577_v31  ;;  %v584_v31 = vrot.slane %v4605_v3, 1  ;;  %v4620_v60 = vld [vmem:[#allocation2 + $0x110] sm:$0xff] }
  0x9e   : > { %428 = vst.msk [vmem:[#allocation2 + $0x159] sm:$0xff] %vm279_vm0, %v4559_v29  ;;  %v4594_v29 = vld [vmem:[#allocation2 + $0xf8] sm:$0xff]  ;;  %757 = vrot.lane.b32.xlu2 %v4585_v34, %s4042_s26  ;;  %755 = vrot.lane.b32.xlu1 %v4601_v0, %s4042_s26 }
  0x9f   : > { %8662 = vst [vmem:[#allocation39_spill] sm:$0xff] %v4568_v26  ;;  %v4628_v6 = vsel %vm535_vm2, %v582_v21, %v584_v31  ;;  %v591_v21 = vrot.slane %v4632_v9, 1  ;;  %v4649_v31 = vld [vmem:[#allocation2 + $0x138] sm:$0xff]  ;;  %v4662_v26 = vld [vmem:[#allocation2 + $0x130] sm:$0x3] }
  0xa0   : > { %8663 = vst [vmem:[#allocation40_spill] sm:$0xff] %v4571_v13 }
  0xa1   : > { %8664 = vst [vmem:[#allocation41_spill] sm:$0xff] %v4574_v37 }
  0xa2   : > { %429 = vst.msk [vmem:[#allocation2 + $0x169] sm:$0xff] %vm279_vm0, %v4571_v13  ;;  %v586_v13 = vrot.slane %v4592_v42, 1 }
  0xa3   : > { %8665 = vst [vmem:[#allocation42_spill] sm:$0xff] %v4585_v34 }
  0xa4   : > { %430 = vst.msk [vmem:[#allocation2 + $0x171] sm:$0xff] %vm279_vm0, %v4574_v37  ;;  %v587_v37 = vrot.slane %v4594_v29, 1  ;;  %v4689_v54 = vld [vmem:[#allocation2 + $0x150] sm:$0xff] }
  0xa5   : > { %8666 = vst [vmem:[#allocation43_spill] sm:$0xff] %v4601_v0  ;;  %v4669_v0 = vld [vmem:[#allocation2 + $0x148] sm:$0x3] }
  0xa6   : > { %8667 = vst [vmem:[#allocation44_spill] sm:$0xff] %v4608_v17  ;;  %v4615_v7 = vsel %vm535_vm2, %v586_v13, %v587_v37  ;;  %v592_v13 = vrot.slane %v4620_v60, 1  ;;  %v4635_v51 = vsel %vm535_vm2, %v587_v37, %v589_v12  ;;  %761 = vrot.lane.b32.xlu1 %v4628_v6, %s4042_s26  ;;  %v4651_v17 = vld [vmem:[#allocation2 + $0x140] sm:$0xff]  ;;  %v596_v37 = vrot.slane %v4639_v8, 1 }
  0xa7   : > { %8668 = vst [vmem:[#allocation45_spill] sm:$0xff] %v4615_v7  ;;  %763 = vrot.lane.b32.xlu2 %v4615_v7, %s4042_s26  ;;  %765 = vrot.lane.b32.xlu0 %v4635_v51, %s4042_s26  ;;  %v597_v12 = vrot.slane %v4641_v47, 1  ;;  %v602_v34 = vrot.slane %v4651_v17, 1 }
  0xa8   : > { %8669 = vst [vmem:[#allocation46_spill] sm:$0xff] %v4628_v6  ;;  %v4644_v7 = vsel %vm535_vm2, %v592_v13, %v594_v55  ;;  %v4658_v6 = vsel %vm535_vm2, %v591_v21, %v592_v13  ;;  %v601_v55 = vrot.slane %v4649_v31, 1  ;;  %v599_v13 = vrot.slane %v4662_v26, 1  ;;  %v4677_v21 = vld [vmem:[#allocation2 + $0x158] sm:$0xff] }
  0xa9   : > { %8670 = vst [vmem:[#allocation47_spill] sm:$0xff] %v4635_v51  ;;  %v4665_v51 = vsel %vm535_vm2, %v596_v37, %v597_v12  ;;  %v604_v37 = vrot.slane %v4669_v0, 1  ;;  %v4696_v22 = vld [vmem:[#allocation2 + $0x168] sm:$0xff] }
  0xaa   : > { %8671 = vst [vmem:[#allocation48_spill] sm:$0xff] %v4644_v7  ;;  %v4672_v28 = vsel %vm535_vm2, %v601_v55, %v602_v34  ;;  %v607_v55 = vrot.slane %v4677_v21, 1 }
  0xab   : > { %8672 = vst [vmem:[#allocation49_spill] sm:$0xff] %v4658_v6  ;;  %v4698_v5 = vld [vmem:[#allocation2 + $0x170] sm:$0xff]  ;;  %v4715_v53 = vld [vmem:[#allocation2 + $0x178] sm:$0x3] }
  0xac   : > { %8673 = vst [vmem:[#allocation50_spill] sm:$0xff] %v4665_v51 }
  0xad   : > { %8674 = vst [vmem:[#allocation51_spill] sm:$0xff] %v4672_v28 }
  0xae   : > { %767 = vrot.lane.b32.xlu1 %v4658_v6, %s4042_s26  ;;  %v4685_v6 = vsel %vm535_vm2, %v597_v12, %v599_v13  ;;  %v606_v12 = vrot.slane %v4689_v54, 1  ;;  %v611_v13 = vrot.slane %v4696_v22, 1 }
  0xaf   : > { %769 = vrot.lane.b32.xlu2 %v4644_v7, %s4042_s26  ;;  %771 = vrot.lane.b32.xlu0 %v4665_v51, %s4042_s26  ;;  %v4679_v7 = vld [vmem:[#allocation2 + $0x160] sm:$0x3]  ;;  %8675 = vst [vmem:[#allocation52_spill] sm:$0xff] %v4685_v6  ;;  %v4692_v51 = vsel %vm535_vm2, %v602_v34, %v604_v37  ;;  %v612_v34 = vrot.slane %v4698_v5, 1 }
  0xb0   : > { %v609_v40 = vrot.slane %v4679_v7, 1  ;;  %8676 = vst [vmem:[#allocation53_spill] sm:$0xff] %v4692_v51  ;;  %v4711_v37 = vsel %vm535_vm2, %v606_v12, %v607_v55  ;;  %v625_v12 = vrot.slane %v4337_v25, 2 }
  0xb1   : > { %8678 = vst [vmem:[#allocation55_spill] sm:$0xff] %v4711_v37  ;;  %v4718_v59 = vsel %vm535_vm2, %v611_v13, %v612_v34 }
  0xb2   : > { %8679 = vst [vmem:[#allocation56_spill] sm:$0xff] %v4718_v59 }
  0xb6   : > { %773 = vrot.lane.b32.xlu1 %v4685_v6, %s4042_s26  ;;  %v617_v6 = vrot.slane %v4118_v2, 2  ;;  %v620_v2 = vrot.slane %v4335_v24, 2  ;;  %v622_v24 = vrot.slane %v4313_v16, 2 }
  0xb7   : > { %775 = vrot.lane.b32.xlu2 %v4672_v28, %s4042_s26  ;;  %v4701_v28 = vsel %vm535_vm2, %v607_v55, %v609_v40  ;;  %777 = vrot.lane.b32.xlu0 %v4692_v51, %s4042_s26  ;;  %v618_v40 = vrot.slane %v4114_v1, 2  ;;  %v623_v55 = vrot.slane %v4320_v18, 2 }
  0xb8   : > { %8677 = vst [vmem:[#allocation54_spill] sm:$0xff] %v4701_v28 }
  0xb9   : > { %v619_v51 = vsel %vm616_vm4, %v617_v6, %v618_v40  ;;  %v621_v13 = vsel %vm616_vm4, %v618_v40, %v620_v2  ;;  %v4737_v6 = vsel %vm616_vm4, %v623_v55, %v625_v12  ;;  %v4746_v25 = vsel %vm616_vm4, %v622_v24, %v623_v55 }
  0xba   : > { %8681 = vst [vmem:[#allocation58_spill] sm:$0xff] %v4737_v6  ;;  %v632_v40 = vrot.slane %v4393_v39, 2  ;;  %v633_v2 = vrot.slane %v4400_v41, 2  ;;  %v635_v55 = vrot.slane %v4403_v43, 2  ;;  %v637_v43 = vrot.slane %v4411_v46, 2 }
  0xbb   : > { %8682 = vst [vmem:[#allocation59_spill] sm:$0xff] %v4746_v25 }
  0xbe   : > { %779 = vrot.lane.b32.xlu1 %v4711_v37, %s4042_s26 }
  0xbf   : > { %781 = vrot.lane.b32.xlu2 %v4701_v28, %s4042_s26  ;;  %v614_v28 = vrot.slane %v4715_v53, 1  ;;  %783 = vrot.lane.b32.xlu0 %v4718_v59, %s4042_s26 }
  0xc1   : > { %v4729_v1 = vsel %vm535_vm2, %v612_v34, %v614_v28  ;;  %v628_v28 = vrot.slane %v4297_v11, 2  ;;  %v4748_v34 = vpop.permute.xlu2 %731 }
  0xc2   : > { %8680 = vst [vmem:[#allocation57_spill] sm:$0xff] %v4729_v1 }
  0xc3   : > { %8683 = vst [vmem:[#allocation60_spill] sm:$0xff] %v4748_v34  ;;  %v638_v34 = vrot.slane %v4420_v48, 2 }
  0xc6   : > { %785 = vrot.lane.b32.xlu1 %v4729_v1, %s4042_s26 }
  0xc7   : > { %819 = vrot.lane.b32.xlu2 %v619_v51, %s4043_s8  ;;  %821 = vrot.lane.b32.xlu0 %v621_v13, %s4043_s8  ;;  %v627_v51 = vrot.slane %v4294_v10, 2  ;;  %v4758_v13 = vsel %vm616_vm4, %v632_v40, %v633_v2  ;;  %v640_v40 = vrot.slane %v4423_v50, 2  ;;  %v4789_v50 = vsel %vm616_vm4, %v637_v43, %v638_v34 }
  0xc8   : > { %8687 = vst [vmem:[#allocation64_spill] sm:$0xff] %v4789_v50  ;;  %v650_v43 = vrot.slane %v4526_v44, 2 }
  0xc9   : > { %v4753_v12 = vsel %vm616_vm4, %v627_v51, %v628_v28  ;;  %v4769_v51 = vpop.permute.xlu2 %733 }
  0xca   : > { %8684 = vst [vmem:[#allocation61_spill] sm:$0xff] %v4769_v51 }
  0xce   : > { %823 = vrot.lane.b32.xlu1 %v4746_v25, %s4043_s8  ;;  %v4774_v25 = vsel %vm616_vm4, %v633_v2, %v635_v55  ;;  %v647_v2 = vrot.slane %v4491_v19, 2  ;;  %v648_v55 = vrot.slane %v4493_v20, 2 }
  0xcf   : > { %825 = vrot.lane.b32.xlu2 %v4737_v6, %s4043_s8  ;;  %v630_v6 = vrot.slane %v4305_v14, 2  ;;  %827 = vrot.lane.b32.xlu0 %v4753_v12, %s4043_s8  ;;  %8685 = vst [vmem:[#allocation62_spill] sm:$0xff] %v4774_v25  ;;  %v4779_v14 = vsel %vm616_vm4, %v638_v34, %v640_v40  ;;  %v4806_v34 = vpop.permute.xlu0 %723 }
  0xd0   : > { %8686 = vst [vmem:[#allocation63_spill] sm:$0xff] %v4779_v14 }
  0xd1   : > { %v4767_v24 = vsel %vm616_vm4, %v628_v28, %v630_v6  ;;  %v642_v6 = vrot.slane %v4474_v4, 2  ;;  %v643_v28 = vrot.slane %v4442_v56, 2  ;;  %8690 = vst [vmem:[#allocation67_spill] sm:$0xff] %v4806_v34  ;;  %v652_v34 = vrot.slane %v4505_v32, 2 }
  0xd3   : > { %v4796_v51 = vsel %vm616_vm4, %v642_v6, %v643_v28 }
  0xd6   : > { %829 = vrot.lane.b32.xlu1 %v4767_v24, %s4043_s8  ;;  %v4793_v40 = vpop.permute.xlu2 %739 }
  0xd7   : > { %831 = vrot.lane.b32.xlu2 %v4758_v13, %s4043_s8  ;;  %833 = vrot.lane.b32.xlu0 %v4774_v25, %s4043_s8  ;;  %8688 = vst [vmem:[#allocation65_spill] sm:$0xff] %v4793_v40  ;;  %v4801_v25 = vsel %vm616_vm4, %v647_v2, %v648_v55  ;;  %v653_v40 = vrot.slane %v4507_v33, 2  ;;  %v655_v2 = vrot.slane %v4535_v63, 2  ;;  %v657_v63 = vrot.slane %v4563_v49, 2 }
  0xd8   : > { %8689 = vst [vmem:[#allocation66_spill] sm:$0xff] %v4801_v25 }
  0xd9   : > { %v4824_v44 = vsel %vm616_vm4, %v653_v40, %v655_v2  ;;  %v663_v2 = vrot.slane %v4580_v23, 2 }
  0xda   : > { %8694 = vst [vmem:[#allocation71_spill] sm:$0xff] %v4824_v44 }
  0xde   : > { %835 = vrot.lane.b32.xlu1 %v4789_v50, %s4043_s8  ;;  %v4816_v50 = vpop.permute.xlu2 %745 }
  0xdf   : > { %837 = vrot.lane.b32.xlu2 %v4779_v14, %s4043_s8  ;;  %v645_v14 = vrot.slane %v4444_v57, 2  ;;  %839 = vrot.lane.b32.xlu0 %v4796_v51, %s4043_s8  ;;  %8692 = vst [vmem:[#allocation69_spill] sm:$0xff] %v4816_v50  ;;  %v4819_v57 = vsel %vm616_vm4, %v648_v55, %v650_v43  ;;  %v4838_v55 = vsel %vm616_vm4, %v652_v34, %v653_v40  ;;  %v662_v43 = vrot.slane %v4578_v45, 2 }
  0xe0   : > { %8693 = vst [vmem:[#allocation70_spill] sm:$0xff] %v4819_v57  ;;  %v665_v40 = vrot.slane %v4605_v3, 2 }
  0xe1   : > { %v4812_v6 = vsel %vm616_vm4, %v643_v28, %v645_v14  ;;  %v658_v14 = vrot.slane %v4543_v36, 2  ;;  %v4833_v28 = vpop.permute.xlu0 %725  ;;  %8697 = vst [vmem:[#allocation74_spill] sm:$0xff] %v4838_v55 }
  0xe2   : > { %8691 = vst [vmem:[#allocation68_spill] sm:$0xff] %v4812_v6 }
  0xe3   : > { %8696 = vst [vmem:[#allocation73_spill] sm:$0xff] %v4833_v28  ;;  %v4850_v28 = vsel %vm616_vm4, %v662_v43, %v663_v2  ;;  %v668_v43 = vrot.slane %v4594_v29, 2 }
  0xe4   : > { %8699 = vst [vmem:[#allocation76_spill] sm:$0xff] %v4850_v28 }
  0xe6   : > { %841 = vrot.lane.b32.xlu1 %v4812_v6, %s4043_s8  ;;  %v4842_v50 = vpop.permute.xlu2 %751 }
  0xe7   : > { %843 = vrot.lane.b32.xlu2 %v4801_v25, %s4043_s8  ;;  %v4827_v25 = vpop.permute.xlu1 %727  ;;  %845 = vrot.lane.b32.xlu0 %v4819_v57, %s4043_s8  ;;  %8698 = vst [vmem:[#allocation75_spill] sm:$0xff] %v4842_v50  ;;  %v670_v50 = vrot.slane %v4612_v61, 2  ;;  %v672_v61 = vrot.slane %v4632_v9, 2 }
  0xe8   : > { %8695 = vst [vmem:[#allocation72_spill] sm:$0xff] %v4827_v25  ;;  %v4845_v25 = vsel %vm616_vm4, %v657_v63, %v658_v14 }
  0xe9   : > { %v4875_v3 = vsel %vm616_vm4, %v668_v43, %v670_v50  ;;  %v677_v50 = vrot.slane %v4639_v8, 2 }
  0xea   : > { %v4858_v34 = vpop.permute.xlu0 %735  ;;  %8705 = vst [vmem:[#allocation82_spill] sm:$0xff] %v4875_v3 }
  0xeb   : > { %8701 = vst [vmem:[#allocation78_spill] sm:$0xff] %v4858_v34  ;;  %v667_v34 = vrot.slane %v4592_v42, 2 }
  0xee   : > { %847 = vrot.lane.b32.xlu1 %v4838_v55, %s4043_s8 }
  0xef   : > { %849 = vrot.lane.b32.xlu2 %v4824_v44, %s4043_s8  ;;  %v660_v44 = vrot.slane %v4545_v35, 2  ;;  %v4853_v57 = vpop.permute.xlu1 %729  ;;  %851 = vrot.lane.b32.xlu0 %v4845_v25, %s4043_s8 }
  0xf0   : > { %8700 = vst [vmem:[#allocation77_spill] sm:$0xff] %v4853_v57  ;;  %v4870_v57 = vsel %vm616_vm4, %v663_v2, %v665_v40  ;;  %v4889_v2 = vsel %vm616_vm4, %v667_v34, %v668_v43  ;;  %v678_v40 = vrot.slane %v4641_v47, 2  ;;  %v680_v34 = vrot.slane %v4662_v26, 2 }
  0xf1   : > { %v4863_v63 = vsel %vm616_vm4, %v658_v14, %v660_v44  ;;  %8704 = vst [vmem:[#allocation81_spill] sm:$0xff] %v4870_v57  ;;  %v673_v44 = vrot.slane %v4620_v60, 2 }
  0xf2   : > { %8702 = vst [vmem:[#allocation79_spill] sm:$0xff] %v4863_v63  ;;  %v4884_v14 = vpop.permute.xlu0 %741 }
  0xf3   : > { %8707 = vst [vmem:[#allocation84_spill] sm:$0xff] %v4884_v14  ;;  %v4901_v14 = vsel %vm616_vm4, %v677_v50, %v678_v40  ;;  %v683_v50 = vrot.slane %v4651_v17, 2 }
  0xf4   : > { %8708 = vst [vmem:[#allocation85_spill] sm:$0xff] %v4889_v2 }
  0xf5   : > { %8710 = vst [vmem:[#allocation87_spill] sm:$0xff] %v4901_v14 }
  0xf6   : > { %853 = vrot.lane.b32.xlu1 %v4863_v63, %s4043_s8 }
  0xf7   : > { %855 = vrot.lane.b32.xlu2 %v4850_v28, %s4043_s8  ;;  %v4878_v28 = vpop.permute.xlu1 %737  ;;  %857 = vrot.lane.b32.xlu0 %v4870_v57, %s4043_s8 }
  0xf8   : > { %v4867_v35 = vpop.permute.xlu2 %757  ;;  %8706 = vst [vmem:[#allocation83_spill] sm:$0xff] %v4878_v28 }
  0xf9   : > { %8703 = vst [vmem:[#allocation80_spill] sm:$0xff] %v4867_v35  ;;  %v4896_v35 = vsel %vm616_vm4, %v672_v61, %v673_v44 }
  0xfa   : > { %v4909_v43 = vpop.permute.xlu0 %747 }
  0xfb   : > { %8712 = vst [vmem:[#allocation89_spill] sm:$0xff] %v4909_v43  ;;  %v682_v43 = vrot.slane %v4649_v31, 2 }
  0xfe   : > { %859 = vrot.lane.b32.xlu1 %v4889_v2, %s4043_s8 }
  0xff   : > { %861 = vrot.lane.b32.xlu2 %v4875_v3, %s4043_s8  ;;  %v675_v3 = vrot.slane %v4622_v58, 2  ;;  %v4904_v57 = vpop.permute.xlu1 %743  ;;  %863 = vrot.lane.b32.xlu0 %v4896_v35, %s4043_s8 }
 0x100   : > { %8711 = vst [vmem:[#allocation88_spill] sm:$0xff] %v4904_v57  ;;  %v4921_v57 = vsel %vm616_vm4, %v678_v40, %v680_v34  ;;  %v4940_v40 = vsel %vm616_vm4, %v682_v43, %v683_v50  ;;  %v693_v34 = vrot.slane %v4698_v5, 2  ;;  %v695_v43 = vrot.slane %v4715_v53, 2 }
 0x101   : > { %v4893_v28 = vpop.permute.xlu2 %763  ;;  %v4914_v61 = vsel %vm616_vm4, %v673_v44, %v675_v3  ;;  %8715 = vst [vmem:[#allocation92_spill] sm:$0xff] %v4921_v57  ;;  %v688_v3 = vrot.slane %v4677_v21, 2 }
 0x102   : > { %8709 = vst [vmem:[#allocation86_spill] sm:$0xff] %v4893_v28  ;;  %v685_v28 = vrot.slane %v4669_v0, 2  ;;  %v687_v0 = vrot.slane %v4689_v54, 2  ;;  %v4935_v44 = vpop.permute.xlu0 %753 }
 0x103   : > { %8713 = vst [vmem:[#allocation90_spill] sm:$0xff] %v4914_v61 }
 0x104   : > { %v4926_v26 = vsel %vm616_vm4, %v683_v50, %v685_v28  ;;  %8718 = vst [vmem:[#allocation95_spill] sm:$0xff] %v4935_v44  ;;  %v692_v28 = vrot.slane %v4696_v22, 2 }
 0x105   : > { %8716 = vst [vmem:[#allocation93_spill] sm:$0xff] %v4926_v26 }
 0x106   : > { %865 = vrot.lane.b32.xlu1 %v4914_v61, %s4043_s8  ;;  %8719 = vst [vmem:[#allocation96_spill] sm:$0xff] %v4940_v40  ;;  %v4952_v44 = vsel %vm616_vm4, %v692_v28, %v693_v34  ;;  %v4970_v28 = vsel %vm616_vm4, %v693_v34, %v695_v43 }
 0x107   : > { %867 = vrot.lane.b32.xlu2 %v4901_v14, %s4043_s8  ;;  %v4929_v14 = vpop.permute.xlu1 %749  ;;  %869 = vrot.lane.b32.xlu0 %v4921_v57, %s4043_s8 }
 0x108   : > { %8717 = vst [vmem:[#allocation94_spill] sm:$0xff] %v4929_v14 }
 0x109   : > { %v4918_v58 = vpop.permute.xlu2 %769 }
 0x10a   : > { %8714 = vst [vmem:[#allocation91_spill] sm:$0xff] %v4918_v58  ;;  %v4947_v58 = vsel %vm616_vm4, %v687_v0, %v688_v3  ;;  %v4960_v50 = vpop.permute.xlu0 %759 }
 0x10b   : > { %8722 = vst [vmem:[#allocation99_spill] sm:$0xff] %v4960_v50 }
 0x10e   : > { %871 = vrot.lane.b32.xlu1 %v4940_v40, %s4043_s8 }
 0x10f   : > { %873 = vrot.lane.b32.xlu2 %v4926_v26, %s4043_s8  ;;  %v690_v26 = vrot.slane %v4679_v7, 2  ;;  %875 = vrot.lane.b32.xlu0 %v4947_v58, %s4043_s8 }
 0x110   : > { %v4955_v57 = vpop.permute.xlu1 %755 }
 0x111   : > { %v4944_v14 = vpop.permute.xlu2 %775  ;;  %8721 = vst [vmem:[#allocation98_spill] sm:$0xff] %v4955_v57  ;;  %v4965_v0 = vsel %vm616_vm4, %v688_v3, %v690_v26 }
 0x112   : > { %8720 = vst [vmem:[#allocation97_spill] sm:$0xff] %v4944_v14 }
 0x113   : > { %8723 = vst [vmem:[#allocation100_spill] sm:$0xff] %v4965_v0 }
 0x116   : > { %877 = vrot.lane.b32.xlu1 %v4965_v0, %s4043_s8 }
 0x117   : > { %879 = vrot.lane.b32.xlu2 %v4952_v44, %s4043_s8  ;;  %881 = vrot.lane.b32.xlu0 %v4970_v28, %s4043_s8 }
 0x118   : > { %v4974_v7 = vpop.permute.xlu1 %761 }
 0x119   : > { %v4967_v14 = vpop.permute.xlu2 %781  ;;  %8725 = vst [vmem:[#allocation102_spill] sm:$0xff] %v4974_v7  ;;  %v4978_v53 = vpop.permute.xlu0 %765 }
 0x11a   : > { %8724 = vst [vmem:[#allocation101_spill] sm:$0xff] %v4967_v14 }
 0x11b   : > { %8726 = vst [vmem:[#allocation103_spill] sm:$0xff] %v4978_v53 }
 0x11e   : > { %915 = vrot.lane.b32.xlu1 %v4313_v16, %s4044_s9 }
 0x11f   : > { %917 = vrot.lane.b32.xlu2 %v4320_v18, %s4044_s9  ;;  %919 = vrot.lane.b32.xlu0 %v4294_v10, %s4044_s9 }
 0x120   : > { %v4986_v3 = vpop.permute.xlu1 %767 }
 0x121   : > { %v4982_v26 = vpop.permute.xlu2 %819  ;;  %8728 = vst [vmem:[#allocation105_spill] sm:$0xff] %v4986_v3  ;;  %v4990_v34 = vpop.permute.xlu0 %771 }
 0x122   : > { %8727 = vst [vmem:[#allocation104_spill] sm:$0xff] %v4982_v26 }
 0x123   : > { %8729 = vst [vmem:[#allocation106_spill] sm:$0xff] %v4990_v34 }
 0x126   : > { %921 = vrot.lane.b32.xlu1 %v4297_v11, %s4044_s9 }
 0x127   : > { %923 = vrot.lane.b32.xlu2 %v4393_v39, %s4044_s9  ;;  %925 = vrot.lane.b32.xlu0 %v4400_v41, %s4044_s9 }
 0x128   : > { %v4998_v18 = vpop.permute.xlu1 %773 }
 0x129   : > { %v4994_v43 = vpop.permute.xlu2 %825  ;;  %8731 = vst [vmem:[#allocation108_spill] sm:$0xff] %v4998_v18  ;;  %v5002_v16 = vpop.permute.xlu0 %777  ;;  %v5048_v18 = vld [vmem:[%s4256_s30 + $0xf8] sm:$0xff] }
 0x12a   : > { %8730 = vst [vmem:[#allocation107_spill] sm:$0xff] %v4994_v43 }
 0x12b   : > { %8732 = vst [vmem:[#allocation109_spill] sm:$0xff] %v5002_v16  ;;  %v5045_v16 = vld [vmem:[%s4256_s30 + $0xf0] sm:$0xff] }
 0x12c   : > { %8743 = vst [vmem:[#allocation120_spill] sm:$0xff] %v5045_v16 }
 0x12d   : > { %8744 = vst [vmem:[#allocation121_spill] sm:$0xff] %v5048_v18 }
 0x12e   : > { %927 = vrot.lane.b32.xlu1 %v4411_v46, %s4044_s9  ;;  %431 = vst.msk [vmem:[#allocation2 + $0x181] sm:$0xff] %vm279_vm0, %v5045_v16 }
 0x12f   : > { %929 = vrot.lane.b32.xlu2 %v4420_v48, %s4044_s9  ;;  %931 = vrot.lane.b32.xlu0 %v4474_v4, %s4044_s9  ;;  %432 = vst.msk [vmem:[#allocation2 + $0x189] sm:$0xff] %vm279_vm0, %v5048_v18 }
 0x130   : > { %v5010_v39 = vpop.permute.xlu1 %779 }
 0x131   : > { %v5006_v10 = vpop.permute.xlu2 %831  ;;  %8734 = vst [vmem:[#allocation111_spill] sm:$0xff] %v5010_v39  ;;  %v5014_v11 = vpop.permute.xlu0 %783 }
 0x132   : > { %8733 = vst [vmem:[#allocation110_spill] sm:$0xff] %v5006_v10  ;;  %v8773_v10 = vld [vmem:[#allocation30_spill] sm:$0xff] }
 0x133   : > { %8735 = vst [vmem:[#allocation112_spill] sm:$0xff] %v5014_v11 }
 0x136   : > { %933 = vrot.lane.b32.xlu1 %v4442_v56, %s4044_s9 }
 0x137   : > { %935 = vrot.lane.b32.xlu2 %v4491_v19, %s4044_s9  ;;  %937 = vrot.lane.b32.xlu0 %v4493_v20, %s4044_s9 }
 0x138   : > { %v5022_v48 = vpop.permute.xlu1 %785 }
 0x139   : > { %v5018_v41 = vpop.permute.xlu2 %837  ;;  %8737 = vst [vmem:[#allocation114_spill] sm:$0xff] %v5022_v48  ;;  %v5026_v46 = vpop.permute.xlu0 %821 }
 0x13a   : > { %8736 = vst [vmem:[#allocation113_spill] sm:$0xff] %v5018_v41 }
 0x13b   : > { %8738 = vst [vmem:[#allocation115_spill] sm:$0xff] %v5026_v46  ;;  %v8787_v46 = vld [vmem:[#allocation46_spill] sm:$0xff] }
 0x13e   : > { %939 = vrot.lane.b32.xlu1 %v4505_v32, %s4044_s9 }
 0x13f   : > { %941 = vrot.lane.b32.xlu2 %v4507_v33, %s4044_s9  ;;  %943 = vrot.lane.b32.xlu0 %v4563_v49, %s4044_s9 }
 0x140   : > { %v5034_v14 = vpop.permute.xlu1 %823 }
 0x141   : > { %v5030_v11 = vpop.permute.xlu2 %843  ;;  %8740 = vst [vmem:[#allocation117_spill] sm:$0xff] %v5034_v14  ;;  %v5038_v39 = vpop.permute.xlu0 %827 }
 0x142   : > { %8739 = vst [vmem:[#allocation116_spill] sm:$0xff] %v5030_v11 }
 0x143   : > { %8741 = vst [vmem:[#allocation118_spill] sm:$0xff] %v5038_v39 }
 0x146   : > { %945 = vrot.lane.b32.xlu1 %v4543_v36, %s4044_s9 }
 0x147   : > { %947 = vrot.lane.b32.xlu2 %v4578_v45, %s4044_s9  ;;  %949 = vrot.lane.b32.xlu0 %v4580_v23, %s4044_s9 }
 0x148   : > { %v5056_v34 = vpop.permute.xlu1 %829 }
 0x149   : > { %v5042_v48 = vpop.permute.xlu2 %849  ;;  %8745 = vst [vmem:[#allocation122_spill] sm:$0xff] %v5056_v34  ;;  %v5060_v11 = vpop.permute.xlu0 %833 }
 0x14a   : > { %8742 = vst [vmem:[#allocation119_spill] sm:$0xff] %v5042_v48 }
 0x14b   : > { %8746 = vst [vmem:[#allocation123_spill] sm:$0xff] %v5060_v11 }
 0x14e   : > { %951 = vrot.lane.b32.xlu1 %v4592_v42, %s4044_s9 }
 0x14f   : > { %953 = vrot.lane.b32.xlu2 %v4594_v29, %s4044_s9  ;;  %955 = vrot.lane.b32.xlu0 %v4632_v9, %s4044_s9 }
 0x150   : > { %v5068_v3 = vpop.permute.xlu1 %835 }
 0x151   : > { %v5064_v48 = vpop.permute.xlu2 %855  ;;  %8748 = vst [vmem:[#allocation125_spill] sm:$0xff] %v5068_v3  ;;  %v5072_v18 = vpop.permute.xlu0 %839  ;;  %v5114_v3 = vld [vmem:[#allocation2 + $0x180] sm:$0xff] }
 0x152   : > { %8747 = vst [vmem:[#allocation124_spill] sm:$0xff] %v5064_v48 }
 0x153   : > { %8749 = vst [vmem:[#allocation126_spill] sm:$0xff] %v5072_v18 }
 0x156   : > { %957 = vrot.lane.b32.xlu1 %v4620_v60, %s4044_s9 }
 0x157   : > { %959 = vrot.lane.b32.xlu2 %v4639_v8, %s4044_s9  ;;  %961 = vrot.lane.b32.xlu0 %v4641_v47, %s4044_s9 }
 0x158   : > { %v5080_v53 = vpop.permute.xlu1 %841 }
 0x159   : > { %v5076_v16 = vpop.permute.xlu2 %861  ;;  %8751 = vst [vmem:[#allocation128_spill] sm:$0xff] %v5080_v53  ;;  %v5084_v41 = vpop.permute.xlu0 %845 }
 0x15a   : > { %8750 = vst [vmem:[#allocation127_spill] sm:$0xff] %v5076_v16 }
 0x15b   : > { %8752 = vst [vmem:[#allocation129_spill] sm:$0xff] %v5084_v41  ;;  %v5104_v41 = vld [vmem:[#allocation2 + $0x188] sm:$0xff] }
 0x15e   : > { %963 = vrot.lane.b32.xlu1 %v4649_v31, %s4044_s9 }
 0x15f   : > { %965 = vrot.lane.b32.xlu2 %v4651_v17, %s4044_s9  ;;  %967 = vrot.lane.b32.xlu0 %v4689_v54, %s4044_s9 }
 0x160   : > { %v5092_v18 = vpop.permute.xlu1 %847 }
 0x161   : > { %v5088_v7 = vpop.permute.xlu2 %867  ;;  %8754 = vst [vmem:[#allocation131_spill] sm:$0xff] %v5092_v18  ;;  %v5096_v16 = vpop.permute.xlu0 %851 }
 0x162   : > { %8753 = vst [vmem:[#allocation130_spill] sm:$0xff] %v5088_v7 }
 0x163   : > { %8755 = vst [vmem:[#allocation132_spill] sm:$0xff] %v5096_v16 }
 0x166   : > { %969 = vrot.lane.b32.xlu1 %v4677_v21, %s4044_s9 }
 0x167   : > { %971 = vrot.lane.b32.xlu2 %v4696_v22, %s4044_s9  ;;  %973 = vrot.lane.b32.xlu0 %v4698_v5, %s4044_s9 }
 0x168   : > { %v5106_v7 = vpop.permute.xlu1 %853 }
 0x169   : > { %v5100_v53 = vpop.permute.xlu2 %873  ;;  %8757 = vst [vmem:[#allocation134_spill] sm:$0xff] %v5106_v7  ;;  %v5110_v18 = vpop.permute.xlu0 %857  ;;  %v8767_v7 = vld [vmem:[#allocation24_spill] sm:$0xff] }
 0x16a   : > { %8756 = vst [vmem:[#allocation133_spill] sm:$0xff] %v5100_v53 }
 0x16b   : > { %8758 = vst [vmem:[#allocation135_spill] sm:$0xff] %v5110_v18 }
 0x16e   : > { %975 = vrot.lane.b32.xlu1 %v5114_v3, %s4044_s9 }
 0x16f   : > { %977 = vrot.lane.b32.xlu2 %v5104_v41, %s4044_s9  ;;  %1011 = vrot.lane.b32.xlu0 %v4345_v27, %s4045_s10 }
 0x170   : > { %v5120_v53 = vpop.permute.xlu1 %859 }
 0x171   : > { %v5116_v48 = vpop.permute.xlu2 %879  ;;  %8760 = vst [vmem:[#allocation137_spill] sm:$0xff] %v5120_v53  ;;  %v5124_v50 = vpop.permute.xlu0 %863 }
 0x172   : > { %8759 = vst [vmem:[#allocation136_spill] sm:$0xff] %v5116_v48 }
 0x173   : > { %8761 = vst [vmem:[#allocation138_spill] sm:$0xff] %v5124_v50 }
 0x176   : > { %1013 = vrot.lane.b32.xlu1 %v4391_v38, %s4045_s10 }
 0x177   : > { %1015 = vrot.lane.b32.xlu2 %v4308_v15, %s4045_s10  ;;  %1017 = vrot.lane.b32.xlu0 %v4356_v30, %s4045_s10 }
 0x178   : > { %v5132_v48 = vpop.permute.xlu1 %865 }
 0x179   : > { %v5128_v18 = vpop.permute.xlu2 %917  ;;  %8763 = vst [vmem:[#allocation140_spill] sm:$0xff] %v5132_v48  ;;  %v5136_v53 = vpop.permute.xlu0 %869  ;;  %v8769_v48 = vld [vmem:[#allocation32_spill] sm:$0xff] }
 0x17a   : > { %8762 = vst [vmem:[#allocation139_spill] sm:$0xff] %v5128_v18 }
 0x17b   : > { %8764 = vst [vmem:[#allocation141_spill] sm:$0xff] %v5136_v53  ;;  %v8771_v53 = vld [vmem:[#allocation27_spill] sm:$0xff] }
 0x17e   : > { %1019 = vrot.lane.b32.xlu1 %v4431_v52, %s4045_s10 }
 0x17f   : > { %1021 = vrot.lane.b32.xlu2 %v4465_v62, %s4045_s10  ;;  %1023 = vrot.lane.b32.xlu0 %v8767_v7, %s4045_s10 }
 0x180   : > { %v5144_v50 = vpop.permute.xlu1 %871 }
 0x181   : > { %v5140_v27 = vpop.permute.xlu2 %923  ;;  %8766 = vst [vmem:[#allocation143_spill] sm:$0xff] %v5144_v50  ;;  %v5148_v38 = vpop.permute.xlu0 %875  ;;  %v8775_v50 = vld [vmem:[#allocation37_spill] sm:$0xff] }
 0x182   : > { %8765 = vst [vmem:[#allocation142_spill] sm:$0xff] %v5140_v27 }
 0x183   : > { %8768 = vst [vmem:[#allocation24_spill] sm:$0xff] %v5148_v38  ;;  %v8777_v38 = vld [vmem:[#allocation34_spill] sm:$0xff] }
 0x186   : > { %1025 = vrot.lane.b32.xlu1 %v8771_v53, %s4045_s10 }
 0x187   : > { %1027 = vrot.lane.b32.xlu2 %v8769_v48, %s4045_s10  ;;  %1029 = vrot.lane.b32.xlu0 %v8773_v10, %s4045_s10 }
 0x188   : > { %v5156_v16 = vpop.permute.xlu1 %877 }
 0x189   : > { %v5152_v11 = vpop.permute.xlu2 %929  ;;  %8772 = vst [vmem:[#allocation27_spill] sm:$0xff] %v5156_v16  ;;  %v5160_v57 = vpop.permute.xlu0 %881  ;;  %v8781_v16 = vld [vmem:[#allocation43_spill] sm:$0xff] }
 0x18a   : > { %8770 = vst [vmem:[#allocation32_spill] sm:$0xff] %v5152_v11  ;;  %v8779_v11 = vld [vmem:[#allocation35_spill] sm:$0xff] }
 0x18b   : > { %8774 = vst [vmem:[#allocation30_spill] sm:$0xff] %v5160_v57  ;;  %v8783_v57 = vld [vmem:[#allocation39_spill] sm:$0xff] }
 0x18e   : > { %1031 = vrot.lane.b32.xlu1 %v8777_v38, %s4045_s10 }
 0x18f   : > { %1033 = vrot.lane.b32.xlu2 %v8775_v50, %s4045_s10  ;;  %1035 = vrot.lane.b32.xlu0 %v8779_v11, %s4045_s10 }
 0x190   : > { %v5168_v27 = vpop.permute.xlu1 %915 }
 0x191   : > { %v5164_v34 = vpop.permute.xlu2 %935  ;;  %8778 = vst [vmem:[#allocation34_spill] sm:$0xff] %v5168_v27  ;;  %v5172_v39 = vpop.permute.xlu0 %919 }
 0x192   : > { %8776 = vst [vmem:[#allocation37_spill] sm:$0xff] %v5164_v34  ;;  %v8785_v34 = vld [vmem:[#allocation42_spill] sm:$0xff] }
 0x193   : > { %8780 = vst [vmem:[#allocation35_spill] sm:$0xff] %v5172_v39  ;;  %v8789_v39 = vld [vmem:[#allocation44_spill] sm:$0xff] }
 0x196   : > { %1037 = vrot.lane.b32.xlu1 %v8783_v57, %s4045_s10 }
 0x197   : > { %1039 = vrot.lane.b32.xlu2 %v8781_v16, %s4045_s10  ;;  %1041 = vrot.lane.b32.xlu0 %v8785_v34, %s4045_s10 }
 0x198   : > { %v5180_v14 = vpop.permute.xlu1 %921 }
 0x199   : > { %v5176_v43 = vpop.permute.xlu2 %941  ;;  %8784 = vst [vmem:[#allocation39_spill] sm:$0xff] %v5180_v14  ;;  %v5184_v18 = vpop.permute.xlu0 %925  ;;  %v8793_v14 = vld [vmem:[#allocation49_spill] sm:$0xff] }
 0x19a   : > { %8782 = vst [vmem:[#allocation144_spill] sm:$0xff] %v5176_v43  ;;  %v8791_v43 = vld [vmem:[#allocation45_spill] sm:$0xff] }
 0x19b   : > { %8786 = vst [vmem:[#allocation145_spill] sm:$0xff] %v5184_v18  ;;  %v8795_v18 = vld [vmem:[#allocation47_spill] sm:$0xff] }
 0x19e   : > { %1043 = vrot.lane.b32.xlu1 %v8789_v39, %s4045_s10 }
 0x19f   : > { %1045 = vrot.lane.b32.xlu2 %v8787_v46, %s4045_s10  ;;  %1047 = vrot.lane.b32.xlu0 %v8791_v43, %s4045_s10 }
 0x1a0   : > { %v5192_v26 = vpop.permute.xlu1 %927 }
 0x1a1   : > { %v5188_v27 = vpop.permute.xlu2 %947  ;;  %8790 = vst [vmem:[#allocation147_spill] sm:$0xff] %v5192_v26  ;;  %v5196_v16 = vpop.permute.xlu0 %931  ;;  %v8799_v26 = vld [vmem:[#allocation52_spill] sm:$0xff] }
 0x1a2   : > { %8788 = vst [vmem:[#allocation146_spill] sm:$0xff] %v5188_v27  ;;  %v8797_v27 = vld [vmem:[#allocation48_spill] sm:$0xff] }
 0x1a3   : > { %8792 = vst [vmem:[#allocation148_spill] sm:$0xff] %v5196_v16  ;;  %v8801_v16 = vld [vmem:[#allocation50_spill] sm:$0xff] }
 0x1a6   : > { %1049 = vrot.lane.b32.xlu1 %v8795_v18, %s4045_s10 }
 0x1a7   : > { %1051 = vrot.lane.b32.xlu2 %v8793_v14, %s4045_s10  ;;  %1053 = vrot.lane.b32.xlu0 %v8797_v27, %s4045_s10  ;;  %v701_v27 = vrot.slane %v5104_v41, 1 }
 0x1a8   : > { %v5204_v46 = vpop.permute.xlu1 %933 }
 0x1a9   : > { %v5200_v34 = vpop.permute.xlu2 %953  ;;  %8796 = vst [vmem:[#allocation150_spill] sm:$0xff] %v5204_v46  ;;  %v5208_v39 = vpop.permute.xlu0 %937 }
 0x1aa   : > { %8794 = vst [vmem:[#allocation149_spill] sm:$0xff] %v5200_v34  ;;  %v8803_v34 = vld [vmem:[#allocation51_spill] sm:$0xff] }
 0x1ab   : > { %8798 = vst [vmem:[#allocation151_spill] sm:$0xff] %v5208_v39  ;;  %v8806_v39 = vld [vmem:[#allocation53_spill] sm:$0xff] }
 0x1ae   : > { %1055 = vrot.lane.b32.xlu1 %v8801_v16, %s4045_s10 }
 0x1af   : > { %1057 = vrot.lane.b32.xlu2 %v8799_v26, %s4045_s10  ;;  %1059 = vrot.lane.b32.xlu0 %v8803_v34, %s4045_s10 }
 0x1b0   : > { %v5216_v14 = vpop.permute.xlu1 %939 }
 0x1b1   : > { %v5212_v43 = vpop.permute.xlu2 %959  ;;  %8802 = vst [vmem:[#allocation50_spill] sm:$0xff] %v5216_v14  ;;  %v5220_v18 = vpop.permute.xlu0 %943  ;;  %v700_v14 = vrot.slane %v5114_v3, 1 }
 0x1b2   : > { %8800 = vst [vmem:[#allocation152_spill] sm:$0xff] %v5212_v43  ;;  %v8808_v43 = vld [vmem:[#allocation54_spill] sm:$0xff] }
 0x1b3   : > { %8804 = vst [vmem:[#allocation153_spill] sm:$0xff] %v5220_v18 }
 0x1b6   : > { %1061 = vrot.lane.b32.xlu1 %v8806_v39, %s4045_s10 }
 0x1b7   : > { %1063 = vrot.lane.b32.xlu2 %v4711_v37, %s4045_s10  ;;  %1065 = vrot.lane.b32.xlu0 %v8808_v43, %s4045_s10  ;;  %v5243_v37 = vsel %vm535_vm2, %v700_v14, %v701_v27 }
 0x1b8   : > { %v5228_v26 = vpop.permute.xlu1 %945  ;;  %8811 = vst [vmem:[#allocation157_spill] sm:$0xff] %v5243_v37 }
 0x1b9   : > { %v5224_v46 = vpop.permute.xlu2 %965  ;;  %8807 = vst [vmem:[#allocation53_spill] sm:$0xff] %v5228_v26  ;;  %v5234_v34 = vpop.permute.xlu0 %949 }
 0x1ba   : > { %8805 = vst [vmem:[#allocation154_spill] sm:$0xff] %v5224_v46  ;;  %v5240_v46 = vld [vmem:[#allocation2 + $0x190] sm:$0x3] }
 0x1bb   : > { %8809 = vst [vmem:[#allocation155_spill] sm:$0xff] %v5234_v34  ;;  %v703_v26 = vrot.slane %v5240_v46, 1 }
 0x1be   : > { %1067 = vrot.lane.b32.xlu1 %v4718_v59, %s4045_s10 }
 0x1bf   : > { %1069 = vrot.lane.b32.xlu2 %v4729_v1, %s4045_s10  ;;  %1071 = vrot.lane.b32.xlu0 %v5243_v37, %s4045_s10  ;;  %v5257_v1 = vsel %vm535_vm2, %v701_v27, %v703_v26  ;;  %v8822_v27 = vld [vmem:[#allocation64_spill] sm:$0xff] }
 0x1c0   : > { %v5248_v43 = vpop.permute.xlu1 %951 }
 0x1c1   : > { %v5238_v18 = vpop.permute.xlu2 %971  ;;  %8812 = vst [vmem:[#allocation158_spill] sm:$0xff] %v5248_v43  ;;  %v5252_v34 = vpop.permute.xlu0 %955  ;;  %v8817_v43 = vld [vmem:[#allocation58_spill] sm:$0xff] }
 0x1c2   : > { %8810 = vst [vmem:[#allocation156_spill] sm:$0xff] %v5238_v18  ;;  %v8814_v18 = vld [vmem:[#allocation59_spill] sm:$0xff] }
 0x1c3   : > { %8813 = vst [vmem:[#allocation159_spill] sm:$0xff] %v5252_v34 }
 0x1c6   : > { %1073 = vrot.lane.b32.xlu1 %v5257_v1, %s4045_s10 }
 0x1c7   : > { %1107 = vrot.lane.b32.xlu2 %v8814_v18, %s4046_s11  ;;  %1109 = vrot.lane.b32.xlu0 %v8817_v43, %s4046_s11 }
 0x1c8   : > { %v5263_v59 = vpop.permute.xlu1 %957 }
 0x1c9   : > { %v5259_v14 = vpop.permute.xlu2 %977  ;;  %8816 = vst [vmem:[#allocation160_spill] sm:$0xff] %v5263_v59  ;;  %v5267_v37 = vpop.permute.xlu0 %961  ;;  %v8826_v59 = vld [vmem:[#allocation63_spill] sm:$0xff] }
 0x1ca   : > { %8815 = vst [vmem:[#allocation59_spill] sm:$0xff] %v5259_v14  ;;  %v8824_v14 = vld [vmem:[#allocation62_spill] sm:$0xff] }
 0x1cb   : > { %8818 = vst [vmem:[#allocation58_spill] sm:$0xff] %v5267_v37 }
 0x1ce   : > { %1111 = vrot.lane.b32.xlu1 %v4753_v12, %s4046_s11 }
 0x1cf   : > { %1113 = vrot.lane.b32.xlu2 %v4767_v24, %s4046_s11  ;;  %1115 = vrot.lane.b32.xlu0 %v4758_v13, %s4046_s11 }
 0x1d0   : > { %v5275_v26 = vpop.permute.xlu1 %963 }
 0x1d1   : > { %v5271_v34 = vpop.permute.xlu2 %1015  ;;  %8820 = vst [vmem:[#allocation162_spill] sm:$0xff] %v5275_v26  ;;  %v5279_v18 = vpop.permute.xlu0 %967 }
 0x1d2   : > { %8819 = vst [vmem:[#allocation161_spill] sm:$0xff] %v5271_v34 }
 0x1d3   : > { %8821 = vst [vmem:[#allocation163_spill] sm:$0xff] %v5279_v18 }
 0x1d6   : > { %1117 = vrot.lane.b32.xlu1 %v8824_v14, %s4046_s11 }
 0x1d7   : > { %1119 = vrot.lane.b32.xlu2 %v8822_v27, %s4046_s11  ;;  %1121 = vrot.lane.b32.xlu0 %v8826_v59, %s4046_s11 }
 0x1d8   : > { %v5287_v37 = vpop.permute.xlu1 %969 }
 0x1d9   : > { %v5283_v43 = vpop.permute.xlu2 %1021  ;;  %8825 = vst [vmem:[#allocation62_spill] sm:$0xff] %v5287_v37  ;;  %v5291_v34 = vpop.permute.xlu0 %973 }
 0x1da   : > { %8823 = vst [vmem:[#allocation164_spill] sm:$0xff] %v5283_v43  ;;  %v8830_v43 = vld [vmem:[#allocation66_spill] sm:$0xff] }
 0x1db   : > { %8827 = vst [vmem:[#allocation165_spill] sm:$0xff] %v5291_v34  ;;  %v8833_v34 = vld [vmem:[#allocation70_spill] sm:$0xff] }
 0x1de   : > { %1123 = vrot.lane.b32.xlu1 %v4796_v51, %s4046_s11 }
 0x1df   : > { %1125 = vrot.lane.b32.xlu2 %v4812_v6, %s4046_s11  ;;  %1127 = vrot.lane.b32.xlu0 %v8830_v43, %s4046_s11 }
 0x1e0   : > { %v5299_v18 = vpop.permute.xlu1 %975 }
 0x1e1   : > { %v5295_v26 = vpop.permute.xlu2 %1027  ;;  %8829 = vst [vmem:[#allocation167_spill] sm:$0xff] %v5299_v18  ;;  %v5303_v27 = vpop.permute.xlu0 %1011 }
 0x1e2   : > { %8828 = vst [vmem:[#allocation166_spill] sm:$0xff] %v5295_v26  ;;  %v8835_v26 = vld [vmem:[#allocation71_spill] sm:$0xff] }
 0x1e3   : > { %8831 = vst [vmem:[#allocation66_spill] sm:$0xff] %v5303_v27 }
 0x1e6   : > { %1129 = vrot.lane.b32.xlu1 %v8833_v34, %s4046_s11 }
 0x1e7   : > { %1131 = vrot.lane.b32.xlu2 %v4838_v55, %s4046_s11  ;;  %1133 = vrot.lane.b32.xlu0 %v8835_v26, %s4046_s11 }
 0x1e8   : > { %v5311_v6 = vpop.permute.xlu1 %1013 }
 0x1e9   : > { %v5307_v37 = vpop.permute.xlu2 %1033  ;;  %8834 = vst [vmem:[#allocation70_spill] sm:$0xff] %v5311_v6  ;;  %v5315_v59 = vpop.permute.xlu0 %1017 }
 0x1ea   : > { %8832 = vst [vmem:[#allocation168_spill] sm:$0xff] %v5307_v37  ;;  %v8839_v37 = vld [vmem:[#allocation76_spill] sm:$0xff] }
 0x1eb   : > { %8836 = vst [vmem:[#allocation169_spill] sm:$0xff] %v5315_v59  ;;  %v8842_v59 = vld [vmem:[#allocation81_spill] sm:$0xff] }
 0x1ee   : > { %1135 = vrot.lane.b32.xlu1 %v4845_v25, %s4046_s11 }
 0x1ef   : > { %1137 = vrot.lane.b32.xlu2 %v4863_v63, %s4046_s11  ;;  %1139 = vrot.lane.b32.xlu0 %v8839_v37, %s4046_s11 }
 0x1f0   : > { %v5323_v27 = vpop.permute.xlu1 %1019 }
 0x1f1   : > { %v5319_v18 = vpop.permute.xlu2 %1039  ;;  %8838 = vst [vmem:[#allocation171_spill] sm:$0xff] %v5323_v27  ;;  %v5327_v55 = vpop.permute.xlu0 %1023 }
 0x1f2   : > { %8837 = vst [vmem:[#allocation170_spill] sm:$0xff] %v5319_v18  ;;  %v8844_v18 = vld [vmem:[#allocation82_spill] sm:$0xff] }
 0x1f3   : > { %8840 = vst [vmem:[#allocation76_spill] sm:$0xff] %v5327_v55 }
 0x1f6   : > { %1141 = vrot.lane.b32.xlu1 %v8842_v59, %s4046_s11 }
 0x1f7   : > { %1143 = vrot.lane.b32.xlu2 %v4889_v2, %s4046_s11  ;;  %1145 = vrot.lane.b32.xlu0 %v8844_v18, %s4046_s11 }
 0x1f8   : > { %v5335_v63 = vpop.permute.xlu1 %1025 }
 0x1f9   : > { %v5331_v6 = vpop.permute.xlu2 %1045  ;;  %8843 = vst [vmem:[#allocation81_spill] sm:$0xff] %v5335_v63  ;;  %v5339_v26 = vpop.permute.xlu0 %1029 }
 0x1fa   : > { %8841 = vst [vmem:[#allocation172_spill] sm:$0xff] %v5331_v6  ;;  %v8848_v6 = vld [vmem:[#allocation87_spill] sm:$0xff] }
 0x1fb   : > { %8845 = vst [vmem:[#allocation173_spill] sm:$0xff] %v5339_v26  ;;  %v8851_v26 = vld [vmem:[#allocation92_spill] sm:$0xff] }
 0x1fe   : > { %1147 = vrot.lane.b32.xlu1 %v4896_v35, %s4046_s11 }
 0x1ff   : > { %1149 = vrot.lane.b32.xlu2 %v4914_v61, %s4046_s11  ;;  %1151 = vrot.lane.b32.xlu0 %v8848_v6, %s4046_s11 }
 0x200   : > { %v5347_v55 = vpop.permute.xlu1 %1031 }
 0x201   : > { %v5343_v27 = vpop.permute.xlu2 %1051  ;;  %8847 = vst [vmem:[#allocation175_spill] sm:$0xff] %v5347_v55  ;;  %v5351_v2 = vpop.permute.xlu0 %1035  ;;  %v705_v55 = vrot.slane %v5114_v3, 2 }
 0x202   : > { %8846 = vst [vmem:[#allocation174_spill] sm:$0xff] %v5343_v27  ;;  %v8853_v27 = vld [vmem:[#allocation93_spill] sm:$0xff] }
 0x203   : > { %8849 = vst [vmem:[#allocation87_spill] sm:$0xff] %v5351_v2  ;;  %v706_v2 = vrot.slane %v5104_v41, 2 }
 0x206   : > { %1153 = vrot.lane.b32.xlu1 %v8851_v26, %s4046_s11 }
 0x207   : > { %1155 = vrot.lane.b32.xlu2 %v4940_v40, %s4046_s11  ;;  %1157 = vrot.lane.b32.xlu0 %v8853_v27, %s4046_s11 }
 0x208   : > { %v5359_v61 = vpop.permute.xlu1 %1037 }
 0x209   : > { %v5355_v63 = vpop.permute.xlu2 %1057  ;;  %8852 = vst [vmem:[#allocation92_spill] sm:$0xff] %v5359_v61  ;;  %v5363_v18 = vpop.permute.xlu0 %1041 }
 0x20a   : > { %8850 = vst [vmem:[#allocation176_spill] sm:$0xff] %v5355_v63  ;;  %v5374_v63 = vsel %vm616_vm4, %v705_v55, %v706_v2 }
 0x20b   : > { %8854 = vst [vmem:[#allocation177_spill] sm:$0xff] %v5363_v18  ;;  %v708_v18 = vrot.slane %v5240_v46, 2  ;;  %v5398_v46 = vld [vmem:[#allocation2 + $0x38] sm:$0xff] }
 0x20c   : > { %8861 = vst [vmem:[#allocation184_spill] sm:$0xff] %v5398_v46 }
 0x20e   : > { %1159 = vrot.lane.b32.xlu1 %v4947_v58, %s4046_s11 }
 0x20f   : > { %1161 = vrot.lane.b32.xlu2 %v4965_v0, %s4046_s11  ;;  %1163 = vrot.lane.b32.xlu0 %v4952_v44, %s4046_s11 }
 0x210   : > { %v5376_v61 = vpop.permute.xlu1 %1043 }
 0x211   : > { %v5369_v40 = vpop.permute.xlu2 %1063  ;;  %8856 = vst [vmem:[#allocation179_spill] sm:$0xff] %v5376_v61  ;;  %v5381_v0 = vpop.permute.xlu0 %1047 }
 0x212   : > { %8855 = vst [vmem:[#allocation178_spill] sm:$0xff] %v5369_v40  ;;  %v5388_v40 = vsel %vm616_vm4, %v706_v2, %v708_v18  ;;  %v5404_v2 = vld [vmem:[#allocation2 + $0x30] sm:$0xff] }
 0x213   : > { %8857 = vst [vmem:[#allocation180_spill] sm:$0xff] %v5381_v0  ;;  %v5416_v0 = vld [vmem:[#allocation2 + $0x60] sm:$0xff] }
 0x214   : > { %8863 = vst [vmem:[#allocation186_spill] sm:$0xff] %v5404_v2 }
 0x215   : > { %8867 = vst [vmem:[#allocation190_spill] sm:$0xff] %v5416_v0 }
 0x216   : > { %1165 = vrot.lane.b32.xlu1 %v4970_v28, %s4046_s11 }
 0x217   : > { %1167 = vrot.lane.b32.xlu2 %v5374_v63, %s4046_s11  ;;  %1169 = vrot.lane.b32.xlu0 %v5388_v40, %s4046_s11 }
 0x218   : > { %v5392_v55 = vpop.permute.xlu1 %1049 }
 0x219   : > { %v5385_v27 = vpop.permute.xlu2 %1069  ;;  %8859 = vst [vmem:[#allocation182_spill] sm:$0xff] %v5392_v55  ;;  %v5396_v61 = vpop.permute.xlu0 %1053  ;;  %v5410_v55 = vld [vmem:[#allocation2 + $0x48] sm:$0xff] }
 0x21a   : > { %8858 = vst [vmem:[#allocation181_spill] sm:$0xff] %v5385_v27 }
 0x21b   : > { %8860 = vst [vmem:[#allocation183_spill] sm:$0xff] %v5396_v61 }
 0x21c   : > { %8865 = vst [vmem:[#allocation188_spill] sm:$0xff] %v5410_v55 }
 0x21e   : > { %1203 = vrot.lane.b32.xlu1 %v5404_v2, %s4047_s12  ;;  %v5428_v2 = vld [vmem:[#allocation2 + $0x68] sm:$0xff] }
 0x21f   : > { %1205 = vrot.lane.b32.xlu2 %v5398_v46, %s4047_s12  ;;  %1207 = vrot.lane.b32.xlu0 %v5410_v55, %s4047_s12  ;;  %8869 = vst [vmem:[#allocation192_spill] sm:$0xff] %v5428_v2 }
 0x220   : > { %v5408_v18 = vpop.permute.xlu1 %1055 }
 0x221   : > { %v5402_v27 = vpop.permute.xlu2 %1107  ;;  %8864 = vst [vmem:[#allocation187_spill] sm:$0xff] %v5408_v18  ;;  %v5414_v61 = vpop.permute.xlu0 %1059 }
 0x222   : > { %8862 = vst [vmem:[#allocation185_spill] sm:$0xff] %v5402_v27  ;;  %v5422_v27 = vld [vmem:[#allocation2 + $0x50] sm:$0xff] }
 0x223   : > { %8866 = vst [vmem:[#allocation189_spill] sm:$0xff] %v5414_v61 }
 0x226   : > { %1209 = vrot.lane.b32.xlu1 %v5422_v27, %s4047_s12 }
 0x227   : > { %1211 = vrot.lane.b32.xlu2 %v5416_v0, %s4047_s12  ;;  %1213 = vrot.lane.b32.xlu0 %v5428_v2, %s4047_s12 }
 0x228   : > { %v5426_v18 = vpop.permute.xlu1 %1061 }
 0x229   : > { %v5420_v46 = vpop.permute.xlu2 %1113  ;;  %8868 = vst [vmem:[#allocation191_spill] sm:$0xff] %v5426_v18  ;;  %v5432_v61 = vpop.permute.xlu0 %1065 }
 0x22a   : > { %8870 = vst [vmem:[#allocation193_spill] sm:$0xff] %v5432_v61  ;;  %v8893_v61 = vld [vmem:[#allocation47_spill] sm:$0xff] }
 0x22e   : > { %1215 = vrot.lane.b32.xlu1 %v4474_v4, %s4047_s12 }
 0x22f   : > { %1217 = vrot.lane.b32.xlu2 %v4442_v56, %s4047_s12  ;;  %1219 = vrot.lane.b32.xlu0 %v4491_v19, %s4047_s12 }
 0x230   : > { %v5440_v55 = vpop.permute.xlu1 %1067 }
 0x231   : > { %v5436_v0 = vpop.permute.xlu2 %1119  ;;  %8871 = vst [vmem:[#allocation194_spill] sm:$0xff] %v5440_v55  ;;  %v5444_v18 = vpop.permute.xlu0 %1071 }
 0x232   : > { %8872 = vst [vmem:[#allocation195_spill] sm:$0xff] %v5444_v18 }
 0x236   : > { %1221 = vrot.lane.b32.xlu1 %v4493_v20, %s4047_s12 }
 0x237   : > { %1223 = vrot.lane.b32.xlu2 %v4505_v32, %s4047_s12  ;;  %1225 = vrot.lane.b32.xlu0 %v4507_v33, %s4047_s12 }
 0x238   : > { %v5452_v56 = vpop.permute.xlu1 %1073 }
 0x239   : > { %v5448_v2 = vpop.permute.xlu2 %1125  ;;  %8873 = vst [vmem:[#allocation196_spill] sm:$0xff] %v5452_v56  ;;  %v5456_v4 = vpop.permute.xlu0 %1109 }
 0x23e   : > { %1227 = vrot.lane.b32.xlu1 %v4563_v49, %s4047_s12 }
 0x23f   : > { %1229 = vrot.lane.b32.xlu2 %v4543_v36, %s4047_s12  ;;  %1231 = vrot.lane.b32.xlu0 %v4578_v45, %s4047_s12 }
 0x240   : > { %v5464_v32 = vpop.permute.xlu1 %1111 }
 0x241   : > { %v5460_v19 = vpop.permute.xlu2 %1131  ;;  %v5468_v20 = vpop.permute.xlu0 %1115 }
 0x242   : > { %8874 = vst [vmem:[#allocation197_spill] sm:$0xff] %v5460_v19  ;;  %v8905_v19 = vld [vmem:[#allocation54_spill] sm:$0xff] }
 0x246   : > { %1233 = vrot.lane.b32.xlu1 %v4580_v23, %s4047_s12 }
 0x247   : > { %1235 = vrot.lane.b32.xlu2 %v4592_v42, %s4047_s12  ;;  %1237 = vrot.lane.b32.xlu0 %v4594_v29, %s4047_s12 }
 0x248   : > { %v5476_v36 = vpop.permute.xlu1 %1117 }
 0x249   : > { %v5472_v33 = vpop.permute.xlu2 %1137  ;;  %v5480_v49 = vpop.permute.xlu0 %1121 }
 0x24a   : > { %8875 = vst [vmem:[#allocation198_spill] sm:$0xff] %v5472_v33  ;;  %v8895_v33 = vld [vmem:[#allocation49_spill] sm:$0xff] }
 0x24e   : > { %1239 = vrot.lane.b32.xlu1 %v4632_v9, %s4047_s12 }
 0x24f   : > { %1241 = vrot.lane.b32.xlu2 %v4620_v60, %s4047_s12  ;;  %1243 = vrot.lane.b32.xlu0 %v4639_v8, %s4047_s12 }
 0x250   : > { %v5488_v42 = vpop.permute.xlu1 %1123 }
 0x251   : > { %v5484_v45 = vpop.permute.xlu2 %1143  ;;  %v5492_v23 = vpop.permute.xlu0 %1127 }
 0x256   : > { %1245 = vrot.lane.b32.xlu1 %v4641_v47, %s4047_s12 }
 0x257   : > { %1247 = vrot.lane.b32.xlu2 %v4649_v31, %s4047_s12  ;;  %1249 = vrot.lane.b32.xlu0 %v4651_v17, %s4047_s12 }
 0x258   : > { %v5500_v60 = vpop.permute.xlu1 %1129 }
 0x259   : > { %v5496_v29 = vpop.permute.xlu2 %1149  ;;  %v5504_v9 = vpop.permute.xlu0 %1133 }
 0x25a   : > { %8876 = vst [vmem:[#allocation199_spill] sm:$0xff] %v5504_v9  ;;  %v8901_v9 = vld [vmem:[#allocation55_spill] sm:$0xff] }
 0x25e   : > { %1251 = vrot.lane.b32.xlu1 %v4689_v54, %s4047_s12 }
 0x25f   : > { %1253 = vrot.lane.b32.xlu2 %v4677_v21, %s4047_s12  ;;  %1255 = vrot.lane.b32.xlu0 %v4696_v22, %s4047_s12  ;;  %v5524_v21 = vld [vmem:[#allocation2 + $0x1a0] sm:$0xff]  ;;  %v5534_v22 = vld [vmem:[#allocation2 + $0x198] sm:$0xff] }
 0x260   : > { %v5512_v31 = vpop.permute.xlu1 %1135 }
 0x261   : > { %v5508_v8 = vpop.permute.xlu2 %1155  ;;  %8878 = vst [vmem:[#allocation201_spill] sm:$0xff] %v5512_v31  ;;  %v5516_v47 = vpop.permute.xlu0 %1139 }
 0x262   : > { %8877 = vst [vmem:[#allocation200_spill] sm:$0xff] %v5508_v8  ;;  %v8896_v8 = vld [vmem:[#allocation48_spill] sm:$0xff] }
 0x266   : > { %1257 = vrot.lane.b32.xlu1 %v4698_v5, %s4047_s12 }
 0x267   : > { %1259 = vrot.lane.b32.xlu2 %v5114_v3, %s4047_s12  ;;  %1261 = vrot.lane.b32.xlu0 %v5104_v41, %s4047_s12 }
 0x268   : > { %v5526_v56 = vpop.permute.xlu1 %1141 }
 0x269   : > { %v5520_v17 = vpop.permute.xlu2 %1161  ;;  %v5530_v54 = vpop.permute.xlu0 %1145 }
 0x26a   : > { %8879 = vst [vmem:[#allocation202_spill] sm:$0xff] %v5520_v17  ;;  %v8892_v17 = vld [vmem:[#allocation46_spill] sm:$0xff] }
 0x26e   : > { %1263 = vrot.lane.b32.xlu1 %v5534_v22, %s4047_s12 }
 0x26f   : > { %1265 = vrot.lane.b32.xlu2 %v5524_v21, %s4047_s12  ;;  %1299 = vrot.lane.b32.xlu0 %v4308_v15, %s4048_s13 }
 0x270   : > { %v5540_v5 = vpop.permute.xlu1 %1147 }
 0x271   : > { %v5536_v3 = vpop.permute.xlu2 %1167  ;;  %v5544_v18 = vpop.permute.xlu0 %1151 }
 0x272   : > { %8880 = vst [vmem:[#allocation203_spill] sm:$0xff] %v5536_v3 }
 0x273   : > { %8881 = vst [vmem:[#allocation204_spill] sm:$0xff] %v5544_v18  ;;  %v8903_v18 = vld [vmem:[#allocation56_spill] sm:$0xff] }
 0x276   : > { %1301 = vrot.lane.b32.xlu1 %v4356_v30, %s4048_s13 }
 0x277   : > { %1303 = vrot.lane.b32.xlu2 %v4431_v52, %s4048_s13  ;;  %1305 = vrot.lane.b32.xlu0 %v4465_v62, %s4048_s13 }
 0x278   : > { %v5552_v3 = vpop.permute.xlu1 %1153 }
 0x279   : > { %v5548_v41 = vpop.permute.xlu2 %1205  ;;  %8882 = vst [vmem:[#allocation205_spill] sm:$0xff] %v5552_v3  ;;  %v5556_v55 = vpop.permute.xlu0 %1157 }
 0x27a   : > { %8883 = vst [vmem:[#allocation206_spill] sm:$0xff] %v5556_v55  ;;  %v8894_v55 = vld [vmem:[#allocation45_spill] sm:$0xff] }
 0x27e   : > { %1307 = vrot.lane.b32.xlu1 %v8767_v7, %s4048_s13 }
 0x27f   : > { %1309 = vrot.lane.b32.xlu2 %v8771_v53, %s4048_s13  ;;  %1311 = vrot.lane.b32.xlu0 %v8769_v48, %s4048_s13 }
 0x280   : > { %v5564_v52 = vpop.permute.xlu1 %1159 }
 0x281   : > { %v5560_v15 = vpop.permute.xlu2 %1211  ;;  %8884 = vst [vmem:[#allocation207_spill] sm:$0xff] %v5564_v52  ;;  %v5568_v30 = vpop.permute.xlu0 %1163  ;;  %v713_v52 = vrot.slane %v5534_v22, 1 }
 0x282   : > { %8885 = vst [vmem:[#allocation208_spill] sm:$0xff] %v5568_v30  ;;  %v8888_v30 = vld [vmem:[#allocation43_spill] sm:$0xff] }
 0x286   : > { %1313 = vrot.lane.b32.xlu1 %v8773_v10, %s4048_s13 }
 0x287   : > { %1315 = vrot.lane.b32.xlu2 %v8777_v38, %s4048_s13  ;;  %1317 = vrot.lane.b32.xlu0 %v8775_v50, %s4048_s13 }
 0x288   : > { %v5576_v53 = vpop.permute.xlu1 %1165 }
 0x289   : > { %v5572_v62 = vpop.permute.xlu2 %1217  ;;  %8886 = vst [vmem:[#allocation209_spill] sm:$0xff] %v5576_v53  ;;  %v5580_v7 = vpop.permute.xlu0 %1169  ;;  %v8889_v53 = vld [vmem:[#allocation44_spill] sm:$0xff] }
 0x28a   : > { %8887 = vst [vmem:[#allocation210_spill] sm:$0xff] %v5580_v7  ;;  %v8891_v7 = vld [vmem:[#allocation42_spill] sm:$0xff] }
 0x28e   : > { %1319 = vrot.lane.b32.xlu1 %v8779_v11, %s4048_s13 }
 0x28f   : > { %1321 = vrot.lane.b32.xlu2 %v8783_v57, %s4048_s13  ;;  %1323 = vrot.lane.b32.xlu0 %v8888_v30, %s4048_s13  ;;  %v714_v30 = vrot.slane %v5524_v21, 1 }
 0x290   : > { %v5588_v38 = vpop.permute.xlu1 %1203 }
 0x291   : > { %v5584_v48 = vpop.permute.xlu2 %1223  ;;  %v5592_v10 = vpop.permute.xlu0 %1207 }
 0x296   : > { %1325 = vrot.lane.b32.xlu1 %v8891_v7, %s4048_s13 }
 0x297   : > { %1327 = vrot.lane.b32.xlu2 %v8889_v53, %s4048_s13  ;;  %1329 = vrot.lane.b32.xlu0 %v8892_v17, %s4048_s13  ;;  %v715_v17 = vsel %vm535_vm2, %v713_v52, %v714_v30  ;;  %v8899_v52 = vld [vmem:[#allocation51_spill] sm:$0xff] }
 0x298   : > { %v5600_v57 = vpop.permute.xlu1 %1209 }
 0x299   : > { %v5596_v50 = vpop.permute.xlu2 %1229  ;;  %v5604_v11 = vpop.permute.xlu0 %1213 }
 0x29a   : > { %8890 = vst [vmem:[#allocation43_spill] sm:$0xff] %v5596_v50 }
 0x29e   : > { %1331 = vrot.lane.b32.xlu1 %v8894_v55, %s4048_s13  ;;  %v8897_v55 = vld [vmem:[#allocation52_spill] sm:$0xff] }
 0x29f   : > { %1333 = vrot.lane.b32.xlu2 %v8893_v61, %s4048_s13  ;;  %1335 = vrot.lane.b32.xlu0 %v8895_v33, %s4048_s13 }
 0x2a0   : > { %v5614_v7 = vpop.permute.xlu1 %1215 }
 0x2a1   : > { %v5610_v53 = vpop.permute.xlu2 %1235  ;;  %v5619_v31 = vpop.permute.xlu0 %1219 }
 0x2a6   : > { %1337 = vrot.lane.b32.xlu1 %v8896_v8, %s4048_s13 }
 0x2a7   : > { %1339 = vrot.lane.b32.xlu2 %v8801_v16, %s4048_s13  ;;  %1341 = vrot.lane.b32.xlu0 %v8897_v55, %s4048_s13 }
 0x2a8   : > { %v5627_v50 = vpop.permute.xlu1 %1221 }
 0x2a9   : > { %v5623_v61 = vpop.permute.xlu2 %1241  ;;  %v5631_v3 = vpop.permute.xlu0 %1225 }
 0x2ae   : > { %1343 = vrot.lane.b32.xlu1 %v8899_v52, %s4048_s13 }
 0x2af   : > { %1345 = vrot.lane.b32.xlu2 %v8806_v39, %s4048_s13  ;;  %1347 = vrot.lane.b32.xlu0 %v8901_v9, %s4048_s13 }
 0x2b0   : > { %v5639_v16 = vpop.permute.xlu1 %1227 }
 0x2b1   : > { %v5635_v33 = vpop.permute.xlu2 %1247  ;;  %8900 = vst [vmem:[#allocation42_spill] sm:$0xff] %v5639_v16  ;;  %v5643_v8 = vpop.permute.xlu0 %1231 }
 0x2b2   : > { %8898 = vst [vmem:[#allocation44_spill] sm:$0xff] %v5635_v33  ;;  %v8907_v33 = vld [vmem:[#allocation57_spill] sm:$0xff] }
 0x2b3   : > { %8902 = vst [vmem:[#allocation46_spill] sm:$0xff] %v5643_v8  ;;  %v5661_v8 = vld [vmem:[#allocation2 + $0x1a8] sm:$0x3] }
 0x2b6   : > { %1349 = vrot.lane.b32.xlu1 %v8905_v19, %s4048_s13 }
 0x2b7   : > { %1351 = vrot.lane.b32.xlu2 %v8903_v18, %s4048_s13  ;;  %1353 = vrot.lane.b32.xlu0 %v8907_v33, %s4048_s13  ;;  %v8909_v18 = vld [vmem:[#allocation157_spill] sm:$0xff] }
 0x2b8   : > { %v5651_v39 = vpop.permute.xlu1 %1233 }
 0x2b9   : > { %v5647_v55 = vpop.permute.xlu2 %1253  ;;  %8906 = vst [vmem:[#allocation45_spill] sm:$0xff] %v5651_v39  ;;  %v5655_v52 = vpop.permute.xlu0 %1237 }
 0x2ba   : > { %8904 = vst [vmem:[#allocation47_spill] sm:$0xff] %v5647_v55  ;;  %v716_v55 = vrot.slane %v5661_v8, 1 }
 0x2be   : > { %1355 = vrot.lane.b32.xlu1 %v8909_v18, %s4048_s13 }
 0x2bf   : > { %1357 = vrot.lane.b32.xlu2 %v5257_v1, %s4048_s13  ;;  %1359 = vrot.lane.b32.xlu0 %v715_v17, %s4048_s13  ;;  %v717_v1 = vsel %vm535_vm2, %v714_v30, %v716_v55  ;;  %v8913_v30 = vld [vmem:[#allocation64_spill] sm:$0xff] }
 0x2c0   : > { %v5666_v19 = vpop.permute.xlu1 %1239 }
 0x2c1   : > { %v5659_v9 = vpop.permute.xlu2 %1259  ;;  %v5669_v39 = vpop.permute.xlu0 %1243 }
 0x2c2   : > { %8908 = vst [vmem:[#allocation49_spill] sm:$0xff] %v5659_v9 }
 0x2c6   : > { %1361 = vrot.lane.b32.xlu1 %v717_v1, %s4048_s13  ;;  %v8915_v1 = vld [vmem:[#allocation63_spill] sm:$0xff] }
 0x2c7   : > { %1395 = vrot.lane.b32.xlu2 %v4753_v12, %s4049_s14  ;;  %1397 = vrot.lane.b32.xlu0 %v4767_v24, %s4049_s14 }
 0x2c8   : > { %v5677_v9 = vpop.permute.xlu1 %1245 }
 0x2c9   : > { %v5674_v33 = vpop.permute.xlu2 %1265  ;;  %v5681_v18 = vpop.permute.xlu0 %1249 }
 0x2ca   : > { %8910 = vst [vmem:[#allocation48_spill] sm:$0xff] %v5674_v33  ;;  %v8917_v33 = vld [vmem:[#allocation68_spill] sm:$0xff] }
 0x2cb   : > { %8911 = vst [vmem:[#allocation52_spill] sm:$0xff] %v5681_v18  ;;  %v1755_v18 = vld [vmem:[%s8413_s1 + $0x8] sm:$0xff] }
 0x2ce   : > { %1399 = vrot.lane.b32.xlu1 %v4758_v13, %s4049_s14 }
 0x2cf   : > { %1401 = vrot.lane.b32.xlu2 %v8824_v14, %s4049_s14  ;;  %1403 = vrot.lane.b32.xlu0 %v8913_v30, %s4049_s14 }
 0x2d0   : > { %v5689_v12 = vpop.permute.xlu1 %1251 }
 0x2d1   : > { %v5685_v17 = vpop.permute.xlu2 %1303  ;;  %8912 = vst [vmem:[#allocation51_spill] sm:$0xff] %v5689_v12  ;;  %v5693_v55 = vpop.permute.xlu0 %1255  ;;  %v8925_v12 = vld [vmem:[#allocation85_spill] sm:$0xff] }
 0x2d2   : > { %8914 = vst [vmem:[#allocation55_spill] sm:$0xff] %v5693_v55  ;;  %v8920_v55 = vld [vmem:[#allocation74_spill] sm:$0xff] }
 0x2d6   : > { %1405 = vrot.lane.b32.xlu1 %v8915_v1, %s4049_s14 }
 0x2d7   : > { %1407 = vrot.lane.b32.xlu2 %v4796_v51, %s4049_s14  ;;  %1409 = vrot.lane.b32.xlu0 %v8917_v33, %s4049_s14 }
 0x2d8   : > { %v5701_v14 = vpop.permute.xlu1 %1257 }
 0x2d9   : > { %v5697_v24 = vpop.permute.xlu2 %1309  ;;  %8916 = vst [vmem:[#allocation56_spill] sm:$0xff] %v5701_v14  ;;  %v5705_v13 = vpop.permute.xlu0 %1261  ;;  %v8923_v14 = vld [vmem:[#allocation79_spill] sm:$0xff] }
 0x2da   : > { %8918 = vst [vmem:[#allocation54_spill] sm:$0xff] %v5705_v13  ;;  %v8922_v13 = vld [vmem:[#allocation71_spill] sm:$0xff] }
 0x2de   : > { %1411 = vrot.lane.b32.xlu1 %v8830_v43, %s4049_s14 }
 0x2df   : > { %1413 = vrot.lane.b32.xlu2 %v8833_v34, %s4049_s14  ;;  %1415 = vrot.lane.b32.xlu0 %v8920_v55, %s4049_s14 }
 0x2e0   : > { %v5713_v51 = vpop.permute.xlu1 %1263 }
 0x2e1   : > { %v5709_v30 = vpop.permute.xlu2 %1315  ;;  %8919 = vst [vmem:[#allocation57_spill] sm:$0xff] %v5713_v51  ;;  %v5717_v1 = vpop.permute.xlu0 %1299  ;;  %v718_v51 = vrot.slane %v5534_v22, 2  ;;  %v8927_v22 = vld [vmem:[#allocation90_spill] sm:$0xff] }
 0x2e6   : > { %1417 = vrot.lane.b32.xlu1 %v8922_v13, %s4049_s14 }
 0x2e7   : > { %1419 = vrot.lane.b32.xlu2 %v4845_v25, %s4049_s14  ;;  %1421 = vrot.lane.b32.xlu0 %v8923_v14, %s4049_s14  ;;  %v719_v25 = vrot.slane %v5524_v21, 2 }
 0x2e8   : > { %v5725_v34 = vpop.permute.xlu1 %1301 }
 0x2e9   : > { %v5721_v33 = vpop.permute.xlu2 %1321  ;;  %v5729_v43 = vpop.permute.xlu0 %1305 }
 0x2ea   : > { %8921 = vst [vmem:[#allocation157_spill] sm:$0xff] %v5721_v33 }
 0x2ee   : > { %1423 = vrot.lane.b32.xlu1 %v8839_v37, %s4049_s14  ;;  %v8926_v37 = vld [vmem:[#allocation82_spill] sm:$0xff] }
 0x2ef   : > { %1425 = vrot.lane.b32.xlu2 %v8842_v59, %s4049_s14  ;;  %1427 = vrot.lane.b32.xlu0 %v8925_v12, %s4049_s14  ;;  %v720_v59 = vsel %vm616_vm4, %v718_v51, %v719_v25  ;;  %v1758_v12 = vld [vmem:[%s8413_s1 + $0x20] sm:$0xf] }
 0x2f0   : > { %v5739_v13 = vpop.permute.xlu1 %1307  ;;  %3871 = vmatpush.msk.msra.mxu0 %vm1856_vm5, %v1758_v12  ;;  %3941 = vmatpush.msk.msra.mxu2 %vm1856_vm5, %v1758_v12  ;;  %v8928_v12 = vld [vmem:[#allocation96_spill] sm:$0xff] }
 0x2f1   : > { %v5733_v55 = vpop.permute.xlu2 %1327  ;;  %v5743_v14 = vpop.permute.xlu0 %1311 }
 0x2f2   : > { %8924 = vst [vmem:[#allocation64_spill] sm:$0xff] %v5733_v55 }
 0x2f6   : > { %1429 = vrot.lane.b32.xlu1 %v8926_v37, %s4049_s14  ;;  %v1756_v37 = vld [vmem:[%s8413_s1 + $0x10] sm:$0xff] }
 0x2f7   : > { %1431 = vrot.lane.b32.xlu2 %v4896_v35, %s4049_s14  ;;  %1433 = vrot.lane.b32.xlu0 %v8927_v22, %s4049_s14  ;;  %v1757_v35 = vld [vmem:[%s8413_s1 + $0x18] sm:$0xff] }
 0x2f8   : > { %v5752_v21 = vpop.permute.xlu1 %1313  ;;  %1872 = vmatpush.msra.mxu0 %v1757_v35  ;;  %3942 = vmatpush.msra.mxu2 %v1757_v35  ;;  %v1754_v35 = vld [vmem:[%s8413_s1] sm:$0xff] }
 0x2f9   : > { %v5748_v55 = vpop.permute.xlu2 %1333  ;;  %v5764_v51 = vpop.permute.xlu0 %1317 }
 0x2fa   : > { %1873 = vmatpush.msra.mxu0 %v1756_v37  ;;  %3943 = vmatpush.msra.mxu2 %v1756_v37 }
 0x2fc   : > { %1874 = vmatpush.msra.mxu0 %v1755_v18  ;;  %3944 = vmatpush.msra.mxu2 %v1755_v18 }
 0x2fe   : > { %1435 = vrot.lane.b32.xlu1 %v8848_v6, %s4049_s14  ;;  %1875 = vmatpush.msra.mxu0 %v1754_v35  ;;  %v8931_v6 = vld [vmem:[#allocation93_spill] sm:$0xff] }
 0x2ff   : > { %1437 = vrot.lane.b32.xlu2 %v8851_v26, %s4049_s14  ;;  %1439 = vrot.lane.b32.xlu0 %v8928_v12, %s4049_s14  ;;  %v8933_v12 = vld [vmem:[#allocation100_spill] sm:$0xff] }
 0x300   : > { %v5778_v26 = vpop.permute.xlu1 %1319  ;;  %3945 = vmatpush.msra.mxu2 %v1754_v35 }
 0x301   : > { %v5771_v22 = vpop.permute.xlu2 %1339  ;;  %v5785_v16 = vpop.permute.xlu0 %1323 }
 0x302   : > { %8929 = vst [vmem:[#allocation63_spill] sm:$0xff] %v5785_v16 }
 0x306   : > { %1441 = vrot.lane.b32.xlu1 %v8931_v6, %s4049_s14  ;;  %v721_v6 = vrot.slane %v5661_v8, 2  ;;  %v8939_v8 = vld [vmem:[#allocation34_spill] sm:$0xff] }
 0x307   : > { %1443 = vrot.lane.b32.xlu2 %v4947_v58, %s4049_s14  ;;  %1445 = vrot.lane.b32.xlu0 %v8933_v12, %s4049_s14 }
 0x308   : > { %v5793_v18 = vpop.permute.xlu1 %1325 }
 0x309   : > { %v5789_v37 = vpop.permute.xlu2 %1345  ;;  %8932 = vst [vmem:[#allocation74_spill] sm:$0xff] %v5793_v18  ;;  %v5797_v33 = vpop.permute.xlu0 %1329 }
 0x30a   : > { %8930 = vst [vmem:[#allocation68_spill] sm:$0xff] %v5789_v37  ;;  %v8938_v37 = vld [vmem:[#allocation104_spill] sm:$0xff] }
 0x30b   : > { %8934 = vst [vmem:[#allocation71_spill] sm:$0xff] %v5797_v33  ;;  %v8937_v33 = vld [vmem:[#allocation67_spill] sm:$0xff] }
 0x30e   : > { %1447 = vrot.lane.b32.xlu1 %v4952_v44, %s4049_s14 }
 0x30f   : > { %1449 = vrot.lane.b32.xlu2 %v4970_v28, %s4049_s14  ;;  %1451 = vrot.lane.b32.xlu0 %v5374_v63, %s4049_s14  ;;  %v722_v28 = vsel %vm616_vm4, %v719_v25, %v721_v6  ;;  %v8940_v25 = vld [vmem:[#allocation66_spill] sm:$0xff] }
 0x310   : > { %v5805_v58 = vpop.permute.xlu1 %1331 }
 0x311   : > { %v5801_v35 = vpop.permute.xlu2 %1351  ;;  %v5810_v18 = vpop.permute.xlu0 %1335 }
 0x312   : > { %8935 = vst [vmem:[#allocation79_spill] sm:$0xff] %v5801_v35  ;;  %v3978_v35 = vld [vmem:[#allocation2] sm:$0xff] }
 0x313   : > { %v1491_v44 = vsel %vm279_vm0, %v3978_v35, %v8937_v33  ;;  %v8941_v33 = vld [vmem:[#allocation185_spill] sm:$0xff] }
 0x314   : > { %v1524_v63 = vsel %vm1523_vm6, %v1491_v44, %v8938_v37 }
 0x316   : > { %1453 = vrot.lane.b32.xlu1 %v5388_v40, %s4049_s14 }
 0x317   : > { %1455 = vrot.lane.b32.xlu2 %v720_v59, %s4049_s14  ;;  %v1557_v59 = vsel %vm1556_vm7, %v1524_v63, %v8939_v8  ;;  %1457 = vrot.lane.b32.xlu0 %v722_v28, %s4049_s14 }
 0x318   : > { %v5824_v16 = vpop.permute.xlu1 %1337  ;;  %v1590_v6 = vsel %vm1589_vm9, %v1557_v59, %v8940_v25 }
 0x319   : > { %v5813_v12 = vpop.permute.xlu2 %1357  ;;  %v1623_v35 = vsel %vm1622_vm8, %v1590_v6, %v8941_v33  ;;  %v5831_v40 = vpop.permute.xlu0 %1341 }
 0x31a   : > { %8936 = vst [vmem:[#allocation85_spill] sm:$0xff] %v5813_v12  ;;  %v1656_v37 = vsel %vm1655_vm10, %v1623_v35, %v5588_v38  ;;  %v3979_v35 = vld [vmem:[#allocation2 + $0x8] sm:$0xff] }
 0x31b   : > { %v1689_v44 = vsel %vm1688_vm12, %v1656_v37, %v5717_v1  ;;  %v8948_v12 = vld [vmem:[#allocation73_spill] sm:$0xff]  ;;  %v8949_v37 = vld [vmem:[#allocation115_spill] sm:$0xff] }
 0x31c   : > { %v1492_v1 = vsel %vm279_vm0, %v3979_v35, %v8948_v12 }
 0x320   : > { %v5839_v8 = vpop.permute.xlu1 %1343 }
 0x321   : > { %v1396_v63 = vpop.permute.xlu2 %1395  ;;  %8942 = vst [vmem:[#allocation82_spill] sm:$0xff] %v5839_v8  ;;  %v5841_v59 = vpop.permute.xlu0 %1347  ;;  %v8951_v8 = vld [vmem:[#allocation70_spill] sm:$0xff] }
 0x322   : > { %v1722_v28 = vsel %vm1721_vm11, %v1689_v44, %v1396_v63  ;;  %8943 = vst [vmem:[#allocation90_spill] sm:$0xff] %v5841_v59  ;;  %v1525_v44 = vsel %vm1523_vm6, %v1492_v1, %v8949_v37  ;;  %v8950_v63 = vld [vmem:[#allocation139_spill] sm:$0xff] }
 0x323   : > { %3872 = vmatmul.msk.f32.vlgmr.msra.gmra.mxu0 %vm1759_vm13, %v1722_v28  ;;  %v1558_v28 = vsel %vm1556_vm7, %v1525_v44, %v8950_v63  ;;  %v3980_v37 = vld [vmem:[#allocation2 + $0x18] sm:$0xff] }
 0x324   : > { %v1591_v59 = vsel %vm1589_vm9, %v1558_v28, %v8951_v8  ;;  %v8953_v8 = vld [vmem:[#allocation117_spill] sm:$0xff] }
 0x328   : > { %v5843_v25 = vpop.permute.xlu1 %1349 }
 0x329   : > { %8944 = vst [vmem:[#allocation96_spill] sm:$0xff] %v5843_v25  ;;  %v5845_v6 = vpop.permute.xlu0 %1353  ;;  %v1402_v28 = vpop.permute.xlu2 %1401 }
 0x32a   : > { %8945 = vst [vmem:[#allocation93_spill] sm:$0xff] %v5845_v6  ;;  %v1624_v6 = vsel %vm1622_vm8, %v1591_v59, %v5456_v4  ;;  %v8954_v59 = vld [vmem:[#allocation35_spill] sm:$0xff] }
 0x330   : > { %v5847_v33 = vpop.permute.xlu1 %1355 }
 0x331   : > { %8946 = vst [vmem:[#allocation100_spill] sm:$0xff] %v5847_v33  ;;  %v5849_v38 = vpop.permute.xlu0 %1359  ;;  %v8952_v33 = vld [vmem:[#allocation72_spill] sm:$0xff] }
 0x332   : > { %8947 = vst [vmem:[#allocation67_spill] sm:$0xff] %v5849_v38  ;;  %v1657_v38 = vsel %vm1655_vm10, %v1624_v6, %v5548_v41  ;;  %v1493_v44 = vsel %vm279_vm0, %v3980_v37, %v8952_v33  ;;  %v8955_v41 = vld [vmem:[#allocation161_spill] sm:$0xff]  ;;  %v3981_v37 = vld [vmem:[#allocation2 + $0x20] sm:$0xff] }
 0x333   : > { %v1690_v12 = vsel %vm1688_vm12, %v1657_v38, %v5725_v34  ;;  %v1526_v4 = vsel %vm1523_vm6, %v1493_v44, %v8953_v8  ;;  %v8956_v44 = vld [vmem:[#allocation77_spill] sm:$0xff] }
 0x334   : > { %v1559_v63 = vsel %vm1556_vm7, %v1526_v4, %v8954_v59  ;;  %v1494_v8 = vsel %vm279_vm0, %v3981_v37, %v8956_v44  ;;  %v8957_v4 = vld [vmem:[#allocation107_spill] sm:$0xff]  ;;  %v8960_v37 = vld [vmem:[#allocation60_spill] sm:$0xff]  ;;  %v8961_v44 = vld [vmem:[#allocation186_spill] sm:$0xff] }
 0x335   : > { %v1592_v6 = vsel %vm1589_vm9, %v1559_v63, %v8955_v41  ;;  %v1527_v59 = vsel %vm1523_vm6, %v1494_v8, %v8957_v4  ;;  %v8959_v41 = vld [vmem:[#allocation169_spill] sm:$0xff]  ;;  %v1495_v8 = vsel %vm279_vm0, %v8961_v44, %v8960_v37  ;;  %v8962_v4 = vld [vmem:[#allocation118_spill] sm:$0xff]  ;;  %v8966_v37 = vld [vmem:[#allocation184_spill] sm:$0xff] }
 0x336   : > { %v1625_v34 = vsel %vm1622_vm8, %v1592_v6, %v5464_v32  ;;  %v8958_v32 = vld [vmem:[#allocation39_spill] sm:$0xff]  ;;  %v1408_v6 = vpop.permute.xlu2 %1407 }
 0x337   : > { %v1560_v63 = vsel %vm1556_vm7, %v1527_v59, %v8958_v32  ;;  %v8963_v59 = vld [vmem:[#allocation142_spill] sm:$0xff] }
 0x338   : > { %v5861_v25 = vpop.permute.xlu1 %1361 }
 0x339   : > { %v1398_v35 = vpop.permute.xlu0 %1397 }
 0x33a   : > { %v1723_v1 = vsel %vm1721_vm11, %v1690_v12, %v1398_v35  ;;  %v1658_v12 = vsel %vm1655_vm10, %v1625_v34, %v5592_v10  ;;  %v1593_v10 = vsel %vm1589_vm9, %v1560_v63, %v8959_v41 }
 0x33b   : > { %3873 = vmatmul.msk.f32.gmra.mxu0 %vm1759_vm13, %v1723_v1  ;;  %v1691_v33 = vsel %vm1688_vm12, %v1658_v12, %v5685_v17  ;;  %v1626_v17 = vsel %vm1622_vm8, %v1593_v10, %v5420_v46  ;;  %v1528_v46 = vsel %vm1523_vm6, %v1495_v8, %v8962_v4  ;;  %v8968_v4 = vld [vmem:[#allocation145_spill] sm:$0xff] }
 0x33c   : > { %v1561_v32 = vsel %vm1556_vm7, %v1528_v46, %v8963_v59  ;;  %v8969_v46 = vld [vmem:[#allocation164_spill] sm:$0xff] }
 0x340   : > { %v1400_v38 = vpop.permute.xlu1 %1399 }
 0x341   : > { %v1404_v35 = vpop.permute.xlu0 %1403  ;;  %v1724_v1 = vsel %vm1721_vm11, %v1691_v33, %v1400_v38  ;;  %v1659_v38 = vsel %vm1655_vm10, %v1626_v17, %v5600_v57  ;;  %v8964_v57 = vld [vmem:[#allocation171_spill] sm:$0xff]  ;;  %v5920_v17 = vpop.permute.xlu2 %1413 }
 0x342   : > { %v1692_v12 = vsel %vm1688_vm12, %v1659_v38, %v5729_v43  ;;  %v1594_v63 = vsel %vm1589_vm9, %v1561_v32, %v8964_v57 }
 0x343   : > { %3874 = vmatmul.msk.f32.gmra.mxu0 %vm1759_vm13, %v1724_v1  ;;  %v1725_v1 = vsel %vm1721_vm11, %v1692_v12, %v1402_v28  ;;  %v1627_v43 = vsel %vm1622_vm8, %v1594_v63, %v5468_v20  ;;  %v8967_v20 = vld [vmem:[#allocation122_spill] sm:$0xff] }
 0x344   : > { %v1660_v28 = vsel %vm1655_vm10, %v1627_v43, %v5560_v15 }
 0x345   : > { %v1693_v10 = vsel %vm1688_vm12, %v1660_v28, %v5739_v13  ;;  %v8970_v28 = vld [vmem:[#allocation78_spill] sm:$0xff] }
 0x346   : > { %v1726_v12 = vsel %vm1721_vm11, %v1693_v10, %v1404_v35  ;;  %v8971_v10 = vld [vmem:[#allocation188_spill] sm:$0xff] }
 0x348   : > { %v1406_v34 = vpop.permute.xlu1 %1405 }
 0x349   : > { %v5899_v33 = vpop.permute.xlu0 %1409 }
 0x34b   : > { %3875 = vmatmul.msk.f32.gmra.mxu0 %vm1759_vm13, %v1725_v1  ;;  %v8965_v1 = vld [vmem:[#allocation61_spill] sm:$0xff] }
 0x34c   : > { %v1496_v44 = vsel %vm279_vm0, %v8966_v37, %v8965_v1  ;;  %v3982_v1 = vld [vmem:[#allocation2 + $0xc0] sm:$0xff]  ;;  %v8972_v37 = vld [vmem:[#allocation98_spill] sm:$0xff] }
 0x34d   : > { %v1529_v8 = vsel %vm1523_vm6, %v1496_v44, %v8967_v20  ;;  %v5951_v44 = vpop.permute.xlu2 %1419 }
 0x34e   : > { %v1562_v15 = vsel %vm1556_vm7, %v1529_v8, %v8968_v4  ;;  %v8975_v4 = vld [vmem:[#allocation146_spill] sm:$0xff] }
 0x34f   : > { %v1595_v13 = vsel %vm1589_vm9, %v1562_v15, %v8969_v46  ;;  %v8976_v15 = vld [vmem:[#allocation147_spill] sm:$0xff] }
 0x350   : > { %v5914_v41 = vpop.permute.xlu1 %1411  ;;  %v1628_v59 = vsel %vm1622_vm8, %v1595_v13, %v5476_v36  ;;  %v1507_v36 = vsel %vm279_vm0, %v3982_v1, %v8972_v37  ;;  %v8977_v13 = vld [vmem:[#allocation76_spill] sm:$0xff] }
 0x351   : > { %v5922_v38 = vpop.permute.xlu0 %1415  ;;  %v1661_v35 = vsel %vm1655_vm10, %v1628_v59, %v5604_v11  ;;  %v8973_v11 = vld [vmem:[#allocation110_spill] sm:$0xff] }
 0x352   : > { %v1694_v57 = vsel %vm1688_vm12, %v1661_v35, %v5697_v24  ;;  %v8974_v24 = vld [vmem:[#allocation132_spill] sm:$0xff]  ;;  %v8978_v35 = vld [vmem:[#allocation179_spill] sm:$0xff] }
 0x353   : > { %3876 = vmatmul.msk.f32.gmra.mxu0 %vm1759_vm13, %v1726_v12  ;;  %v1727_v43 = vsel %vm1721_vm11, %v1694_v57, %v1406_v34  ;;  %v1497_v12 = vsel %vm279_vm0, %v8971_v10, %v8970_v28  ;;  %v1540_v8 = vsel %vm1523_vm6, %v1507_v36, %v8974_v24  ;;  %v8979_v24 = vld [vmem:[#allocation80_spill] sm:$0xff] }
 0x354   : > { %v1530_v20 = vsel %vm1523_vm6, %v1497_v12, %v8973_v11  ;;  %v1573_v34 = vsel %vm1556_vm7, %v1540_v8, %v8975_v4  ;;  %v8980_v4 = vld [vmem:[#allocation83_spill] sm:$0xff] }
 0x355   : > { %v1563_v46 = vsel %vm1556_vm7, %v1530_v20, %v8976_v15  ;;  %v1606_v57 = vsel %vm1589_vm9, %v1573_v34, %v8978_v35  ;;  %v8983_v34 = vld [vmem:[#allocation32_spill] sm:$0xff] }
 0x356   : > { %v1596_v59 = vsel %vm1589_vm9, %v1563_v46, %v8977_v13  ;;  %v1639_v28 = vsel %vm1622_vm8, %v1606_v57, %v5516_v47  ;;  %v3983_v47 = vld [vmem:[#allocation2 + $0xc8] sm:$0xff]  ;;  %v8984_v46 = vld [vmem:[#allocation155_spill] sm:$0xff]  ;;  %v8985_v35 = vld [vmem:[#allocation172_spill] sm:$0xff] }
 0x357   : > { %v1672_v12 = vsel %vm1655_vm10, %v1639_v28, %v5610_v53  ;;  %v1508_v8 = vsel %vm279_vm0, %v3983_v47, %v8979_v24  ;;  %v1498_v53 = vsel %vm279_vm0, %v5422_v27, %v8980_v4  ;;  %v8986_v57 = vld [vmem:[#allocation81_spill] sm:$0xff] }
 0x358   : > { %v5937_v32 = vpop.permute.xlu1 %1417  ;;  %v1705_v36 = vsel %vm1688_vm12, %v1672_v12, %v5805_v58  ;;  %v8982_v58 = vld [vmem:[#allocation134_spill] sm:$0xff]  ;;  %v8987_v47 = vld [vmem:[#allocation65_spill] sm:$0xff] }
 0x359   : > { %v5943_v63 = vpop.permute.xlu0 %1421 }
 0x35b   : > { %3877 = vmatmul.msk.f32.gmra.mxu0 %vm1759_vm13, %v1727_v43  ;;  %v1629_v43 = vsel %vm1622_vm8, %v1596_v59, %v5436_v0  ;;  %v5997_v59 = vpop.permute.xlu2 %1425 }
 0x35c   : > { %v1662_v1 = vsel %vm1655_vm10, %v1629_v43, %v5614_v7  ;;  %v8981_v7 = vld [vmem:[#allocation123_spill] sm:$0xff] }
 0x35d   : > { %v1695_v37 = vsel %vm1688_vm12, %v1662_v1, %v5743_v14  ;;  %v1531_v14 = vsel %vm1523_vm6, %v1498_v53, %v8981_v7  ;;  %v8992_v53 = vld [vmem:[#allocation148_spill] sm:$0xff] }
 0x35e   : > { %v1728_v0 = vsel %vm1721_vm11, %v1695_v37, %v1408_v6  ;;  %v1541_v6 = vsel %vm1523_vm6, %v1508_v8, %v8982_v58  ;;  %v1564_v15 = vsel %vm1556_vm7, %v1531_v14, %v8983_v34  ;;  %v3984_v8 = vld [vmem:[#allocation2 + $0xd8] sm:$0xff]  ;;  %v8993_v14 = vld [vmem:[#allocation158_spill] sm:$0xff] }
 0x35f   : > { %v1574_v13 = vsel %vm1556_vm7, %v1541_v6, %v8984_v46  ;;  %v1597_v43 = vsel %vm1589_vm9, %v1564_v15, %v8986_v57  ;;  %v8994_v6 = vld [vmem:[#allocation166_spill] sm:$0xff]  ;;  %v8995_v15 = vld [vmem:[#allocation180_spill] sm:$0xff] }
 0x360   : > { %v5970_v10 = vpop.permute.xlu1 %1423  ;;  %v1607_v27 = vsel %vm1589_vm9, %v1574_v13, %v8985_v35  ;;  %v1630_v28 = vsel %vm1622_vm8, %v1597_v43, %v5480_v49 }
 0x361   : > { %v1428_v11 = vpop.permute.xlu0 %1427  ;;  %v1640_v12 = vsel %vm1622_vm8, %v1607_v27, %v5526_v56  ;;  %v1663_v37 = vsel %vm1655_vm10, %v1630_v28, %v5572_v62  ;;  %v8988_v56 = vld [vmem:[#allocation190_spill] sm:$0xff]  ;;  %v8989_v62 = vld [vmem:[#allocation99_spill] sm:$0xff] }
 0x362   : > { %v1738_v20 = vsel %vm1721_vm11, %v1705_v36, %v1428_v11  ;;  %v1673_v36 = vsel %vm1655_vm10, %v1640_v12, %v5655_v52  ;;  %v1499_v24 = vsel %vm279_vm0, %v8988_v56, %v8987_v47  ;;  %v1509_v4 = vsel %vm279_vm0, %v3984_v8, %v8989_v62  ;;  %v8990_v52 = vld [vmem:[#allocation124_spill] sm:$0xff]  ;;  %v9002_v47 = vld [vmem:[#allocation150_spill] sm:$0xff] }
 0x363   : > { %3878 = vmatmul.msk.f32.gmra.mxu0 %vm1759_vm13, %v1728_v0  ;;  %3888 = vmatmul.msk.f32.vlgmr.msra.gmra.mxu2 %vm1759_vm13, %v1738_v20  ;;  %v1706_v11 = vsel %vm1688_vm12, %v1673_v36, %v5748_v55  ;;  %v1696_v0 = vsel %vm1688_vm12, %v1663_v37, %v5752_v21  ;;  %v1542_v55 = vsel %vm1523_vm6, %v1509_v4, %v8990_v52  ;;  %v8991_v21 = vld [vmem:[#allocation125_spill] sm:$0xff]  ;;  %v1432_v27 = vpop.permute.xlu2 %1431  ;;  %v8996_v37 = vld [vmem:[#allocation84_spill] sm:$0xff]  ;;  %v9004_v62 = vld [vmem:[#allocation182_spill] sm:$0xff] }
 0x364   : > { %v1729_v20 = vsel %vm1721_vm11, %v1696_v0, %v5899_v33  ;;  %v1532_v33 = vsel %vm1523_vm6, %v1499_v24, %v8991_v21  ;;  %v1575_v58 = vsel %vm1556_vm7, %v1542_v55, %v8993_v14  ;;  %v9003_v24 = vld [vmem:[#allocation173_spill] sm:$0xff] }
 0x365   : > { %v1565_v7 = vsel %vm1556_vm7, %v1532_v33, %v8992_v53  ;;  %v1608_v46 = vsel %vm1589_vm9, %v1575_v58, %v8995_v15  ;;  %v3987_v15 = vld [vmem:[#allocation2 + $0x78] sm:$0xff] }
 0x366   : > { %v1598_v34 = vsel %vm1589_vm9, %v1565_v7, %v8994_v6  ;;  %v1641_v13 = vsel %vm1622_vm8, %v1608_v46, %v5484_v45  ;;  %v3986_v6 = vld [vmem:[#allocation2 + $0xf0] sm:$0xff] }
 0x367   : > { %v1631_v35 = vsel %vm1622_vm8, %v1598_v34, %v5488_v42  ;;  %v1674_v43 = vsel %vm1655_vm10, %v1641_v13, %v5666_v19  ;;  %v8997_v42 = vld [vmem:[#allocation192_spill] sm:$0xff]  ;;  %v8999_v19 = vld [vmem:[#allocation113_spill] sm:$0xff] }
 0x368   : > { %v1430_v1 = vpop.permute.xlu1 %1429  ;;  %v1664_v57 = vsel %vm1655_vm10, %v1631_v35, %v5619_v31  ;;  %v1707_v12 = vsel %vm1688_vm12, %v1674_v43, %v5810_v18  ;;  %v1500_v36 = vsel %vm279_vm0, %v8997_v42, %v8996_v37  ;;  %v8998_v31 = vld [vmem:[#allocation102_spill] sm:$0xff]  ;;  %v9000_v18 = vld [vmem:[#allocation135_spill] sm:$0xff]  ;;  %v9009_v13 = vld [vmem:[#allocation37_spill] sm:$0xff] }
 0x369   : > { %v1739_v49 = vsel %vm1721_vm11, %v1706_v11, %v1430_v1  ;;  %v1697_v28 = vsel %vm1688_vm12, %v1664_v57, %v5709_v30  ;;  %v1740_v45 = vsel %vm1721_vm11, %v1707_v12, %v1432_v27  ;;  %v3985_v11 = vld [vmem:[#allocation2 + $0xe0] sm:$0xff]  ;;  %v1533_v30 = vsel %vm1523_vm6, %v1500_v36, %v8999_v19  ;;  %v1434_v21 = vpop.permute.xlu0 %1433  ;;  %v9010_v27 = vld [vmem:[#allocation159_spill] sm:$0xff]  ;;  %v9011_v43 = vld [vmem:[#allocation174_spill] sm:$0xff] }
 0x36a   : > { %v1730_v1 = vsel %vm1721_vm11, %v1697_v28, %v5914_v41  ;;  %v1510_v0 = vsel %vm279_vm0, %v3985_v11, %v8998_v31  ;;  %v1566_v56 = vsel %vm1556_vm7, %v1533_v30, %v9002_v47  ;;  %v9012_v12 = vld [vmem:[#allocation175_spill] sm:$0xff]  ;;  %v3988_v30 = vld [vmem:[#allocation2 + $0x80] sm:$0xff] }
 0x36b   : > { %3879 = vmatmul.msk.f32.gmra.mxu0 %vm1759_vm13, %v1729_v20  ;;  %3889 = vmatmul.msk.f32.gmra.mxu2 %vm1759_vm13, %v1739_v49  ;;  %v1543_v41 = vsel %vm1523_vm6, %v1510_v0, %v9000_v18  ;;  %v9001_v20 = vld [vmem:[#allocation149_spill] sm:$0xff]  ;;  %v1599_v8 = vsel %vm1589_vm9, %v1566_v56, %v9003_v24  ;;  %v9018_v56 = vld [vmem:[#allocation160_spill] sm:$0xff] }
 0x36c   : > { %v1576_v49 = vsel %vm1556_vm7, %v1543_v41, %v9001_v20  ;;  %v1632_v52 = vsel %vm1622_vm8, %v1599_v8, %v5448_v2  ;;  %v3989_v41 = vld [vmem:[#allocation2 + $0xf8] sm:$0xff]  ;;  %v9019_v8 = vld [vmem:[#allocation168_spill] sm:$0xff] }
 0x36d   : > { %v1609_v4 = vsel %vm1589_vm9, %v1576_v49, %v9004_v62  ;;  %v1665_v53 = vsel %vm1655_vm10, %v1632_v52, %v5627_v50  ;;  %v9007_v50 = vld [vmem:[#allocation126_spill] sm:$0xff]  ;;  %v9017_v49 = vld [vmem:[#allocation151_spill] sm:$0xff] }
 0x36e   : > { %v1642_v55 = vsel %vm1622_vm8, %v1609_v4, %v5530_v54  ;;  %v1698_v7 = vsel %vm1688_vm12, %v1665_v53, %v5764_v51  ;;  %v9005_v54 = vld [vmem:[#allocation86_spill] sm:$0xff]  ;;  %v9008_v51 = vld [vmem:[#allocation137_spill] sm:$0xff]  ;;  %v9020_v4 = vld [vmem:[#allocation183_spill] sm:$0xff] }
 0x36f   : > { %v1675_v33 = vsel %vm1655_vm10, %v1642_v55, %v5623_v61  ;;  %v1731_v58 = vsel %vm1721_vm11, %v1698_v7, %v5920_v17  ;;  %v1511_v34 = vsel %vm279_vm0, %v3986_v6, %v9005_v54  ;;  %v9006_v61 = vld [vmem:[#allocation88_spill] sm:$0xff]  ;;  %v3990_v54 = vld [vmem:[#allocation2 + $0x90] sm:$0xff] }
 0x370   : > { %v1708_v14 = vsel %vm1688_vm12, %v1675_v33, %v5824_v16  ;;  %v1501_v46 = vsel %vm279_vm0, %v3987_v15, %v9006_v61  ;;  %v1544_v17 = vsel %vm1523_vm6, %v1511_v34, %v9008_v51  ;;  %v1436_v42 = vpop.permute.xlu1 %1435  ;;  %v1438_v33 = vpop.permute.xlu2 %1437  ;;  %v3991_v15 = vld [vmem:[#allocation2 + $0x108] sm:$0xff]  ;;  %v9027_v51 = vld [vmem:[#allocation50_spill] sm:$0xff] }
 0x371   : > { %v1741_v2 = vsel %vm1721_vm11, %v1708_v14, %v1434_v21  ;;  %v1534_v16 = vsel %vm1523_vm6, %v1501_v46, %v9007_v50  ;;  %v1577_v57 = vsel %vm1556_vm7, %v1544_v17, %v9010_v27  ;;  %v9021_v14 = vld [vmem:[#allocation157_spill] sm:$0xff]  ;;  %v9025_v46 = vld [vmem:[#allocation138_spill] sm:$0xff]  ;;  %v9026_v50 = vld [vmem:[#allocation152_spill] sm:$0xff] }
 0x372   : > { %v1567_v35 = vsel %vm1556_vm7, %v1534_v16, %v9009_v13  ;;  %v1610_v28 = vsel %vm1589_vm9, %v1577_v57, %v9011_v43  ;;  %v9028_v13 = vld [vmem:[#allocation87_spill] sm:$0xff]  ;;  %v9030_v43 = vld [vmem:[#allocation197_spill] sm:$0xff] }
 0x373   : > { %3880 = vmatmul.msk.f32.gmra.mxu0 %vm1759_vm13, %v1730_v1  ;;  %3890 = vmatmul.msk.f32.gmra.mxu2 %vm1759_vm13, %v1740_v45  ;;  %v1600_v1 = vsel %vm1589_vm9, %v1567_v35, %v9012_v12  ;;  %v1643_v37 = vsel %vm1622_vm8, %v1610_v28, %v5540_v5  ;;  %v9013_v5 = vld [vmem:[#allocation69_spill] sm:$0xff]  ;;  %v9029_v27 = vld [vmem:[#allocation187_spill] sm:$0xff]  ;;  %v9031_v12 = vld [vmem:[#allocation204_spill] sm:$0xff] }
 0x374   : > { %v1633_v45 = vsel %vm1622_vm8, %v1600_v1, %v5492_v23  ;;  %v1676_v11 = vsel %vm1655_vm10, %v1643_v37, %v5669_v39  ;;  %v1502_v18 = vsel %vm279_vm0, %v3988_v30, %v9013_v5  ;;  %v9015_v39 = vld [vmem:[#allocation127_spill] sm:$0xff]  ;;  %v9032_v37 = vld [vmem:[#allocation44_spill] sm:$0xff] }
 0x375   : > { %v1666_v36 = vsel %vm1655_vm10, %v1633_v45, %v5584_v48  ;;  %v1709_v31 = vsel %vm1688_vm12, %v1676_v11, %v5771_v22  ;;  %v9014_v48 = vld [vmem:[#allocation103_spill] sm:$0xff]  ;;  %v1440_v45 = vpop.permute.xlu0 %1439 }
 0x376   : > { %v1699_v0 = vsel %vm1688_vm12, %v1666_v36, %v5778_v26  ;;  %v1742_v23 = vsel %vm1721_vm11, %v1709_v31, %v1436_v42  ;;  %v1512_v20 = vsel %vm279_vm0, %v3989_v41, %v9014_v48  ;;  %v9016_v26 = vld [vmem:[#allocation128_spill] sm:$0xff]  ;;  %v9033_v36 = vld [vmem:[#allocation42_spill] sm:$0xff]  ;;  %v9034_v31 = vld [vmem:[#allocation63_spill] sm:$0xff] }
 0x377   : > { %v1732_v19 = vsel %vm1721_vm11, %v1699_v0, %v5922_v38  ;;  %v1545_v22 = vsel %vm1523_vm6, %v1512_v20, %v9015_v39  ;;  %v1535_v38 = vsel %vm1523_vm6, %v1502_v18, %v9016_v26  ;;  %v3992_v18 = vld [vmem:[#allocation2 + $0x110] sm:$0xff]  ;;  %v9036_v41 = vld [vmem:[#allocation91_spill] sm:$0xff]  ;;  %v9038_v26 = vld [vmem:[#allocation129_spill] sm:$0xff] }
 0x378   : > { %v1568_v47 = vsel %vm1556_vm7, %v1535_v38, %v9017_v49  ;;  %v1578_v24 = vsel %vm1556_vm7, %v1545_v22, %v9018_v56  ;;  %v1514_v48 = vsel %vm279_vm0, %v3992_v18, %v9036_v41  ;;  %v3993_v20 = vld [vmem:[#allocation2 + $0x98] sm:$0xff]  ;;  %v9037_v39 = vld [vmem:[#allocation94_spill] sm:$0xff]  ;;  %v9039_v49 = vld [vmem:[#allocation140_spill] sm:$0xff] }
 0x379   : > { %v1601_v62 = vsel %vm1589_vm9, %v1568_v47, %v9019_v8  ;;  %v1611_v52 = vsel %vm1589_vm9, %v1578_v24, %v9020_v4  ;;  %v1504_v22 = vsel %vm279_vm0, %v3993_v20, %v9037_v39  ;;  %v9040_v47 = vld [vmem:[#allocation144_spill] sm:$0xff]  ;;  %v9041_v24 = vld [vmem:[#allocation58_spill] sm:$0xff] }
 0x37a   : > { %v1644_v55 = vsel %vm1622_vm8, %v1611_v52, %v5496_v29  ;;  %v1634_v21 = vsel %vm1622_vm8, %v1601_v62, %v5500_v60  ;;  %v9022_v60 = vld [vmem:[#allocation89_spill] sm:$0xff]  ;;  %v1537_v38 = vsel %vm1523_vm6, %v1504_v22, %v9038_v26  ;;  %v9042_v62 = vld [vmem:[#allocation176_spill] sm:$0xff]  ;;  %v6252_v41 = vld [vmem:[#allocation3] sm:$0xff] }
 0x37b   : > { %3881 = vmatmul.msk.f32.gmra.mxu0 %vm1759_vm13, %v1731_v58  ;;  %3891 = vmatmul.msk.f32.gmra.mxu2 %vm1759_vm13, %v1741_v2  ;;  %v1667_v53 = vsel %vm1655_vm10, %v1634_v21, %v5631_v3  ;;  %v1677_v7 = vsel %vm1655_vm10, %v1644_v55, %v5677_v9  ;;  %v1503_v34 = vsel %vm279_vm0, %v3990_v54, %v9022_v60  ;;  %v9023_v3 = vld [vmem:[#allocation105_spill] sm:$0xff]  ;;  %v9024_v9 = vld [vmem:[#allocation116_spill] sm:$0xff]  ;;  %v9044_v21 = vld [vmem:[#allocation199_spill] sm:$0xff] }
 0x37c   : > { %v1700_v58 = vsel %vm1688_vm12, %v1667_v53, %v9021_v14  ;;  %v1710_v2 = vsel %vm1688_vm12, %v1677_v7, %v5831_v40  ;;  %v1513_v61 = vsel %vm279_vm0, %v3991_v15, %v9023_v3  ;;  %v1536_v40 = vsel %vm1523_vm6, %v1503_v34, %v9024_v9  ;;  %v9043_v52 = vld [vmem:[#allocation92_spill] sm:$0xff]  ;;  %v9045_v53 = vld [vmem:[#allocation205_spill] sm:$0xff]  ;;  %v1442_v14 = vpop.permute.xlu1 %1441  ;;  %v9049_v15 = vld [vmem:[#allocation74_spill] sm:$0xff] }
 0x37d   : > { %v1733_v6 = vsel %vm1721_vm11, %v1700_v58, %v5937_v32  ;;  %v1743_v29 = vsel %vm1721_vm11, %v1710_v2, %v1438_v33  ;;  %v1546_v32 = vsel %vm1523_vm6, %v1513_v61, %v9025_v46  ;;  %v1569_v17 = vsel %vm1556_vm7, %v1536_v40, %v9027_v51  ;;  %v6210_v58 = vld [vmem:[%s8414_s2] ss:$0 sm:$0xff]  ;;  %v9046_v2 = vld [vmem:[#allocation43_spill] sm:$0xff]  ;;  %v9060_v20 = vld [vmem:[#allocation46_spill] sm:$0xff] }
 0x37e   : > { %v1579_v16 = vsel %vm1556_vm7, %v1546_v32, %v9026_v50  ;;  %v1602_v35 = vsel %vm1589_vm9, %v1569_v17, %v9028_v13  ;;  %v1570_v56 = vsel %vm1556_vm7, %v1537_v38, %v9040_v47  ;;  %v9048_v60 = vld [vmem:[#allocation68_spill] sm:$0xff]  ;;  %v3994_v32 = vld [vmem:[#allocation2 + $0xa8] sm:$0xff]  ;;  %v9050_v50 = vld [vmem:[#allocation75_spill] sm:$0xff]  ;;  %v2212_v38 = vrot.slane %v6252_v41, 1 }
 0x37f   : > { %v1612_v57 = vsel %vm1589_vm9, %v1579_v16, %v9029_v27  ;;  %v1635_v28 = vsel %vm1622_vm8, %v1602_v35, %v9030_v43  ;;  %v1603_v55 = vsel %vm1589_vm9, %v1570_v56, %v9043_v52  ;;  %v6223_v61 = vld [vmem:[%s8415_s3] ss:$0 sm:$0xff]  ;;  %v1505_v16 = vsel %vm279_vm0, %v3994_v32, %v9050_v50  ;;  %v9051_v17 = vld [vmem:[#allocation106_spill] sm:$0xff]  ;;  %v9061_v22 = vld [vmem:[#allocation51_spill] sm:$0xff] }
 0x380   : > { %v1645_v1 = vsel %vm1622_vm8, %v1612_v57, %v9031_v12  ;;  %v1668_v11 = vsel %vm1655_vm10, %v1635_v28, %v9033_v36  ;;  %v1636_v33 = vsel %vm1622_vm8, %v1603_v55, %v9044_v21  ;;  %v3995_v51 = vld [vmem:[#allocation2 + $0x120] sm:$0xff]  ;;  %v9052_v27 = vld [vmem:[#allocation130_spill] sm:$0xff]  ;;  %v9053_v57 = vld [vmem:[#allocation131_spill] sm:$0xff] }
 0x381   : > { %v1678_v42 = vsel %vm1655_vm10, %v1645_v1, %v9032_v37  ;;  %v1701_v0 = vsel %vm1688_vm12, %v1668_v11, %v9034_v31  ;;  %v1515_v13 = vsel %vm279_vm0, %v3995_v51, %v9051_v17  ;;  %v1538_v43 = vsel %vm1523_vm6, %v1505_v16, %v9053_v57  ;;  %v9054_v28 = vld [vmem:[#allocation153_spill] sm:$0xff]  ;;  %v9055_v1 = vld [vmem:[#allocation162_spill] sm:$0xff]  ;;  %v9064_v55 = vld [vmem:[#allocation95_spill] sm:$0xff]  ;;  %v1446_v51 = vpop.permute.xlu0 %1445 }
 0x382   : > { %v1734_v30 = vsel %vm1721_vm11, %v1701_v0, %v5951_v44  ;;  %v1547_v44 = vsel %vm1523_vm6, %v1514_v48, %v9039_v49  ;;  %v1571_v12 = vsel %vm1556_vm7, %v1538_v43, %v9054_v28  ;;  %v9057_v11 = vld [vmem:[#allocation189_spill] sm:$0xff]  ;;  %v9058_v0 = vld [vmem:[#allocation200_spill] sm:$0xff]  ;;  %v6254_v48 = vld [vmem:[#allocation3 + $0x8] sm:$0xff] }
 0x383   : > { %3882 = vmatmul.msk.f32.gmra.mxu0 %vm1759_vm13, %v1732_v19  ;;  %3892 = vmatmul.msk.f32.gmra.mxu2 %vm1759_vm13, %v1742_v23  ;;  %v9035_v19 = vld [vmem:[#allocation82_spill] sm:$0xff]  ;;  %v1580_v8 = vsel %vm1556_vm7, %v1547_v44, %v9041_v24  ;;  %v2213_v49 = vrot.slane %v6254_v48, 1  ;;  %v9062_v44 = vld [vmem:[#allocation64_spill] sm:$0xff]  ;;  %v9074_v17 = vld [vmem:[#allocation47_spill] sm:$0xff] }
 0x384   : > { %v1711_v23 = vsel %vm1688_vm12, %v1678_v42, %v9035_v19  ;;  %v1613_v4 = vsel %vm1589_vm9, %v1580_v8, %v9042_v62  ;;  %v9056_v42 = vld [vmem:[#allocation170_spill] sm:$0xff]  ;;  %v9077_v43 = vld [vmem:[#allocation96_spill] sm:$0xff] }
 0x385   : > { %v1744_v5 = vsel %vm1721_vm11, %v1711_v23, %v1440_v45  ;;  %v1646_v7 = vsel %vm1622_vm8, %v1613_v4, %v9045_v53  ;;  %v1604_v36 = vsel %vm1589_vm9, %v1571_v12, %v9056_v42  ;;  %v9059_v23 = vld [vmem:[#allocation201_spill] sm:$0xff]  ;;  %v9063_v56 = vld [vmem:[#allocation90_spill] sm:$0xff]  ;;  %v2214_v4 = vsel %vm535_vm2, %v2212_v38, %v2213_v49  ;;  %v9065_v53 = vld [vmem:[#allocation108_spill] sm:$0xff] }
 0x386   : > { %v3996_v52 = vld [vmem:[#allocation2 + $0xb0] sm:$0xff]  ;;  %2398 = vrot.lane.b32.xlu1 %v2214_v4, %s4042_s26 }
 0x387   : > { %v1506_v21 = vsel %vm279_vm0, %v3996_v52, %v9064_v55  ;;  %v9073_v50 = vld [vmem:[#allocation206_spill] sm:$0xff] }
 0x388   : > { %v9087_v52 = vld [vmem:[#allocation62_spill] sm:$0xff] }
 0x38b   : > { %3883 = vmatmul.msk.f32.gmra.mxu0 %vm1759_vm13, %v1733_v6  ;;  %3893 = vmatmul.msk.f32.gmra.mxu2 %vm1759_vm13, %v1743_v29  ;;  %v1669_v6 = vsel %vm1655_vm10, %v1636_v33, %v9046_v2  ;;  %v9047_v29 = vld [vmem:[#allocation52_spill] sm:$0xff]  ;;  %v3997_v33 = vld [vmem:[#allocation2 + $0x128] sm:$0xff] }
 0x38c   : > { %v1679_v54 = vsel %vm1655_vm10, %v1646_v7, %v9047_v29  ;;  %v1702_v3 = vsel %vm1688_vm12, %v1669_v6, %v9049_v15  ;;  %v1516_v7 = vsel %vm279_vm0, %v3997_v33, %v9065_v53  ;;  %v9068_v29 = vld [vmem:[#allocation154_spill] sm:$0xff]  ;;  %v9070_v15 = vld [vmem:[#allocation177_spill] sm:$0xff] }
 0x38d   : > { %v1712_v34 = vsel %vm1688_vm12, %v1679_v54, %v9048_v60  ;;  %v1735_v9 = vsel %vm1721_vm11, %v1702_v3, %v5943_v63  ;;  %v1548_v63 = vsel %vm1523_vm6, %v1515_v13, %v9052_v27  ;;  %v9069_v60 = vld [vmem:[#allocation53_spill] sm:$0xff]  ;;  %v9089_v53 = vld [vmem:[#allocation202_spill] sm:$0xff] }
 0x38e   : > { %v1745_v40 = vsel %vm1721_vm11, %v1712_v34, %v1442_v14  ;;  %v1581_v45 = vsel %vm1556_vm7, %v1548_v63, %v9055_v1  ;;  %v9066_v14 = vld [vmem:[#allocation119_spill] sm:$0xff] }
 0x38f   : > { %v1614_v31 = vsel %vm1589_vm9, %v1581_v45, %v9057_v11  ;;  %v1539_v2 = vsel %vm1523_vm6, %v1506_v21, %v9066_v14  ;;  %v9076_v63 = vld [vmem:[#allocation71_spill] sm:$0xff]  ;;  %v9088_v21 = vld [vmem:[#allocation193_spill] sm:$0xff]  ;;  %v9090_v14 = vld [vmem:[#allocation56_spill] sm:$0xff] }
 0x390   : > { %v1647_v19 = vsel %vm1622_vm8, %v1614_v31, %v9058_v0  ;;  %v1572_v34 = vsel %vm1556_vm7, %v1539_v2, %v9069_v60  ;;  %v3998_v45 = vld [vmem:[#allocation2 + $0x138] sm:$0xff] }
 0x391   : > { %v1680_v26 = vsel %vm1655_vm10, %v1647_v19, %v9061_v22  ;;  %v1605_v3 = vsel %vm1589_vm9, %v1572_v34, %v9070_v15  ;;  %v9080_v31 = vld [vmem:[#allocation163_spill] sm:$0xff]  ;;  %v9081_v19 = vld [vmem:[#allocation178_spill] sm:$0xff] }
 0x392   : > { %v1713_v24 = vsel %vm1688_vm12, %v1680_v26, %v9063_v56  ;;  %v9084_v26 = vld [vmem:[#allocation79_spill] sm:$0xff]  ;;  %v3999_v56 = vld [vmem:[#allocation2 + $0x140] sm:$0xff]  ;;  %v4000_v34 = vld [vmem:[#allocation2 + $0x150] sm:$0xff] }
 0x393   : > { %3884 = vmatmul.msk.f32.gmra.mxu0 %vm1759_vm13, %v1734_v30  ;;  %3894 = vmatmul.msk.f32.gmra.mxu2 %vm1759_vm13, %v1744_v5  ;;  %v1637_v30 = vsel %vm1622_vm8, %v1604_v36, %v9059_v23  ;;  %v1444_v5 = vpop.permute.xlu2 %1443  ;;  %v9079_v36 = vld [vmem:[#allocation143_spill] sm:$0xff] }
 0x394   : > { %v1670_v39 = vsel %vm1655_vm10, %v1637_v30, %v9060_v20  ;;  %v1746_v62 = vsel %vm1721_vm11, %v1713_v24, %v1444_v5  ;;  %v1448_v5 = vpop.permute.xlu1 %1447  ;;  %v9083_v20 = vld [vmem:[#allocation55_spill] sm:$0xff]  ;;  %v9085_v24 = vld [vmem:[#allocation109_spill] sm:$0xff] }
 0x395   : > { %v1703_v47 = vsel %vm1688_vm12, %v1670_v39, %v9062_v44  ;;  %v9092_v15 = vld [vmem:[#allocation111_spill] sm:$0xff] }
 0x396   : > { %v1736_v8 = vsel %vm1721_vm11, %v1703_v47, %v5970_v10  ;;  %v9067_v10 = vld [vmem:[#allocation141_spill] sm:$0xff] }
 0x397   : > { %v1549_v6 = vsel %vm1523_vm6, %v1516_v7, %v9067_v10 }
 0x398   : > { %v1582_v54 = vsel %vm1556_vm7, %v1549_v6, %v9068_v29  ;;  %v9091_v6 = vld [vmem:[#allocation93_spill] sm:$0xff] }
 0x39b   : > { %3885 = vmatmul.msk.f32.gmra.mxu0 %vm1759_vm13, %v1735_v9  ;;  %3895 = vmatmul.msk.f32.gmra.mxu2 %vm1759_vm13, %v1745_v40  ;;  %v9071_v9 = vld [vmem:[#allocation191_spill] sm:$0xff]  ;;  %v1450_v7 = vpop.permute.xlu2 %1449 }
 0x39c   : > { %v1615_v40 = vsel %vm1589_vm9, %v1582_v54, %v9071_v9 }
 0x39d   : > { %v1648_v16 = vsel %vm1622_vm8, %v1615_v40, %v9073_v50  ;;  %v9093_v40 = vld [vmem:[#allocation24_spill] sm:$0xff] }
 0x39e   : > { %v1681_v13 = vsel %vm1655_vm10, %v1648_v16, %v9074_v17 }
 0x39f   : > { %v1714_v28 = vsel %vm1688_vm12, %v1681_v13, %v9077_v43  ;;  %v9096_v13 = vld [vmem:[#allocation208_spill] sm:$0xff] }
 0x3a0   : > { %v1877_v46 = vpop.f32.mrf.mxu0  ;;  %v1747_v1 = vsel %vm1721_vm11, %v1714_v28, %v1446_v51  ;;  %v9095_v51 = vld [vmem:[#allocation194_spill] sm:$0xff]  ;;  %v9098_v28 = vld [vmem:[#allocation100_spill] sm:$0xff] }
 0x3a1   : > { %v1977_v35 = vmul.f32 %v6210_v58, %v1877_v46  ;;  %v9072_v46 = vld [vmem:[#allocation198_spill] sm:$0xff] }
 0x3a2   : > { %v1638_v32 = vsel %vm1622_vm8, %v1605_v3, %v9072_v46  ;;  %v1519_v3 = vsel %vm279_vm0, %v4000_v34, %v9092_v15  ;;  %v9109_v15 = vld [vmem:[#allocation195_spill] sm:$0xff] }
 0x3a3   : > { %v2013_v37 = vadd.f32 %v6223_v61, %v1977_v35  ;;  %3886 = vmatmul.msk.f32.gmra.mxu0 %vm1759_vm13, %v1736_v8  ;;  %3896 = vmatmul.msk.f32.gmra.mxu2 %vm1759_vm13, %v1746_v62  ;;  %v9075_v35 = vld [vmem:[#allocation45_spill] sm:$0xff]  ;;  %v1518_v8 = vsel %vm279_vm0, %v3999_v56, %v9085_v24  ;;  %v1552_v46 = vsel %vm1523_vm6, %v1519_v3, %v9093_v40 }
 0x3a4   : > { %v1671_v27 = vsel %vm1655_vm10, %v1638_v32, %v9075_v35  ;;  %v9086_v62 = vld [vmem:[#allocation133_spill] sm:$0xff]  ;;  %v9094_v32 = vld [vmem:[#allocation156_spill] sm:$0xff] }
 0x3a5   : > { %v2045_v18 = vmax.f32 %v2013_v37, 0.0  ;;  %v1704_v57 = vsel %vm1688_vm12, %v1671_v27, %v9076_v63  ;;  %v9078_v37 = vld [vmem:[#allocation97_spill] sm:$0xff]  ;;  %v1551_v4 = vsel %vm1523_vm6, %v1518_v8, %v9086_v62  ;;  %v1585_v50 = vsel %vm1556_vm7, %v1552_v46, %v9094_v32  ;;  %v1452_v27 = vpop.permute.xlu0 %1451  ;;  %v9104_v8 = vld [vmem:[#allocation54_spill] sm:$0xff]  ;;  %v1456_v46 = vpop.permute.xlu2 %1455 }
 0x3a6   : > { %v1737_v12 = vsel %vm1721_vm11, %v1704_v57, %v5997_v59  ;;  %v1517_v42 = vsel %vm279_vm0, %v3998_v45, %v9078_v37  ;;  %v9082_v59 = vld [vmem:[#allocation207_spill] sm:$0xff]  ;;  %v1584_v55 = vsel %vm1556_vm7, %v1551_v4, %v9087_v52  ;;  %v1618_v17 = vsel %vm1589_vm9, %v1585_v50, %v9095_v51  ;;  %v9097_v63 = vld [vmem:[#allocation49_spill] sm:$0xff] }
 0x3a7   : > { %2078 = vst.msk [vmem:[#allocation3 + $0x19] sm:$0xff] %vm279_vm0, %v2045_v18  ;;  %v1550_v11 = vsel %vm1523_vm6, %v1517_v42, %v9079_v36  ;;  %v6317_v18 = vld [vmem:[#allocation3 + $0x10] sm:$0x3]  ;;  %v1617_v33 = vsel %vm1589_vm9, %v1584_v55, %v9088_v21  ;;  %v1651_v35 = vsel %vm1622_vm8, %v1618_v17, %v9096_v13  ;;  %v4001_v37 = vld [vmem:[#allocation2 + $0x158] sm:$0xff]  ;;  %v9099_v42 = vld [vmem:[#allocation101_spill] sm:$0xff] }
 0x3a8   : > { %v1583_v0 = vsel %vm1556_vm7, %v1550_v11, %v9080_v31  ;;  %v2215_v22 = vrot.slane %v6317_v18, 1  ;;  %v1684_v57 = vsel %vm1655_vm10, %v1651_v35, %v9097_v63  ;;  %v1520_v36 = vsel %vm279_vm0, %v4001_v37, %v9099_v42  ;;  %v9100_v31 = vld [vmem:[#allocation27_spill] sm:$0xff]  ;;  %v9105_v52 = vld [vmem:[#allocation85_spill] sm:$0xff]  ;;  %v9113_v63 = vld [vmem:[#allocation114_spill] sm:$0xff] }
 0x3a9   : > { %v1616_v23 = vsel %vm1589_vm9, %v1583_v0, %v9081_v19  ;;  %v1553_v0 = vsel %vm1523_vm6, %v1520_v36, %v9100_v31  ;;  %v9111_v32 = vld [vmem:[#allocation57_spill] sm:$0xff]  ;;  %v9112_v51 = vld [vmem:[#allocation67_spill] sm:$0xff]  ;;  %v9116_v36 = vld [vmem:[#allocation196_spill] sm:$0xff] }
 0x3aa   : > { %v1649_v30 = vsel %vm1622_vm8, %v1616_v23, %v9082_v59  ;;  %v2216_v47 = vsel %vm535_vm2, %v2213_v49, %v2215_v22  ;;  %v1650_v49 = vsel %vm1622_vm8, %v1617_v33, %v9089_v53  ;;  %v9101_v23 = vld [vmem:[#allocation165_spill] sm:$0xff] }
 0x3ab   : > { %3887 = vmatmul.msk.f32.gmra.mxu0 %vm1759_vm13, %v1737_v12  ;;  %3897 = vmatmul.msk.f32.gmra.mxu2 %vm1759_vm13, %v1747_v1  ;;  %v1682_v39 = vsel %vm1655_vm10, %v1649_v30, %v9083_v20  ;;  %v1683_v2 = vsel %vm1655_vm10, %v1650_v49, %v9090_v14  ;;  %v1717_v12 = vsel %vm1688_vm12, %v1684_v57, %v9098_v28  ;;  %v9106_v14 = vld [vmem:[#allocation112_spill] sm:$0xff]  ;;  %v9114_v28 = vld [vmem:[#allocation30_spill] sm:$0xff] }
 0x3ac   : > { %v1715_v38 = vsel %vm1688_vm12, %v1682_v39, %v9084_v26  ;;  %2400 = vrot.lane.b32.xlu2 %v2216_v47, %s4042_s26  ;;  %v1716_v29 = vsel %vm1688_vm12, %v1683_v2, %v9091_v6  ;;  %v1750_v45 = vsel %vm1721_vm11, %v1717_v12, %v1452_v27  ;;  %v1586_v59 = vsel %vm1556_vm7, %v1553_v0, %v9101_v23  ;;  %v9103_v26 = vld [vmem:[#allocation209_spill] sm:$0xff]  ;;  %v9107_v6 = vld [vmem:[#allocation136_spill] sm:$0xff]  ;;  %v4003_v27 = vld [vmem:[#allocation2 + $0x170] sm:$0xff] }
 0x3ad   : > { %v1748_v44 = vsel %vm1721_vm11, %v1715_v38, %v1448_v5  ;;  %v1749_v60 = vsel %vm1721_vm11, %v1716_v29, %v1450_v7  ;;  %v9102_v5 = vld [vmem:[#allocation181_spill] sm:$0xff]  ;;  %v1522_v57 = vsel %vm279_vm0, %v4003_v27, %v9113_v63  ;;  %v9117_v23 = vld [vmem:[#allocation210_spill] sm:$0xff] }
 0x3ae   : > { %v6369_v19 = vld [vmem:[#allocation3 + $0x18] sm:$0xff]  ;;  %v1619_v20 = vsel %vm1589_vm9, %v1586_v59, %v9102_v5  ;;  %v1555_v12 = vsel %vm1523_vm6, %v1522_v57, %v9114_v28 }
 0x3af   : > { %v1652_v38 = vsel %vm1622_vm8, %v1619_v20, %v9103_v26  ;;  %v2217_v24 = vrot.slane %v6369_v19, 1  ;;  %v4002_v7 = vld [vmem:[#allocation2 + $0x168] sm:$0xff] }
 0x3b0   : > { %v1685_v62 = vsel %vm1655_vm10, %v1652_v38, %v9104_v8  ;;  %v1521_v2 = vsel %vm279_vm0, %v4002_v7, %v9106_v14  ;;  %v9118_v38 = vld [vmem:[#allocation48_spill] sm:$0xff] }
 0x3b1   : > { %v1718_v55 = vsel %vm1688_vm12, %v1685_v62, %v9105_v52  ;;  %v1554_v29 = vsel %vm1523_vm6, %v1521_v2, %v9107_v6 }
 0x3b3   : > { %3898 = vmatmul.msk.f32.gmra.mxu2 %vm1759_vm13, %v1748_v44  ;;  %v1454_v44 = vpop.permute.xlu1 %1453 }
 0x3b4   : > { %v1751_v49 = vsel %vm1721_vm11, %v1718_v55, %v1454_v44 }
 0x3b8   : > { %v1880_v10 = vpop.f32.mrf.mxu0 }
 0x3b9   : > { %v1978_v54 = vmul.f32 %v6210_v58, %v1880_v10 }
 0x3bb   : > { %v2014_v9 = vadd.f32 %v6223_v61, %v1978_v54  ;;  %3899 = vmatmul.msk.f32.gmra.mxu2 %vm1759_vm13, %v1749_v60  ;;  %v9108_v54 = vld [vmem:[#allocation167_spill] sm:$0xff] }
 0x3bc   : > { %v1587_v60 = vsel %vm1556_vm7, %v1554_v29, %v9108_v54 }
 0x3bd   : > { %v2046_v16 = vmax.f32 %v2014_v9, 0.0  ;;  %v1620_v3 = vsel %vm1589_vm9, %v1587_v60, %v9109_v15  ;;  %v9110_v9 = vld [vmem:[#allocation203_spill] sm:$0xff] }
 0x3be   : > { %v1653_v40 = vsel %vm1622_vm8, %v1620_v3, %v9110_v9 }
 0x3bf   : > { %2079 = vst.msk [vmem:[#allocation3 + $0x21] sm:$0xff] %vm279_vm0, %v2046_v16  ;;  %v1686_v50 = vsel %vm1655_vm10, %v1653_v40, %v9111_v32 }
 0x3c0   : > { %v1883_v43 = vpop.f32.mrf.mxu0  ;;  %v1719_v17 = vsel %vm1688_vm12, %v1686_v50, %v9112_v51 }
 0x3c1   : > { %v1979_v1 = vmul.f32 %v6210_v58, %v1883_v43  ;;  %v1752_v35 = vsel %vm1721_vm11, %v1719_v17, %v1456_v46 }
 0x3c3   : > { %v2015_v11 = vadd.f32 %v6223_v61, %v1979_v1  ;;  %3900 = vmatmul.msk.f32.gmra.mxu2 %vm1759_vm13, %v1750_v45  ;;  %v9115_v45 = vld [vmem:[#allocation59_spill] sm:$0xff] }
 0x3c4   : > { %v1588_v37 = vsel %vm1556_vm7, %v1555_v12, %v9115_v45 }
 0x3c5   : > { %v2047_v30 = vmax.f32 %v2015_v11, 0.0  ;;  %v1621_v11 = vsel %vm1589_vm9, %v1588_v37, %v9116_v36 }
 0x3c6   : > { %v6375_v39 = vld [vmem:[#allocation3 + $0x20] sm:$0xff]  ;;  %v6377_v22 = vld [vmem:[#allocation3 + $0x28] sm:$0x3]  ;;  %v1654_v59 = vsel %vm1622_vm8, %v1621_v11, %v9117_v23 }
 0x3c7   : > { %2080 = vst.msk [vmem:[#allocation3 + $0x31] sm:$0xff] %vm279_vm0, %v2047_v30  ;;  %v2218_v47 = vrot.slane %v6375_v39, 1  ;;  %v2220_v56 = vrot.slane %v6377_v22, 1  ;;  %v1458_v30 = vpop.permute.xlu0 %1457  ;;  %v1687_v44 = vsel %vm1655_vm10, %v1654_v59, %v9118_v38 }
 0x3c8   : > { %v1886_v4 = vpop.f32.mrf.mxu0 }
 0x3c9   : > { %v1980_v21 = vmul.f32 %v6210_v58, %v1886_v4  ;;  %v6391_v33 = vsel %vm535_vm2, %v2218_v47, %v2220_v56  ;;  %v6394_v53 = vsel %vm535_vm2, %v2217_v24, %v2218_v47  ;;  %v1720_v56 = vsel %vm1688_vm12, %v1687_v44, %v5861_v25 }
 0x3ca   : > { %2404 = vrot.lane.b32.xlu1 %v6391_v33, %s4042_s26  ;;  %2402 = vrot.lane.b32.xlu0 %v6394_v53, %s4042_s26  ;;  %v1753_v4 = vsel %vm1721_vm11, %v1720_v56, %v1458_v30 }
 0x3cb   : > { %v2016_v10 = vadd.f32 %v6223_v61, %v1980_v21  ;;  %3901 = vmatmul.msk.f32.gmra.mxu2 %vm1759_vm13, %v1751_v49 }
 0x3cd   : > { %v2048_v34 = vmax.f32 %v2016_v10, 0.0 }
 0x3ce   : > { %v6426_v1 = vld [vmem:[#allocation3 + $0x30] sm:$0xff] }
 0x3cf   : > { %2081 = vst.msk [vmem:[#allocation3 + $0x39] sm:$0xff] %vm279_vm0, %v2048_v34  ;;  %v2222_v26 = vrot.slane %v6426_v1, 1 }
 0x3d0   : > { %v1889_v16 = vpop.f32.mrf.mxu0 }
 0x3d1   : > { %v1981_v13 = vmul.f32 %v6210_v58, %v1889_v16 }
 0x3d3   : > { %v2017_v43 = vadd.f32 %v6223_v61, %v1981_v13  ;;  %3902 = vmatmul.msk.f32.gmra.mxu2 %vm1759_vm13, %v1752_v35 }
 0x3d5   : > { %v2049_v42 = vmax.f32 %v2017_v43, 0.0 }
 0x3d6   : > { %v6432_v31 = vld [vmem:[#allocation3 + $0x38] sm:$0xff]  ;;  %v6434_v0 = vld [vmem:[#allocation3 + $0x40] sm:$0x3] }
 0x3d7   : > { %2082 = vst.msk [vmem:[#allocation3 + $0x49] sm:$0xff] %vm279_vm0, %v2049_v42  ;;  %v2223_v5 = vrot.slane %v6432_v31, 1  ;;  %v2225_v20 = vrot.slane %v6434_v0, 1 }
 0x3d8   : > { %v1892_v47 = vpop.f32.mrf.mxu0 }
 0x3d9   : > { %v1982_v24 = vmul.f32 %v6210_v58, %v1892_v47  ;;  %v6448_v8 = vsel %vm535_vm2, %v2223_v5, %v2225_v20  ;;  %v6451_v62 = vsel %vm535_vm2, %v2222_v26, %v2223_v5 }
 0x3da   : > { %2408 = vrot.lane.b32.xlu0 %v6448_v8, %s4042_s26  ;;  %2406 = vrot.lane.b32.xlu2 %v6451_v62, %s4042_s26 }
 0x3db   : > { %v2018_v52 = vadd.f32 %v6223_v61, %v1982_v24  ;;  %3903 = vmatmul.msk.f32.gmra.mxu2 %vm1759_vm13, %v1753_v4 }
 0x3dd   : > { %v2050_v25 = vmax.f32 %v2018_v52, 0.0 }
 0x3de   : > { %v6463_v7 = vld [vmem:[#allocation3 + $0x48] sm:$0xff] }
 0x3df   : > { %2083 = vst.msk [vmem:[#allocation3 + $0x51] sm:$0xff] %vm279_vm0, %v2050_v25  ;;  %v2227_v34 = vrot.slane %v6463_v7, 1 }
 0x3e0   : > { %v1895_v55 = vpop.f32.mrf.mxu0 }
 0x3e1   : > { %v1983_v21 = vmul.f32 %v6210_v58, %v1895_v55 }
 0x3e3   : > { %v2019_v49 = vadd.f32 %v6223_v61, %v1983_v21 }
 0x3e5   : > { %v2051_v14 = vmax.f32 %v2019_v49, 0.0 }
 0x3e6   : > { %v1925_v2 = vpop.f32.mrf.mxu2  ;;  %v6465_v10 = vld [vmem:[#allocation3 + $0x50] sm:$0xff]  ;;  %v6467_v6 = vld [vmem:[#allocation3 + $0x58] sm:$0x3] }
 0x3e7   : > { %2084 = vst.msk [vmem:[#allocation3 + $0x61] sm:$0xff] %vm279_vm0, %v2051_v14  ;;  %v1993_v29 = vmul.f32 %v6210_v58, %v1925_v2  ;;  %v2228_v54 = vrot.slane %v6465_v10, 1  ;;  %v2230_v60 = vrot.slane %v6467_v6, 1 }
 0x3e8   : > { %v1898_v15 = vpop.f32.mrf.mxu0 }
 0x3e9   : > { %v2029_v3 = vadd.f32 %v6223_v61, %v1993_v29  ;;  %v1984_v9 = vmul.f32 %v6210_v58, %v1898_v15  ;;  %v6477_v40 = vsel %vm535_vm2, %v2228_v54, %v2230_v60  ;;  %v6480_v46 = vsel %vm535_vm2, %v2227_v34, %v2228_v54 }
 0x3ea   : > { %9119 = vst [vmem:[#allocation104_spill] sm:$0xff] %v6477_v40  ;;  %2412 = vrot.lane.b32.xlu2 %v6477_v40, %s4042_s26  ;;  %2410 = vrot.lane.b32.xlu1 %v6480_v46, %s4042_s26 }
 0x3eb   : > { %9120 = vst [vmem:[#allocation34_spill] sm:$0xff] %v6480_v46  ;;  %v2061_v32 = vmax.f32 %v2029_v3, 0.0  ;;  %v2020_v50 = vadd.f32 %v6223_v61, %v1984_v9  ;;  %v2295_v46 = vrot.slane %v6317_v18, 2 }
 0x3ed   : > { %2094 = vst.msk [vmem:[#allocation3 + $0xd9] sm:$0xff] %vm279_vm0, %v2061_v32  ;;  %v2052_v16 = vmax.f32 %v2020_v50, 0.0 }
 0x3ee   : > { %v1928_v51 = vpop.f32.mrf.mxu2  ;;  %v6493_v43 = vld [vmem:[#allocation3 + $0x60] sm:$0xff] }
 0x3ef   : > { %2085 = vst.msk [vmem:[#allocation3 + $0x69] sm:$0xff] %vm279_vm0, %v2052_v16  ;;  %v1994_v17 = vmul.f32 %v6210_v58, %v1928_v51  ;;  %v2232_v23 = vrot.slane %v6493_v43, 1 }
 0x3f0   : > { %v1901_v13 = vpop.f32.mrf.mxu0 }
 0x3f1   : > { %v2030_v35 = vadd.f32 %v6223_v61, %v1994_v17  ;;  %v1985_v27 = vmul.f32 %v6210_v58, %v1901_v13 }
 0x3f3   : > { %v2062_v63 = vmax.f32 %v2030_v35, 0.0  ;;  %v2021_v57 = vadd.f32 %v6223_v61, %v1985_v27 }
 0x3f5   : > { %2095 = vst.msk [vmem:[#allocation3 + $0xe1] sm:$0xff] %vm279_vm0, %v2062_v63  ;;  %v2053_v28 = vmax.f32 %v2021_v57, 0.0 }
 0x3f6   : > { %v1931_v12 = vpop.f32.mrf.mxu2  ;;  %v6496_v45 = vld [vmem:[#allocation3 + $0x68] sm:$0xff]  ;;  %v6498_v37 = vld [vmem:[#allocation3 + $0x70] sm:$0x3] }
 0x3f7   : > { %2086 = vst.msk [vmem:[#allocation3 + $0x79] sm:$0xff] %vm279_vm0, %v2053_v28  ;;  %v1995_v42 = vmul.f32 %v6210_v58, %v1931_v12  ;;  %v2233_v36 = vrot.slane %v6496_v45, 1  ;;  %v2235_v11 = vrot.slane %v6498_v37, 1 }
 0x3f8   : > { %v1904_v59 = vpop.f32.mrf.mxu0 }
 0x3f9   : > { %v2031_v30 = vadd.f32 %v6223_v61, %v1995_v42  ;;  %v1986_v5 = vmul.f32 %v6210_v58, %v1904_v59  ;;  %v6508_v20 = vsel %vm535_vm2, %v2233_v36, %v2235_v11  ;;  %v6511_v26 = vsel %vm535_vm2, %v2232_v23, %v2233_v36 }
 0x3fa   : > { %9121 = vst [vmem:[#allocation66_spill] sm:$0xff] %v6508_v20  ;;  %2416 = vrot.lane.b32.xlu1 %v6508_v20, %s4042_s26  ;;  %2414 = vrot.lane.b32.xlu0 %v6511_v26, %s4042_s26 }
 0x3fb   : > { %9122 = vst [vmem:[#allocation185_spill] sm:$0xff] %v6511_v26  ;;  %v2063_v38 = vmax.f32 %v2031_v30, 0.0  ;;  %v2022_v44 = vadd.f32 %v6223_v61, %v1986_v5  ;;  %v2293_v26 = vrot.slane %v6254_v48, 2 }
 0x3fd   : > { %2096 = vst.msk [vmem:[#allocation3 + $0xf1] sm:$0xff] %vm279_vm0, %v2063_v38  ;;  %v2054_v47 = vmax.f32 %v2022_v44, 0.0 }
 0x3fe   : > { %v1934_v56 = vpop.f32.mrf.mxu2  ;;  %v6524_v49 = vld [vmem:[#allocation3 + $0x78] sm:$0xff] }
 0x3ff   : > { %2087 = vst.msk [vmem:[#allocation3 + $0x81] sm:$0xff] %vm279_vm0, %v2054_v47  ;;  %v1996_v24 = vmul.f32 %v6210_v58, %v1934_v56  ;;  %v2237_v3 = vrot.slane %v6524_v49, 1 }
 0x400   : > { %v1907_v4 = vpop.f32.mrf.mxu0 }
 0x401   : > { %v2032_v52 = vadd.f32 %v6223_v61, %v1996_v24  ;;  %v1987_v25 = vmul.f32 %v6210_v58, %v1907_v4 }
 0x403   : > { %v2064_v55 = vmax.f32 %v2032_v52, 0.0  ;;  %v2023_v21 = vadd.f32 %v6223_v61, %v1987_v25 }
 0x405   : > { %2097 = vst.msk [vmem:[#allocation3 + $0xf9] sm:$0xff] %vm279_vm0, %v2064_v55  ;;  %v2055_v14 = vmax.f32 %v2023_v21, 0.0 }
 0x406   : > { %v1937_v2 = vpop.f32.mrf.mxu2  ;;  %v6527_v29 = vld [vmem:[#allocation3 + $0x80] sm:$0xff]  ;;  %v6529_v54 = vld [vmem:[#allocation3 + $0x88] sm:$0x3] }
 0x407   : > { %2088 = vst.msk [vmem:[#allocation3 + $0x91] sm:$0xff] %vm279_vm0, %v2055_v14  ;;  %v1997_v60 = vmul.f32 %v6210_v58, %v1937_v2  ;;  %v2238_v34 = vrot.slane %v6527_v29, 1  ;;  %v2240_v15 = vrot.slane %v6529_v54, 1 }
 0x408   : > { %v1910_v9 = vpop.f32.mrf.mxu0 }
 0x409   : > { %v2033_v32 = vadd.f32 %v6223_v61, %v1997_v60  ;;  %v1988_v50 = vmul.f32 %v6210_v58, %v1910_v9  ;;  %v6539_v16 = vsel %vm535_vm2, %v2238_v34, %v2240_v15  ;;  %v6542_v51 = vsel %vm535_vm2, %v2237_v3, %v2238_v34 }
 0x40a   : > { %9123 = vst [vmem:[#allocation73_spill] sm:$0xff] %v6539_v16  ;;  %2420 = vrot.lane.b32.xlu0 %v6539_v16, %s4042_s26  ;;  %2418 = vrot.lane.b32.xlu2 %v6542_v51, %s4042_s26 }
 0x40b   : > { %9124 = vst [vmem:[#allocation115_spill] sm:$0xff] %v6542_v51  ;;  %v2065_v17 = vmax.f32 %v2033_v32, 0.0  ;;  %v2024_v13 = vadd.f32 %v6223_v61, %v1988_v50 }
 0x40d   : > { %2098 = vst.msk [vmem:[#allocation3 + $0x109] sm:$0xff] %vm279_vm0, %v2065_v17  ;;  %v2056_v35 = vmax.f32 %v2024_v13, 0.0 }
 0x40e   : > { %v1940_v27 = vpop.f32.mrf.mxu2  ;;  %v6555_v11 = vld [vmem:[#allocation3 + $0x90] sm:$0xff] }
 0x40f   : > { %2089 = vst.msk [vmem:[#allocation3 + $0x99] sm:$0xff] %vm279_vm0, %v2056_v35  ;;  %v1998_v63 = vmul.f32 %v6210_v58, %v1940_v27  ;;  %v2242_v56 = vrot.slane %v6555_v11, 1 }
 0x410   : > { %v1913_v57 = vpop.f32.mrf.mxu0 }
 0x411   : > { %v2034_v28 = vadd.f32 %v6223_v61, %v1998_v63  ;;  %v1989_v12 = vmul.f32 %v6210_v58, %v1913_v57 }
 0x413   : > { %v2066_v42 = vmax.f32 %v2034_v28, 0.0  ;;  %v2025_v36 = vadd.f32 %v6223_v61, %v1989_v12 }
 0x415   : > { %2099 = vst.msk [vmem:[#allocation3 + $0x111] sm:$0xff] %vm279_vm0, %v2066_v42  ;;  %v2057_v23 = vmax.f32 %v2025_v36, 0.0 }
 0x416   : > { %v1943_v59 = vpop.f32.mrf.mxu2  ;;  %v6558_v30 = vld [vmem:[#allocation3 + $0x98] sm:$0xff]  ;;  %v6560_v5 = vld [vmem:[#allocation3 + $0xa0] sm:$0x3] }
 0x417   : > { %2090 = vst.msk [vmem:[#allocation3 + $0xa9] sm:$0xff] %vm279_vm0, %v2057_v23  ;;  %v1999_v38 = vmul.f32 %v6210_v58, %v1943_v59  ;;  %v2243_v44 = vrot.slane %v6558_v30, 1  ;;  %v2245_v47 = vrot.slane %v6560_v5, 1 }
 0x418   : > { %v1916_v24 = vpop.f32.mrf.mxu0 }
 0x419   : > { %v2035_v4 = vadd.f32 %v6223_v61, %v1999_v38  ;;  %v1990_v52 = vmul.f32 %v6210_v58, %v1916_v24  ;;  %v6570_v25 = vsel %vm535_vm2, %v2243_v44, %v2245_v47  ;;  %v6573_v55 = vsel %vm535_vm2, %v2242_v56, %v2243_v44  ;;  %v6610_v47 = vld [vmem:[#allocation3 + $0xe0] sm:$0xff] }
 0x41a   : > { %9125 = vst [vmem:[#allocation139_spill] sm:$0xff] %v6570_v25  ;;  %2424 = vrot.lane.b32.xlu2 %v6570_v25, %s4042_s26  ;;  %2422 = vrot.lane.b32.xlu1 %v6573_v55, %s4042_s26 }
 0x41b   : > { %9126 = vst [vmem:[#allocation70_spill] sm:$0xff] %v6573_v55  ;;  %v2067_v21 = vmax.f32 %v2035_v4, 0.0  ;;  %v2026_v14 = vadd.f32 %v6223_v61, %v1990_v52  ;;  %v6613_v4 = vld [vmem:[#allocation3 + $0xd8] sm:$0xff] }
 0x41d   : > { %2100 = vst.msk [vmem:[#allocation3 + $0x121] sm:$0xff] %vm279_vm0, %v2067_v21  ;;  %v2058_v2 = vmax.f32 %v2026_v14, 0.0  ;;  %v2258_v21 = vrot.slane %v6610_v47, 1 }
 0x41e   : > { %v1946_v60 = vpop.f32.mrf.mxu2  ;;  %v6586_v17 = vld [vmem:[#allocation3 + $0xa8] sm:$0xff] }
 0x41f   : > { %2091 = vst.msk [vmem:[#allocation3 + $0xb1] sm:$0xff] %vm279_vm0, %v2058_v2  ;;  %v2000_v34 = vmul.f32 %v6210_v58, %v1946_v60  ;;  %v2247_v42 = vrot.slane %v6586_v17, 1  ;;  %v2257_v60 = vrot.slane %v6613_v4, 1 }
 0x420   : > { %v1919_v15 = vpop.f32.mrf.mxu0 }
 0x421   : > { %v2036_v3 = vadd.f32 %v6223_v61, %v2000_v34  ;;  %v1991_v9 = vmul.f32 %v6210_v58, %v1919_v15  ;;  %v6622_v15 = vsel %vm535_vm2, %v2257_v60, %v2258_v21 }
 0x422   : > { %9129 = vst [vmem:[#allocation35_spill] sm:$0xff] %v6622_v15 }
 0x423   : > { %v2068_v32 = vmax.f32 %v2036_v3, 0.0  ;;  %v2027_v50 = vadd.f32 %v6223_v61, %v1991_v9  ;;  %v6626_v9 = vld [vmem:[#allocation3 + $0xf8] sm:$0xff] }
 0x425   : > { %2101 = vst.msk [vmem:[#allocation3 + $0x129] sm:$0xff] %vm279_vm0, %v2068_v32  ;;  %v2059_v13 = vmax.f32 %v2027_v50, 0.0  ;;  %v6628_v32 = vld [vmem:[#allocation3 + $0x100] sm:$0x3] }
 0x426   : > { %v1949_v35 = vpop.f32.mrf.mxu2  ;;  %v6589_v27 = vld [vmem:[#allocation3 + $0xb0] sm:$0xff]  ;;  %v6591_v63 = vld [vmem:[#allocation3 + $0xb8] sm:$0x3] }
 0x427   : > { %2092 = vst.msk [vmem:[#allocation3 + $0xc1] sm:$0xff] %vm279_vm0, %v2059_v13  ;;  %v2001_v57 = vmul.f32 %v6210_v58, %v1949_v35  ;;  %v2248_v28 = vrot.slane %v6589_v27, 1  ;;  %v2250_v12 = vrot.slane %v6591_v63, 1 }
 0x428   : > { %v1922_v36 = vpop.f32.mrf.mxu0 }
 0x429   : > { %v2037_v23 = vadd.f32 %v6223_v61, %v2001_v57  ;;  %v1992_v59 = vmul.f32 %v6210_v58, %v1922_v36  ;;  %v6601_v38 = vsel %vm535_vm2, %v2248_v28, %v2250_v12  ;;  %v6604_v44 = vsel %vm535_vm2, %v2247_v42, %v2248_v28 }
 0x42a   : > { %9127 = vst [vmem:[#allocation72_spill] sm:$0xff] %v6601_v38  ;;  %2428 = vrot.lane.b32.xlu1 %v6601_v38, %s4042_s26  ;;  %2426 = vrot.lane.b32.xlu0 %v6604_v44, %s4042_s26  ;;  %v2263_v28 = vrot.slane %v6626_v9, 1  ;;  %v2265_v12 = vrot.slane %v6628_v32, 1 }
 0x42b   : > { %9128 = vst [vmem:[#allocation117_spill] sm:$0xff] %v6604_v44  ;;  %v2069_v56 = vmax.f32 %v2037_v23, 0.0  ;;  %v2028_v24 = vadd.f32 %v6223_v61, %v1992_v59 }
 0x42d   : > { %2102 = vst.msk [vmem:[#allocation3 + $0x139] sm:$0xff] %vm279_vm0, %v2069_v56  ;;  %v2060_v52 = vmax.f32 %v2028_v24, 0.0 }
 0x42e   : > { %v1952_v14 = vpop.f32.mrf.mxu2  ;;  %v6630_v50 = vld [vmem:[#allocation3 + $0xc0] sm:$0xff] }
 0x42f   : > { %2093 = vst.msk [vmem:[#allocation3 + $0xc9] sm:$0xff] %vm279_vm0, %v2060_v52  ;;  %v2002_v2 = vmul.f32 %v6210_v58, %v1952_v14  ;;  %v2252_v59 = vrot.slane %v6630_v50, 1  ;;  %v6655_v14 = vsel %vm535_vm2, %v2263_v28, %v2265_v12 }
 0x430   : > { %9132 = vst [vmem:[#allocation107_spill] sm:$0xff] %v6655_v14 }
 0x431   : > { %v2038_v34 = vadd.f32 %v6223_v61, %v2002_v2  ;;  %v6657_v2 = vld [vmem:[#allocation3 + $0xe8] sm:$0x3] }
 0x432   : > { %2434 = vrot.lane.b32.xlu1 %v6622_v15, %s4042_s26 }
 0x433   : > { %v2070_v3 = vmax.f32 %v2038_v34, 0.0  ;;  %v6661_v34 = vld [vmem:[#allocation3 + $0x128] sm:$0xff] }
 0x434   : > { %v2273_v12 = vrot.slane %v6661_v34, 1 }
 0x435   : > { %2103 = vst.msk [vmem:[#allocation3 + $0x141] sm:$0xff] %vm279_vm0, %v2070_v3  ;;  %v6663_v3 = vld [vmem:[#allocation3 + $0xf0] sm:$0xff] }
 0x436   : > { %v1955_v13 = vpop.f32.mrf.mxu2  ;;  %v6633_v35 = vld [vmem:[#allocation3 + $0xc8] sm:$0xff]  ;;  %v6635_v57 = vld [vmem:[#allocation3 + $0xd0] sm:$0x3] }
 0x437   : > { %v2003_v42 = vmul.f32 %v6210_v58, %v1955_v13  ;;  %v2253_v36 = vrot.slane %v6633_v35, 1  ;;  %v2255_v23 = vrot.slane %v6635_v57, 1  ;;  %v2260_v13 = vrot.slane %v6657_v2, 1 }
 0x439   : > { %v2039_v56 = vadd.f32 %v6223_v61, %v2003_v42  ;;  %v6645_v24 = vsel %vm535_vm2, %v2253_v36, %v2255_v23  ;;  %v6648_v52 = vsel %vm535_vm2, %v2252_v59, %v2253_v36  ;;  %v6667_v42 = vld [vmem:[#allocation3 + $0x120] sm:$0xff]  ;;  %v2262_v59 = vrot.slane %v6663_v3, 1 }
 0x43a   : > { %9130 = vst [vmem:[#allocation161_spill] sm:$0xff] %v6645_v24  ;;  %2432 = vrot.lane.b32.xlu0 %v6645_v24, %s4042_s26  ;;  %2430 = vrot.lane.b32.xlu2 %v6648_v52, %s4042_s26  ;;  %v6675_v15 = vsel %vm535_vm2, %v2258_v21, %v2260_v13  ;;  %v6687_v24 = vld [vmem:[#allocation3 + $0x110] sm:$0xff]  ;;  %v6697_v13 = vld [vmem:[#allocation3 + $0x108] sm:$0xff] }
 0x43b   : > { %9131 = vst [vmem:[#allocation77_spill] sm:$0xff] %v6648_v52  ;;  %v2071_v60 = vmax.f32 %v2039_v56, 0.0  ;;  %2440 = vrot.lane.b32.xlu1 %v6655_v14, %s4042_s26  ;;  %v2272_v56 = vrot.slane %v6667_v42, 1  ;;  %v6689_v52 = vld [vmem:[#allocation3 + $0x118] sm:$0x3] }
 0x43c   : > { %9133 = vst [vmem:[#allocation39_spill] sm:$0xff] %v6675_v15  ;;  %v6693_v21 = vld [vmem:[#allocation3 + $0x140] sm:$0xff] }
 0x43d   : > { %2104 = vst.msk [vmem:[#allocation3 + $0x151] sm:$0xff] %vm279_vm0, %v2071_v60  ;;  %v6678_v60 = vsel %vm535_vm2, %v2262_v59, %v2263_v28  ;;  %v6695_v28 = vld [vmem:[#allocation3 + $0x148] sm:$0x3]  ;;  %v2268_v59 = vrot.slane %v6687_v24, 1 }
 0x43e   : > { %v1958_v36 = vpop.f32.mrf.mxu2  ;;  %9134 = vst [vmem:[#allocation169_spill] sm:$0xff] %v6678_v60 }
 0x43f   : > { %v2004_v23 = vmul.f32 %v6210_v58, %v1958_v36  ;;  %v6685_v36 = vsel %vm535_vm2, %v2272_v56, %v2273_v12  ;;  %v2270_v56 = vrot.slane %v6689_v52, 1 }
 0x440   : > { %9135 = vst [vmem:[#allocation60_spill] sm:$0xff] %v6685_v36 }
 0x441   : > { %v2040_v14 = vadd.f32 %v6223_v61, %v2004_v23  ;;  %v6708_v25 = vsel %vm535_vm2, %v2268_v59, %v2270_v56 }
 0x442   : > { %2436 = vrot.lane.b32.xlu2 %v6675_v15, %s4042_s26  ;;  %2438 = vrot.lane.b32.xlu0 %v6678_v60, %s4042_s26  ;;  %v2278_v15 = vrot.slane %v6693_v21, 1  ;;  %9136 = vst [vmem:[#allocation186_spill] sm:$0xff] %v6708_v25 }
 0x443   : > { %v2072_v23 = vmax.f32 %v2040_v14, 0.0  ;;  %2446 = vrot.lane.b32.xlu1 %v6685_v36, %s4042_s26  ;;  %v2280_v14 = vrot.slane %v6695_v28, 1  ;;  %v2267_v36 = vrot.slane %v6697_v13, 1 }
 0x444   : > { %v6745_v51 = vld [vmem:[#allocation3 + $0x150] sm:$0xff] }
 0x445   : > { %2105 = vst.msk [vmem:[#allocation3 + $0x159] sm:$0xff] %vm279_vm0, %v2072_v23  ;;  %v6711_v23 = vsel %vm535_vm2, %v2267_v36, %v2268_v59  ;;  %v6718_v55 = vsel %vm535_vm2, %v2278_v15, %v2280_v14 }
 0x446   : > { %v1961_v60 = vpop.f32.mrf.mxu2  ;;  %9137 = vst [vmem:[#allocation118_spill] sm:$0xff] %v6711_v23 }
 0x447   : > { %v2005_v38 = vmul.f32 %v6210_v58, %v1961_v60  ;;  %9138 = vst [vmem:[#allocation142_spill] sm:$0xff] %v6718_v55  ;;  %v6720_v60 = vld [vmem:[#allocation3 + $0x130] sm:$0x3] }
 0x448   : > { %v2275_v36 = vrot.slane %v6720_v60, 1 }
 0x449   : > { %v2041_v44 = vadd.f32 %v6223_v61, %v2005_v38  ;;  %v6724_v38 = vld [vmem:[#allocation3 + $0x138] sm:$0xff] }
 0x44a   : > { %2444 = vrot.lane.b32.xlu0 %v6708_v25, %s4042_s26  ;;  %2442 = vrot.lane.b32.xlu2 %v6711_v23, %s4042_s26  ;;  %v2277_v25 = vrot.slane %v6724_v38, 1  ;;  %v6732_v23 = vsel %vm535_vm2, %v2273_v12, %v2275_v36 }
 0x44b   : > { %v2073_v16 = vmax.f32 %v2041_v44, 0.0  ;;  %2452 = vrot.lane.b32.xlu1 %v6718_v55, %s4042_s26  ;;  %9139 = vst [vmem:[#allocation171_spill] sm:$0xff] %v6732_v23 }
 0x44c   : > { %v6735_v44 = vsel %vm535_vm2, %v2277_v25, %v2278_v15  ;;  %v6743_v55 = vld [vmem:[#allocation3 + $0x160] sm:$0x3] }
 0x44d   : > { %2106 = vst.msk [vmem:[#allocation3 + $0x169] sm:$0xff] %vm279_vm0, %v2073_v16  ;;  %v6741_v16 = vld [vmem:[#allocation3 + $0x158] sm:$0xff]  ;;  %v2285_v25 = vrot.slane %v6743_v55, 1 }
 0x44e   : > { %v1964_v59 = vpop.f32.mrf.mxu2  ;;  %9140 = vst [vmem:[#allocation61_spill] sm:$0xff] %v6735_v44  ;;  %v2283_v12 = vrot.slane %v6741_v16, 1 }
 0x44f   : > { %v2006_v56 = vmul.f32 %v6210_v58, %v1964_v59 }
 0x451   : > { %v2042_v14 = vadd.f32 %v6223_v61, %v2006_v56  ;;  %v2282_v56 = vrot.slane %v6745_v51, 1 }
 0x452   : > { %2448 = vrot.lane.b32.xlu2 %v6732_v23, %s4042_s26  ;;  %2450 = vrot.lane.b32.xlu0 %v6735_v44, %s4042_s26  ;;  %v6754_v23 = vsel %vm535_vm2, %v2283_v12, %v2285_v25 }
 0x453   : > { %v2074_v59 = vmax.f32 %v2042_v14, 0.0  ;;  %9141 = vst [vmem:[#allocation184_spill] sm:$0xff] %v6754_v23  ;;  %v6757_v14 = vsel %vm535_vm2, %v2282_v56, %v2283_v12 }
 0x454   : > { %9142 = vst [vmem:[#allocation122_spill] sm:$0xff] %v6757_v14 }
 0x455   : > { %2107 = vst.msk [vmem:[#allocation3 + $0x171] sm:$0xff] %vm279_vm0, %v2074_v59  ;;  %v6763_v59 = vld [vmem:[#allocation3 + $0x168] sm:$0xff] }
 0x456   : > { %v1967_v15 = vpop.f32.mrf.mxu2  ;;  %v2287_v12 = vrot.slane %v6763_v59, 1 }
 0x457   : > { %v2007_v36 = vmul.f32 %v6210_v58, %v1967_v15  ;;  %v2292_v15 = vrot.slane %v6252_v41, 2 }
 0x459   : > { %v2043_v44 = vadd.f32 %v6223_v61, %v2007_v36  ;;  %v2294_v41 = vsel %vm616_vm4, %v2292_v15, %v2293_v26  ;;  %v2298_v15 = vrot.slane %v6375_v39, 2 }
 0x45a   : > { %2456 = vrot.lane.b32.xlu0 %v6754_v23, %s4042_s26  ;;  %2454 = vrot.lane.b32.xlu2 %v6757_v14, %s4042_s26 }
 0x45b   : > { %v2075_v20 = vmax.f32 %v2043_v44, 0.0 }
 0x45c   : > { %v6767_v36 = vld [vmem:[#allocation3 + $0x170] sm:$0xff]  ;;  %v6769_v25 = vld [vmem:[#allocation3 + $0x178] sm:$0x3] }
 0x45d   : > { %2108 = vst.msk [vmem:[#allocation3 + $0x181] sm:$0xff] %vm279_vm0, %v2075_v20  ;;  %v2288_v56 = vrot.slane %v6767_v36, 1  ;;  %v2290_v23 = vrot.slane %v6769_v25, 1 }
 0x45e   : > { %v1970_v14 = vpop.f32.mrf.mxu2 }
 0x45f   : > { %v2008_v40 = vmul.f32 %v6210_v58, %v1970_v14  ;;  %v6777_v44 = vsel %vm535_vm2, %v2287_v12, %v2288_v56  ;;  %v6784_v20 = vsel %vm535_vm2, %v2288_v56, %v2290_v23  ;;  %v2296_v14 = vsel %vm616_vm4, %v2293_v26, %v2295_v46  ;;  %v6802_v23 = vpop.permute.xlu2 %2400 }
 0x460   : > { %9143 = vst [vmem:[#allocation145_spill] sm:$0xff] %v6777_v44  ;;  %2458 = vrot.lane.b32.xlu1 %v6777_v44, %s4042_s26  ;;  %v2300_v12 = vrot.slane %v6377_v22, 2  ;;  %v2303_v22 = vrot.slane %v6432_v31, 2  ;;  %v2302_v46 = vrot.slane %v6426_v1, 2  ;;  %v2308_v26 = vrot.slane %v6465_v10, 2 }
 0x461   : > { %v2044_v48 = vadd.f32 %v6223_v61, %v2008_v40  ;;  %9144 = vst [vmem:[#allocation164_spill] sm:$0xff] %v6784_v20  ;;  %v2297_v61 = vrot.slane %v6369_v19, 2  ;;  %v2305_v56 = vrot.slane %v6434_v0, 2  ;;  %v2310_v0 = vrot.slane %v6467_v6, 2 }
 0x462   : > { %2494 = vrot.lane.b32.xlu0 %v2294_v41, %s4043_s8  ;;  %2460 = vrot.lane.b32.xlu2 %v6784_v20, %s4042_s26  ;;  %v6797_v18 = vsel %vm616_vm4, %v2298_v15, %v2300_v12  ;;  %9145 = vst [vmem:[#allocation78_spill] sm:$0xff] %v6802_v23  ;;  %v6813_v41 = vsel %vm616_vm4, %v2302_v46, %v2303_v22  ;;  %v2313_v12 = vrot.slane %v6496_v45, 2  ;;  %v6833_v46 = vpop.permute.xlu1 %2398 }
 0x463   : > { %v2076_v58 = vmax.f32 %v2044_v48, 0.0  ;;  %v6800_v40 = vsel %vm616_vm4, %v2297_v61, %v2298_v15  ;;  %v2307_v48 = vrot.slane %v6463_v7, 2  ;;  %v2315_v61 = vrot.slane %v6498_v37, 2  ;;  %9147 = vst [vmem:[#allocation98_spill] sm:$0xff] %v6833_v46 }
 0x464   : > { %v2318_v37 = vrot.slane %v6527_v29, 2 }
 0x465   : > { %2109 = vst.msk [vmem:[#allocation3 + $0x189] sm:$0xff] %vm279_vm0, %v2076_v58  ;;  %v6819_v58 = vsel %vm616_vm4, %v2307_v48, %v2308_v26  ;;  %v6836_v48 = vsel %vm616_vm4, %v2308_v26, %v2310_v0  ;;  %v2317_v0 = vrot.slane %v6524_v49, 2 }
 0x467   : > { %v6829_v15 = vpop.permute.xlu2 %2406  ;;  %v6858_v23 = vsel %vm616_vm4, %v2317_v0, %v2318_v37  ;;  %v6876_v0 = vpop.permute.xlu0 %2402 }
 0x468   : > { %2496 = vrot.lane.b32.xlu1 %v2296_v14, %s4043_s8  ;;  %v6822_v14 = vsel %vm616_vm4, %v2303_v22, %v2305_v56  ;;  %9146 = vst [vmem:[#allocation188_spill] sm:$0xff] %v6829_v15  ;;  %v2312_v22 = vrot.slane %v6493_v43, 2  ;;  %v6842_v56 = vsel %vm616_vm4, %v2313_v12, %v2315_v61  ;;  %v2323_v15 = vrot.slane %v6558_v30, 2 }
 0x469   : > { %9148 = vst [vmem:[#allocation110_spill] sm:$0xff] %v6842_v56  ;;  %v2320_v61 = vrot.slane %v6529_v54, 2  ;;  %v2325_v54 = vrot.slane %v6560_v5, 2 }
 0x46a   : > { %2500 = vrot.lane.b32.xlu0 %v6797_v18, %s4043_s8  ;;  %2498 = vrot.lane.b32.xlu2 %v6800_v40, %s4043_s8  ;;  %v6845_v6 = vsel %vm616_vm4, %v2312_v22, %v2313_v12  ;;  %9150 = vst [vmem:[#allocation146_spill] sm:$0xff] %v6858_v23  ;;  %v2322_v12 = vrot.slane %v6555_v11, 2  ;;  %v6863_v22 = vpop.permute.xlu1 %2404 }
 0x46b   : > { %9151 = vst [vmem:[#allocation147_spill] sm:$0xff] %v6863_v22  ;;  %v2328_v22 = vrot.slane %v6589_v27, 2 }
 0x46c   : > { %v6866_v46 = vsel %vm616_vm4, %v2322_v12, %v2323_v15  ;;  %9154 = vst [vmem:[#allocation80_spill] sm:$0xff] %v6876_v0  ;;  %v2330_v12 = vrot.slane %v6591_v63, 2  ;;  %v2333_v63 = vrot.slane %v6633_v35, 2 }
 0x46d   : > { %9152 = vst [vmem:[#allocation76_spill] sm:$0xff] %v6866_v46 }
 0x46e   : > { %v6891_v5 = vsel %vm616_vm4, %v2328_v22, %v2330_v12  ;;  %v2338_v12 = vrot.slane %v6610_v47, 2 }
 0x46f   : > { %v6852_v26 = vpop.permute.xlu2 %2412  ;;  %9158 = vst [vmem:[#allocation32_spill] sm:$0xff] %v6891_v5 }
 0x470   : > { %2502 = vrot.lane.b32.xlu1 %v6813_v41, %s4043_s8  ;;  %9149 = vst [vmem:[#allocation132_spill] sm:$0xff] %v6852_v26  ;;  %v6869_v26 = vsel %vm616_vm4, %v2318_v37, %v2320_v61  ;;  %v2327_v37 = vrot.slane %v6586_v17, 2 }
 0x471   : > { %9153 = vst [vmem:[#allocation179_spill] sm:$0xff] %v6869_v26 }
 0x472   : > { %2506 = vrot.lane.b32.xlu0 %v6819_v58, %s4043_s8  ;;  %2504 = vrot.lane.b32.xlu2 %v6822_v14, %s4043_s8  ;;  %v6888_v61 = vpop.permute.xlu1 %2410  ;;  %v6894_v0 = vsel %vm616_vm4, %v2327_v37, %v2328_v22  ;;  %v2337_v37 = vrot.slane %v6613_v4, 2 }
 0x473   : > { %9157 = vst [vmem:[#allocation134_spill] sm:$0xff] %v6888_v61  ;;  %v2335_v61 = vrot.slane %v6635_v57, 2  ;;  %v2340_v57 = vrot.slane %v6657_v2, 2 }
 0x474   : > { %9159 = vst [vmem:[#allocation155_spill] sm:$0xff] %v6894_v0 }
 0x478   : > { %2508 = vrot.lane.b32.xlu1 %v6836_v48, %s4043_s8 }
 0x47a   : > { %2512 = vrot.lane.b32.xlu0 %v6842_v56, %s4043_s8  ;;  %2510 = vrot.lane.b32.xlu2 %v6845_v6, %s4043_s8  ;;  %v6878_v56 = vpop.permute.xlu2 %2418 }
 0x47b   : > { %9155 = vst [vmem:[#allocation83_spill] sm:$0xff] %v6878_v56  ;;  %v2332_v56 = vrot.slane %v6630_v50, 2 }
 0x47d   : > { %v6909_v22 = vsel %vm616_vm4, %v2332_v56, %v2333_v63 }
 0x47e   : > { %9162 = vst [vmem:[#allocation65_spill] sm:$0xff] %v6909_v22 }
 0x480   : > { %2514 = vrot.lane.b32.xlu1 %v6858_v23, %s4043_s8  ;;  %v6883_v23 = vsel %vm616_vm4, %v2323_v15, %v2325_v54  ;;  %v6901_v15 = vpop.permute.xlu0 %2408 }
 0x481   : > { %9156 = vst [vmem:[#allocation123_spill] sm:$0xff] %v6883_v23 }
 0x482   : > { %2518 = vrot.lane.b32.xlu0 %v6866_v46, %s4043_s8  ;;  %2516 = vrot.lane.b32.xlu2 %v6869_v26, %s4043_s8  ;;  %9160 = vst [vmem:[#allocation172_spill] sm:$0xff] %v6901_v15  ;;  %v6903_v54 = vpop.permute.xlu2 %2424  ;;  %v6917_v15 = vsel %vm616_vm4, %v2337_v37, %v2338_v12  ;;  %v2345_v37 = vrot.slane %v6628_v32, 2  ;;  %v2348_v32 = vrot.slane %v6687_v24, 2 }
 0x483   : > { %9161 = vst [vmem:[#allocation81_spill] sm:$0xff] %v6903_v54  ;;  %v6920_v54 = vsel %vm616_vm4, %v2333_v63, %v2335_v61  ;;  %v2342_v61 = vrot.slane %v6663_v3, 2 }
 0x484   : > { %9164 = vst [vmem:[#allocation99_spill] sm:$0xff] %v6917_v15 }
 0x485   : > { %9165 = vst [vmem:[#allocation124_spill] sm:$0xff] %v6920_v54 }
 0x488   : > { %2520 = vrot.lane.b32.xlu1 %v6883_v23, %s4043_s8  ;;  %v6927_v56 = vpop.permute.xlu0 %2414 }
 0x489   : > { %9166 = vst [vmem:[#allocation125_spill] sm:$0xff] %v6927_v56 }
 0x48a   : > { %2524 = vrot.lane.b32.xlu0 %v6891_v5, %s4043_s8  ;;  %2522 = vrot.lane.b32.xlu2 %v6894_v0, %s4043_s8  ;;  %v6914_v5 = vpop.permute.xlu1 %2416 }
 0x48b   : > { %9163 = vst [vmem:[#allocation190_spill] sm:$0xff] %v6914_v5  ;;  %v2343_v5 = vrot.slane %v6626_v9, 2 }
 0x48d   : > { %v6942_v2 = vsel %vm616_vm4, %v2343_v5, %v2345_v37  ;;  %v6945_v56 = vsel %vm616_vm4, %v2342_v61, %v2343_v5  ;;  %v2353_v37 = vrot.slane %v6661_v34, 2  ;;  %v2352_v61 = vrot.slane %v6667_v42, 2 }
 0x48e   : > { %9170 = vst [vmem:[#allocation180_spill] sm:$0xff] %v6942_v2 }
 0x490   : > { %2526 = vrot.lane.b32.xlu1 %v6909_v22, %s4043_s8  ;;  %v6934_v22 = vsel %vm616_vm4, %v2338_v12, %v2340_v57  ;;  %v6952_v12 = vpop.permute.xlu0 %2420 }
 0x491   : > { %9168 = vst [vmem:[#allocation158_spill] sm:$0xff] %v6934_v22 }
 0x492   : > { %2530 = vrot.lane.b32.xlu0 %v6917_v15, %s4043_s8  ;;  %2528 = vrot.lane.b32.xlu2 %v6920_v54, %s4043_s8  ;;  %v6939_v63 = vpop.permute.xlu1 %2422  ;;  %9171 = vst [vmem:[#allocation84_spill] sm:$0xff] %v6952_v12  ;;  %v6968_v12 = vsel %vm616_vm4, %v2352_v61, %v2353_v37  ;;  %v2360_v61 = vrot.slane %v6695_v28, 2 }
 0x493   : > { %9169 = vst [vmem:[#allocation166_spill] sm:$0xff] %v6939_v63  ;;  %v2347_v63 = vrot.slane %v6697_v13, 2 }
 0x494   : > { %v6929_v23 = vpop.permute.xlu2 %2430 }
 0x495   : > { %9167 = vst [vmem:[#allocation148_spill] sm:$0xff] %v6929_v23  ;;  %v2350_v23 = vrot.slane %v6689_v52, 2  ;;  %v6960_v5 = vsel %vm616_vm4, %v2347_v63, %v2348_v32  ;;  %v2355_v52 = vrot.slane %v6720_v60, 2 }
 0x496   : > { %9173 = vst [vmem:[#allocation102_spill] sm:$0xff] %v6960_v5 }
 0x498   : > { %2532 = vrot.lane.b32.xlu1 %v6934_v22, %s4043_s8 }
 0x49a   : > { %2536 = vrot.lane.b32.xlu0 %v6942_v2, %s4043_s8  ;;  %2534 = vrot.lane.b32.xlu2 %v6945_v56, %s4043_s8 }
 0x49c   : > { %v6954_v57 = vpop.permute.xlu2 %2436  ;;  %v6965_v2 = vpop.permute.xlu1 %2428 }
 0x49d   : > { %9172 = vst [vmem:[#allocation192_spill] sm:$0xff] %v6954_v57  ;;  %v6971_v57 = vsel %vm616_vm4, %v2348_v32, %v2350_v23  ;;  %v6978_v63 = vpop.permute.xlu0 %2426  ;;  %v2357_v23 = vrot.slane %v6724_v38, 2 }
 0x49e   : > { %9174 = vst [vmem:[#allocation113_spill] sm:$0xff] %v6965_v2  ;;  %v2358_v2 = vrot.slane %v6693_v21, 2 }
 0x49f   : > { %9175 = vst [vmem:[#allocation135_spill] sm:$0xff] %v6978_v63  ;;  %v2368_v63 = vrot.slane %v6767_v36, 2 }
 0x4a0   : > { %2538 = vrot.lane.b32.xlu1 %v6960_v5, %s4043_s8  ;;  %v6985_v5 = vsel %vm616_vm4, %v2353_v37, %v2355_v52  ;;  %v6991_v32 = vsel %vm616_vm4, %v2358_v2, %v2360_v61  ;;  %v6994_v60 = vsel %vm616_vm4, %v2357_v23, %v2358_v2  ;;  %v2363_v37 = vrot.slane %v6741_v16, 2 }
 0x4a1   : > { %9177 = vst [vmem:[#allocation150_spill] sm:$0xff] %v6985_v5  ;;  %v2362_v61 = vrot.slane %v6745_v51, 2  ;;  %v2365_v2 = vrot.slane %v6743_v55, 2  ;;  %v2370_v55 = vrot.slane %v6769_v25, 2 }
 0x4a2   : > { %2542 = vrot.lane.b32.xlu0 %v6968_v12, %s4043_s8  ;;  %2540 = vrot.lane.b32.xlu2 %v6971_v57, %s4043_s8  ;;  %9178 = vst [vmem:[#allocation173_spill] sm:$0xff] %v6991_v32 }
 0x4a3   : > { %v7011_v23 = vsel %vm616_vm4, %v2362_v61, %v2363_v37 }
 0x4a4   : > { %v6980_v22 = vpop.permute.xlu2 %2442  ;;  %v7000_v28 = vpop.permute.xlu1 %2434  ;;  %9182 = vst [vmem:[#allocation126_spill] sm:$0xff] %v7011_v23 }
 0x4a5   : > { %9176 = vst [vmem:[#allocation149_spill] sm:$0xff] %v6980_v22 }
 0x4a6   : > { %9179 = vst [vmem:[#allocation182_spill] sm:$0xff] %v7000_v28 }
 0x4a8   : > { %2544 = vrot.lane.b32.xlu1 %v6985_v5, %s4043_s8 }
 0x4aa   : > { %2548 = vrot.lane.b32.xlu0 %v6991_v32, %s4043_s8  ;;  %2546 = vrot.lane.b32.xlu2 %v6994_v60, %s4043_s8  ;;  %v2367_v32 = vrot.slane %v6763_v59, 2 }
 0x4ac   : > { %v7003_v52 = vpop.permute.xlu0 %2432  ;;  %v7005_v22 = vpop.permute.xlu2 %2448  ;;  %v7017_v28 = vsel %vm616_vm4, %v2367_v32, %v2368_v63  ;;  %v7034_v32 = vsel %vm616_vm4, %v2368_v63, %v2370_v55 }
 0x4ad   : > { %9180 = vst [vmem:[#allocation86_spill] sm:$0xff] %v7003_v52  ;;  %v7020_v52 = vsel %vm616_vm4, %v2363_v37, %v2365_v2  ;;  %v7031_v5 = vpop.permute.xlu1 %2440 }
 0x4ae   : > { %9181 = vst [vmem:[#allocation88_spill] sm:$0xff] %v7005_v22 }
 0x4af   : > { %9183 = vst [vmem:[#allocation137_spill] sm:$0xff] %v7017_v28 }
 0x4b0   : > { %2550 = vrot.lane.b32.xlu1 %v7011_v23, %s4043_s8  ;;  %9184 = vst [vmem:[#allocation37_spill] sm:$0xff] %v7020_v52 }
 0x4b1   : > { %9186 = vst [vmem:[#allocation174_spill] sm:$0xff] %v7034_v32 }
 0x4b2   : > { %2554 = vrot.lane.b32.xlu0 %v7017_v28, %s4043_s8  ;;  %2552 = vrot.lane.b32.xlu2 %v7020_v52, %s4043_s8 }
 0x4b4   : > { %v7027_v61 = vpop.permute.xlu0 %2438  ;;  %v7029_v22 = vpop.permute.xlu2 %2454 }
 0x4b5   : > { %9185 = vst [vmem:[#allocation159_spill] sm:$0xff] %v7029_v22  ;;  %v7046_v2 = vpop.permute.xlu1 %2446 }
 0x4b6   : > { %9188 = vst [vmem:[#allocation69_spill] sm:$0xff] %v7046_v2 }
 0x4b8   : > { %2556 = vrot.lane.b32.xlu1 %v7034_v32, %s4043_s8  ;;  %v9220_v32 = vld [vmem:[#allocation66_spill] sm:$0xff] }
 0x4ba   : > { %2592 = vrot.lane.b32.xlu0 %v6375_v39, %s4044_s9  ;;  %2590 = vrot.lane.b32.xlu2 %v6369_v19, %s4044_s9 }
 0x4bc   : > { %v7042_v37 = vpop.permute.xlu0 %2444  ;;  %v7044_v25 = vpop.permute.xlu2 %2460 }
 0x4bd   : > { %9187 = vst [vmem:[#allocation175_spill] sm:$0xff] %v7044_v25  ;;  %v7060_v19 = vpop.permute.xlu1 %2452 }
 0x4be   : > { %9190 = vst [vmem:[#allocation127_spill] sm:$0xff] %v7060_v19 }
 0x4c0   : > { %2594 = vrot.lane.b32.xlu1 %v6426_v1, %s4044_s9 }
 0x4c2   : > { %2598 = vrot.lane.b32.xlu0 %v6463_v7, %s4044_s9  ;;  %2596 = vrot.lane.b32.xlu2 %v6432_v31, %s4044_s9 }
 0x4c4   : > { %v7054_v63 = vpop.permute.xlu0 %2450  ;;  %v7056_v39 = vpop.permute.xlu2 %2498 }
 0x4c5   : > { %9189 = vst [vmem:[#allocation103_spill] sm:$0xff] %v7056_v39 }
 0x4c8   : > { %2600 = vrot.lane.b32.xlu1 %v6465_v10, %s4044_s9 }
 0x4ca   : > { %2604 = vrot.lane.b32.xlu0 %v6496_v45, %s4044_s9  ;;  %2602 = vrot.lane.b32.xlu2 %v6493_v43, %s4044_s9 }
 0x4cc   : > { %v7066_v1 = vpop.permute.xlu0 %2456  ;;  %v7068_v7 = vpop.permute.xlu2 %2504 }
 0x4cd   : > { %9191 = vst [vmem:[#allocation128_spill] sm:$0xff] %v7066_v1 }
 0x4ce   : > { %9192 = vst [vmem:[#allocation151_spill] sm:$0xff] %v7068_v7 }
 0x4d0   : > { %2606 = vrot.lane.b32.xlu1 %v6524_v49, %s4044_s9 }
 0x4d2   : > { %2610 = vrot.lane.b32.xlu0 %v6555_v11, %s4044_s9  ;;  %2608 = vrot.lane.b32.xlu2 %v6527_v29, %s4044_s9  ;;  %v7076_v31 = vpop.permute.xlu1 %2458 }
 0x4d3   : > { %9193 = vst [vmem:[#allocation160_spill] sm:$0xff] %v7076_v31 }
 0x4d4   : > { %v7078_v10 = vpop.permute.xlu0 %2494  ;;  %v7080_v45 = vpop.permute.xlu2 %2510 }
 0x4d5   : > { %9194 = vst [vmem:[#allocation168_spill] sm:$0xff] %v7078_v10 }
 0x4d6   : > { %9195 = vst [vmem:[#allocation183_spill] sm:$0xff] %v7080_v45 }
 0x4d8   : > { %2612 = vrot.lane.b32.xlu1 %v6558_v30, %s4044_s9 }
 0x4da   : > { %2616 = vrot.lane.b32.xlu0 %v6589_v27, %s4044_s9  ;;  %2614 = vrot.lane.b32.xlu2 %v6586_v17, %s4044_s9  ;;  %v7088_v43 = vpop.permute.xlu1 %2496 }
 0x4db   : > { %9196 = vst [vmem:[#allocation157_spill] sm:$0xff] %v7088_v43  ;;  %v9225_v43 = vld [vmem:[#allocation73_spill] sm:$0xff] }
 0x4dc   : > { %v7090_v49 = vpop.permute.xlu0 %2500  ;;  %v7092_v29 = vpop.permute.xlu2 %2516 }
 0x4dd   : > { %9197 = vst [vmem:[#allocation89_spill] sm:$0xff] %v7090_v49  ;;  %v9221_v49 = vld [vmem:[#allocation115_spill] sm:$0xff] }
 0x4de   : > { %9198 = vst [vmem:[#allocation105_spill] sm:$0xff] %v7092_v29 }
 0x4e0   : > { %2618 = vrot.lane.b32.xlu1 %v6630_v50, %s4044_s9 }
 0x4e2   : > { %2622 = vrot.lane.b32.xlu0 %v6613_v4, %s4044_s9  ;;  %2620 = vrot.lane.b32.xlu2 %v6633_v35, %s4044_s9  ;;  %v7100_v11 = vpop.permute.xlu1 %2502 }
 0x4e3   : > { %9199 = vst [vmem:[#allocation116_spill] sm:$0xff] %v7100_v11  ;;  %v9219_v11 = vld [vmem:[#allocation185_spill] sm:$0xff] }
 0x4e4   : > { %v7102_v30 = vpop.permute.xlu0 %2506  ;;  %v7104_v27 = vpop.permute.xlu2 %2522 }
 0x4e5   : > { %9200 = vst [vmem:[#allocation138_spill] sm:$0xff] %v7102_v30 }
 0x4e8   : > { %2624 = vrot.lane.b32.xlu1 %v6610_v47, %s4044_s9 }
 0x4ea   : > { %2628 = vrot.lane.b32.xlu0 %v6626_v9, %s4044_s9  ;;  %2626 = vrot.lane.b32.xlu2 %v6663_v3, %s4044_s9  ;;  %v7112_v50 = vpop.permute.xlu1 %2508 }
 0x4eb   : > { %9201 = vst [vmem:[#allocation152_spill] sm:$0xff] %v7112_v50 }
 0x4ec   : > { %v7114_v4 = vpop.permute.xlu0 %2512  ;;  %v7116_v35 = vpop.permute.xlu2 %2528 }
 0x4ed   : > { %9202 = vst [vmem:[#allocation50_spill] sm:$0xff] %v7114_v4  ;;  %v7158_v4 = vld [vmem:[#allocation3 + $0x188] sm:$0xff] }
 0x4ee   : > { %9203 = vst [vmem:[#allocation87_spill] sm:$0xff] %v7116_v35  ;;  %v9227_v35 = vld [vmem:[#allocation139_spill] sm:$0xff] }
 0x4ef   : > { %9209 = vst [vmem:[#allocation63_spill] sm:$0xff] %v7158_v4 }
 0x4f0   : > { %2630 = vrot.lane.b32.xlu1 %v6697_v13, %s4044_s9 }
 0x4f2   : > { %2634 = vrot.lane.b32.xlu0 %v6667_v42, %s4044_s9  ;;  %2632 = vrot.lane.b32.xlu2 %v6687_v24, %s4044_s9  ;;  %v7124_v47 = vpop.permute.xlu1 %2514 }
 0x4f3   : > { %9204 = vst [vmem:[#allocation187_spill] sm:$0xff] %v7124_v47  ;;  %v7156_v47 = vld [vmem:[#allocation3 + $0x180] sm:$0xff] }
 0x4f4   : > { %v7126_v55 = vpop.permute.xlu0 %2518  ;;  %v7128_v25 = vpop.permute.xlu2 %2534  ;;  %9208 = vst [vmem:[#allocation42_spill] sm:$0xff] %v7156_v47 }
 0x4f5   : > { %9205 = vst [vmem:[#allocation197_spill] sm:$0xff] %v7126_v55 }
 0x4f8   : > { %2636 = vrot.lane.b32.xlu1 %v6661_v34, %s4044_s9 }
 0x4fa   : > { %2640 = vrot.lane.b32.xlu0 %v6693_v21, %s4044_s9  ;;  %2638 = vrot.lane.b32.xlu2 %v6724_v38, %s4044_s9  ;;  %v7136_v31 = vpop.permute.xlu1 %2520 }
 0x4fc   : > { %v7138_v1 = vpop.permute.xlu0 %2524  ;;  %v7140_v22 = vpop.permute.xlu2 %2540 }
 0x500   : > { %2642 = vrot.lane.b32.xlu1 %v6745_v51, %s4044_s9 }
 0x502   : > { %2646 = vrot.lane.b32.xlu0 %v6763_v59, %s4044_s9  ;;  %2644 = vrot.lane.b32.xlu2 %v6741_v16, %s4044_s9  ;;  %v7148_v55 = vpop.permute.xlu1 %2526 }
 0x503   : > { %9206 = vst [vmem:[#allocation204_spill] sm:$0xff] %v7148_v55 }
 0x504   : > { %v7150_v21 = vpop.permute.xlu0 %2530  ;;  %v7152_v29 = vpop.permute.xlu2 %2546 }
 0x505   : > { %9207 = vst [vmem:[#allocation44_spill] sm:$0xff] %v7150_v21 }
 0x508   : > { %2648 = vrot.lane.b32.xlu1 %v6767_v36, %s4044_s9 }
 0x50a   : > { %2650 = vrot.lane.b32.xlu2 %v7156_v47, %s4044_s9  ;;  %2652 = vrot.lane.b32.xlu0 %v7158_v4, %s4044_s9  ;;  %v7164_v51 = vpop.permute.xlu1 %2532 }
 0x50c   : > { %v7166_v16 = vpop.permute.xlu0 %2536  ;;  %v7168_v59 = vpop.permute.xlu2 %2552 }
 0x50d   : > { %9210 = vst [vmem:[#allocation82_spill] sm:$0xff] %v7168_v59  ;;  %v9214_v59 = vld [vmem:[#allocation34_spill] sm:$0xff] }
 0x510   : > { %2686 = vrot.lane.b32.xlu1 %v6394_v53, %s4045_s10  ;;  %v9215_v53 = vld [vmem:[#allocation104_spill] sm:$0xff] }
 0x512   : > { %2688 = vrot.lane.b32.xlu2 %v6391_v33, %s4045_s10  ;;  %2690 = vrot.lane.b32.xlu0 %v6451_v62, %s4045_s10  ;;  %v7176_v36 = vpop.permute.xlu1 %2538 }
 0x513   : > { %9211 = vst [vmem:[#allocation91_spill] sm:$0xff] %v7176_v36 }
 0x514   : > { %v7178_v45 = vpop.permute.xlu0 %2542  ;;  %v7180_v50 = vpop.permute.xlu2 %2590 }
 0x515   : > { %9212 = vst [vmem:[#allocation94_spill] sm:$0xff] %v7178_v45 }
 0x516   : > { %9213 = vst [vmem:[#allocation129_spill] sm:$0xff] %v7180_v50 }
 0x518   : > { %2692 = vrot.lane.b32.xlu1 %v6448_v8, %s4045_s10 }
 0x51a   : > { %2694 = vrot.lane.b32.xlu2 %v9214_v59, %s4045_s10  ;;  %2696 = vrot.lane.b32.xlu0 %v9215_v53, %s4045_s10  ;;  %v7188_v30 = vpop.permute.xlu1 %2544 }
 0x51b   : > { %9216 = vst [vmem:[#allocation140_spill] sm:$0xff] %v7188_v30 }
 0x51c   : > { %v7190_v33 = vpop.permute.xlu0 %2548  ;;  %v7192_v7 = vpop.permute.xlu2 %2596 }
 0x51d   : > { %9217 = vst [vmem:[#allocation144_spill] sm:$0xff] %v7190_v33 }
 0x51e   : > { %9218 = vst [vmem:[#allocation58_spill] sm:$0xff] %v7192_v7  ;;  %v9226_v7 = vld [vmem:[#allocation70_spill] sm:$0xff] }
 0x520   : > { %2698 = vrot.lane.b32.xlu1 %v9219_v11, %s4045_s10 }
 0x522   : > { %2700 = vrot.lane.b32.xlu2 %v9220_v32, %s4045_s10  ;;  %2702 = vrot.lane.b32.xlu0 %v9221_v49, %s4045_s10  ;;  %v7200_v28 = vpop.permute.xlu1 %2550  ;;  %v9250_v49 = vld [vmem:[#allocation171_spill] sm:$0xff] }
 0x523   : > { %9222 = vst [vmem:[#allocation176_spill] sm:$0xff] %v7200_v28  ;;  %v9231_v28 = vld [vmem:[#allocation117_spill] sm:$0xff] }
 0x524   : > { %v7202_v39 = vpop.permute.xlu0 %2554  ;;  %v7204_v21 = vpop.permute.xlu2 %2602 }
 0x525   : > { %9223 = vst [vmem:[#allocation92_spill] sm:$0xff] %v7202_v39  ;;  %v9232_v39 = vld [vmem:[#allocation72_spill] sm:$0xff] }
 0x526   : > { %9224 = vst [vmem:[#allocation199_spill] sm:$0xff] %v7204_v21  ;;  %v9233_v21 = vld [vmem:[#allocation77_spill] sm:$0xff] }
 0x528   : > { %2704 = vrot.lane.b32.xlu1 %v9225_v43, %s4045_s10 }
 0x52a   : > { %2706 = vrot.lane.b32.xlu2 %v9226_v7, %s4045_s10  ;;  %2708 = vrot.lane.b32.xlu0 %v9227_v35, %s4045_s10  ;;  %v7212_v50 = vpop.permute.xlu1 %2556 }
 0x52b   : > { %9228 = vst [vmem:[#allocation205_spill] sm:$0xff] %v7212_v50  ;;  %v9237_v50 = vld [vmem:[#allocation161_spill] sm:$0xff] }
 0x52c   : > { %v7214_v10 = vpop.permute.xlu0 %2592  ;;  %v7216_v55 = vpop.permute.xlu2 %2608 }
 0x52d   : > { %9229 = vst [vmem:[#allocation43_spill] sm:$0xff] %v7214_v10 }
 0x52e   : > { %9230 = vst [vmem:[#allocation52_spill] sm:$0xff] %v7216_v55  ;;  %v9238_v55 = vld [vmem:[#allocation35_spill] sm:$0xff] }
 0x530   : > { %2710 = vrot.lane.b32.xlu1 %v9231_v28, %s4045_s10  ;;  %v9239_v28 = vld [vmem:[#allocation39_spill] sm:$0xff] }
 0x532   : > { %2712 = vrot.lane.b32.xlu2 %v9232_v39, %s4045_s10  ;;  %2714 = vrot.lane.b32.xlu0 %v9233_v21, %s4045_s10  ;;  %v7224_v43 = vpop.permute.xlu1 %2594 }
 0x533   : > { %9234 = vst [vmem:[#allocation68_spill] sm:$0xff] %v7224_v43  ;;  %v9242_v43 = vld [vmem:[#allocation169_spill] sm:$0xff] }
 0x534   : > { %v7226_v7 = vpop.permute.xlu0 %2598  ;;  %v7228_v35 = vpop.permute.xlu2 %2614 }
 0x535   : > { %9235 = vst [vmem:[#allocation74_spill] sm:$0xff] %v7226_v7 }
 0x536   : > { %9236 = vst [vmem:[#allocation75_spill] sm:$0xff] %v7228_v35  ;;  %v9243_v35 = vld [vmem:[#allocation107_spill] sm:$0xff] }
 0x538   : > { %2716 = vrot.lane.b32.xlu1 %v9237_v50, %s4045_s10  ;;  %v9244_v50 = vld [vmem:[#allocation118_spill] sm:$0xff] }
 0x53a   : > { %2718 = vrot.lane.b32.xlu2 %v9238_v55, %s4045_s10  ;;  %2720 = vrot.lane.b32.xlu0 %v9239_v28, %s4045_s10  ;;  %v7236_v10 = vpop.permute.xlu1 %2600 }
 0x53b   : > { %9240 = vst [vmem:[#allocation106_spill] sm:$0xff] %v7236_v10  ;;  %v9248_v10 = vld [vmem:[#allocation186_spill] sm:$0xff] }
 0x53c   : > { %v7238_v39 = vpop.permute.xlu0 %2604  ;;  %v7240_v21 = vpop.permute.xlu2 %2620 }
 0x53d   : > { %9241 = vst [vmem:[#allocation130_spill] sm:$0xff] %v7238_v39  ;;  %v9249_v39 = vld [vmem:[#allocation60_spill] sm:$0xff] }
 0x540   : > { %2722 = vrot.lane.b32.xlu1 %v9242_v43, %s4045_s10 }
 0x542   : > { %2724 = vrot.lane.b32.xlu2 %v9243_v35, %s4045_s10  ;;  %2726 = vrot.lane.b32.xlu0 %v9244_v50, %s4045_s10  ;;  %v7248_v7 = vpop.permute.xlu1 %2606 }
 0x543   : > { %9245 = vst [vmem:[#allocation131_spill] sm:$0xff] %v7248_v7  ;;  %v9253_v7 = vld [vmem:[#allocation61_spill] sm:$0xff] }
 0x544   : > { %v7250_v55 = vpop.permute.xlu0 %2610  ;;  %v7252_v28 = vpop.permute.xlu2 %2626 }
 0x545   : > { %9246 = vst [vmem:[#allocation153_spill] sm:$0xff] %v7250_v55  ;;  %v9254_v55 = vld [vmem:[#allocation142_spill] sm:$0xff] }
 0x546   : > { %9247 = vst [vmem:[#allocation162_spill] sm:$0xff] %v7252_v28  ;;  %v9255_v28 = vld [vmem:[#allocation122_spill] sm:$0xff] }
 0x548   : > { %2728 = vrot.lane.b32.xlu1 %v9248_v10, %s4045_s10 }
 0x54a   : > { %2730 = vrot.lane.b32.xlu2 %v9249_v39, %s4045_s10  ;;  %2732 = vrot.lane.b32.xlu0 %v9250_v49, %s4045_s10  ;;  %v7260_v33 = vpop.permute.xlu1 %2612 }
 0x54b   : > { %9251 = vst [vmem:[#allocation170_spill] sm:$0xff] %v7260_v33  ;;  %v9258_v33 = vld [vmem:[#allocation184_spill] sm:$0xff] }
 0x54c   : > { %v7262_v19 = vpop.permute.xlu0 %2616  ;;  %v7264_v30 = vpop.permute.xlu2 %2632 }
 0x54d   : > { %9252 = vst [vmem:[#allocation189_spill] sm:$0xff] %v7264_v30 }
 0x550   : > { %2734 = vrot.lane.b32.xlu1 %v9253_v7, %s4045_s10 }
 0x552   : > { %2736 = vrot.lane.b32.xlu2 %v9254_v55, %s4045_s10  ;;  %2738 = vrot.lane.b32.xlu0 %v9255_v28, %s4045_s10  ;;  %v7272_v45 = vpop.permute.xlu1 %2618  ;;  %v7286_v55 = vld [vmem:[#allocation3 + $0x190] sm:$0x3]  ;;  %v2376_v28 = vrot.slane %v7158_v4, 1 }
 0x553   : > { %9260 = vst [vmem:[#allocation51_spill] sm:$0xff] %v7286_v55 }
 0x554   : > { %v7274_v2 = vpop.permute.xlu0 %2622  ;;  %v7276_v36 = vpop.permute.xlu2 %2638 }
 0x555   : > { %9256 = vst [vmem:[#allocation200_spill] sm:$0xff] %v7274_v2 }
 0x556   : > { %9257 = vst [vmem:[#allocation201_spill] sm:$0xff] %v7276_v36  ;;  %v2375_v36 = vrot.slane %v7156_v47, 1 }
 0x558   : > { %2740 = vrot.lane.b32.xlu1 %v9258_v33, %s4045_s10  ;;  %v2378_v33 = vrot.slane %v7286_v55, 1  ;;  %v7296_v32 = vsel %vm535_vm2, %v2375_v36, %v2376_v28 }
 0x559   : > { %9262 = vst [vmem:[#allocation90_spill] sm:$0xff] %v7296_v32 }
 0x55a   : > { %2742 = vrot.lane.b32.xlu2 %v6777_v44, %s4045_s10  ;;  %2744 = vrot.lane.b32.xlu0 %v6784_v20, %s4045_s10  ;;  %v7284_v7 = vpop.permute.xlu1 %2624  ;;  %v7301_v20 = vsel %vm535_vm2, %v2376_v28, %v2378_v33 }
 0x55b   : > { %9259 = vst [vmem:[#allocation46_spill] sm:$0xff] %v7284_v7 }
 0x55c   : > { %v7289_v30 = vpop.permute.xlu0 %2628  ;;  %v7291_v2 = vpop.permute.xlu2 %2644  ;;  %9263 = vst [vmem:[#allocation95_spill] sm:$0xff] %v7301_v20 }
 0x55d   : > { %9261 = vst [vmem:[#allocation64_spill] sm:$0xff] %v7291_v2 }
 0x560   : > { %2746 = vrot.lane.b32.xlu1 %v7296_v32, %s4045_s10  ;;  %v9269_v32 = vld [vmem:[#allocation146_spill] sm:$0xff] }
 0x562   : > { %2782 = vrot.lane.b32.xlu0 %v6800_v40, %s4046_s11  ;;  %2748 = vrot.lane.b32.xlu2 %v7301_v20, %s4045_s10  ;;  %v7307_v4 = vpop.permute.xlu1 %2630  ;;  %v9268_v20 = vld [vmem:[#allocation110_spill] sm:$0xff] }
 0x564   : > { %v7309_v47 = vpop.permute.xlu0 %2634  ;;  %v7311_v55 = vpop.permute.xlu2 %2650 }
 0x565   : > { %9264 = vst [vmem:[#allocation108_spill] sm:$0xff] %v7311_v55 }
 0x568   : > { %2784 = vrot.lane.b32.xlu1 %v6797_v18, %s4046_s11 }
 0x56a   : > { %2788 = vrot.lane.b32.xlu0 %v6822_v14, %s4046_s11  ;;  %2786 = vrot.lane.b32.xlu2 %v6813_v41, %s4046_s11  ;;  %v7319_v28 = vpop.permute.xlu1 %2636 }
 0x56c   : > { %v7321_v40 = vpop.permute.xlu0 %2640  ;;  %v7323_v36 = vpop.permute.xlu2 %2688 }
 0x56d   : > { %9265 = vst [vmem:[#allocation119_spill] sm:$0xff] %v7323_v36 }
 0x570   : > { %2790 = vrot.lane.b32.xlu1 %v6819_v58, %s4046_s11 }
 0x572   : > { %2794 = vrot.lane.b32.xlu0 %v6845_v6, %s4046_s11  ;;  %2792 = vrot.lane.b32.xlu2 %v6836_v48, %s4046_s11  ;;  %v7331_v18 = vpop.permute.xlu1 %2642 }
 0x574   : > { %v7333_v33 = vpop.permute.xlu0 %2646  ;;  %v7335_v55 = vpop.permute.xlu2 %2694 }
 0x575   : > { %9266 = vst [vmem:[#allocation141_spill] sm:$0xff] %v7333_v33  ;;  %v9273_v33 = vld [vmem:[#allocation123_spill] sm:$0xff] }
 0x576   : > { %9267 = vst [vmem:[#allocation154_spill] sm:$0xff] %v7335_v55 }
 0x578   : > { %2796 = vrot.lane.b32.xlu1 %v9268_v20, %s4046_s11 }
 0x57a   : > { %2800 = vrot.lane.b32.xlu0 %v6869_v26, %s4046_s11  ;;  %2798 = vrot.lane.b32.xlu2 %v9269_v32, %s4046_s11  ;;  %v7343_v44 = vpop.permute.xlu1 %2648 }
 0x57b   : > { %9270 = vst [vmem:[#allocation53_spill] sm:$0xff] %v7343_v44  ;;  %v9277_v44 = vld [vmem:[#allocation32_spill] sm:$0xff] }
 0x57c   : > { %v7345_v36 = vpop.permute.xlu2 %2700  ;;  %v7347_v7 = vpop.permute.xlu0 %2652 }
 0x57d   : > { %9271 = vst [vmem:[#allocation177_spill] sm:$0xff] %v7345_v36 }
 0x57e   : > { %9272 = vst [vmem:[#allocation191_spill] sm:$0xff] %v7347_v7  ;;  %v9278_v7 = vld [vmem:[#allocation65_spill] sm:$0xff] }
 0x580   : > { %2802 = vrot.lane.b32.xlu1 %v6866_v46, %s4046_s11 }
 0x582   : > { %2806 = vrot.lane.b32.xlu0 %v6894_v0, %s4046_s11  ;;  %2804 = vrot.lane.b32.xlu2 %v9273_v33, %s4046_s11  ;;  %v7355_v55 = vpop.permute.xlu1 %2686 }
 0x583   : > { %9274 = vst [vmem:[#allocation198_spill] sm:$0xff] %v7355_v55 }
 0x584   : > { %v7357_v26 = vpop.permute.xlu2 %2706  ;;  %v7359_v32 = vpop.permute.xlu0 %2690 }
 0x585   : > { %9275 = vst [vmem:[#allocation206_spill] sm:$0xff] %v7357_v26  ;;  %v9281_v26 = vld [vmem:[#allocation158_spill] sm:$0xff] }
 0x586   : > { %9276 = vst [vmem:[#allocation47_spill] sm:$0xff] %v7359_v32 }
 0x588   : > { %2808 = vrot.lane.b32.xlu1 %v9277_v44, %s4046_s11 }
 0x58a   : > { %2812 = vrot.lane.b32.xlu0 %v6920_v54, %s4046_s11  ;;  %2810 = vrot.lane.b32.xlu2 %v9278_v7, %s4046_s11  ;;  %v7367_v36 = vpop.permute.xlu1 %2692 }
 0x58b   : > { %9279 = vst [vmem:[#allocation45_spill] sm:$0xff] %v7367_v36  ;;  %v9285_v36 = vld [vmem:[#allocation180_spill] sm:$0xff] }
 0x58c   : > { %v7369_v0 = vpop.permute.xlu2 %2712  ;;  %v7371_v33 = vpop.permute.xlu0 %2696 }
 0x58d   : > { %9280 = vst [vmem:[#allocation71_spill] sm:$0xff] %v7371_v33 }
 0x590   : > { %2814 = vrot.lane.b32.xlu1 %v6917_v15, %s4046_s11  ;;  %v9286_v15 = vld [vmem:[#allocation102_spill] sm:$0xff] }
 0x592   : > { %2818 = vrot.lane.b32.xlu0 %v6945_v56, %s4046_s11  ;;  %2816 = vrot.lane.b32.xlu2 %v9281_v26, %s4046_s11  ;;  %v7379_v44 = vpop.permute.xlu1 %2698 }
 0x593   : > { %9282 = vst [vmem:[#allocation96_spill] sm:$0xff] %v7379_v44 }
 0x594   : > { %v7381_v54 = vpop.permute.xlu2 %2718  ;;  %v7383_v7 = vpop.permute.xlu0 %2702 }
 0x595   : > { %9283 = vst [vmem:[#allocation97_spill] sm:$0xff] %v7381_v54 }
 0x596   : > { %9284 = vst [vmem:[#allocation143_spill] sm:$0xff] %v7383_v7  ;;  %v9289_v7 = vld [vmem:[#allocation150_spill] sm:$0xff] }
 0x598   : > { %2820 = vrot.lane.b32.xlu1 %v9285_v36, %s4046_s11 }
 0x59a   : > { %2824 = vrot.lane.b32.xlu0 %v6971_v57, %s4046_s11  ;;  %2822 = vrot.lane.b32.xlu2 %v9286_v15, %s4046_s11  ;;  %v7391_v33 = vpop.permute.xlu1 %2704 }
 0x59b   : > { %9287 = vst [vmem:[#allocation163_spill] sm:$0xff] %v7391_v33  ;;  %v9291_v33 = vld [vmem:[#allocation173_spill] sm:$0xff] }
 0x59c   : > { %v7393_v32 = vpop.permute.xlu2 %2724  ;;  %v7395_v26 = vpop.permute.xlu0 %2708 }
 0x59d   : > { %9288 = vst [vmem:[#allocation178_spill] sm:$0xff] %v7395_v26 }
 0x5a0   : > { %2826 = vrot.lane.b32.xlu1 %v6968_v12, %s4046_s11 }
 0x5a2   : > { %2830 = vrot.lane.b32.xlu0 %v6994_v60, %s4046_s11  ;;  %2828 = vrot.lane.b32.xlu2 %v9289_v7, %s4046_s11  ;;  %v7403_v44 = vpop.permute.xlu1 %2710 }
 0x5a3   : > { %9290 = vst [vmem:[#allocation207_spill] sm:$0xff] %v7403_v44 }
 0x5a4   : > { %v7405_v46 = vpop.permute.xlu2 %2730  ;;  %v2715_v55 = vpop.permute.xlu0 %2714 }
 0x5a8   : > { %2832 = vrot.lane.b32.xlu1 %v9291_v33, %s4046_s11  ;;  %v7429_v33 = vld [vmem:[#allocation3 + $0x30] sm:$0xff] }
 0x5a9   : > { %9294 = vst [vmem:[#allocation109_spill] sm:$0xff] %v7429_v33 }
 0x5aa   : > { %2836 = vrot.lane.b32.xlu0 %v7020_v52, %s4046_s11  ;;  %2834 = vrot.lane.b32.xlu2 %v7011_v23, %s4046_s11  ;;  %v7413_v26 = vpop.permute.xlu1 %2716 }
 0x5ac   : > { %v7415_v54 = vpop.permute.xlu2 %2736  ;;  %v7417_v2 = vpop.permute.xlu0 %2720 }
 0x5ad   : > { %9292 = vst [vmem:[#allocation55_spill] sm:$0xff] %v7417_v2 }
 0x5b0   : > { %2910 = vrot.lane.b32.xlu1 %v6663_v3, %s4047_s12 }
 0x5b2   : > { %3102 = vrot.lane.b32.xlu0 %v6945_v56, %s4049_s14  ;;  %3006 = vrot.lane.b32.xlu2 %v9242_v43, %s4048_s13  ;;  %v7425_v44 = vpop.permute.xlu1 %2722 }
 0x5b4   : > { %v7427_v52 = vpop.permute.xlu2 %2742  ;;  %v2727_v23 = vpop.permute.xlu0 %2726 }
 0x5b5   : > { %9293 = vst [vmem:[#allocation79_spill] sm:$0xff] %v7427_v52 }
 0x5b8   : > { %2878 = vrot.lane.b32.xlu1 %v7429_v33, %s4047_s12  ;;  %v7455_v33 = vld [vmem:[#allocation3 + $0x38] sm:$0xff] }
 0x5b9   : > { %9296 = vst [vmem:[#allocation62_spill] sm:$0xff] %v7455_v33 }
 0x5ba   : > { %2912 = vrot.lane.b32.xlu0 %v6626_v9, %s4047_s12  ;;  %2974 = vrot.lane.b32.xlu2 %v6451_v62, %s4048_s13  ;;  %v7437_v56 = vpop.permute.xlu1 %2728 }
 0x5bc   : > { %v7439_v2 = vpop.permute.xlu0 %2732  ;;  %v7441_v43 = vpop.permute.xlu2 %2748 }
 0x5bd   : > { %9295 = vst [vmem:[#allocation133_spill] sm:$0xff] %v7441_v43 }
 0x5c0   : > { %3070 = vrot.lane.b32.xlu1 %v6813_v41, %s4049_s14 }
 0x5c2   : > { %3104 = vrot.lane.b32.xlu0 %v9285_v36, %s4049_s14  ;;  %3008 = vrot.lane.b32.xlu2 %v9243_v35, %s4048_s13  ;;  %v7449_v52 = vpop.permute.xlu1 %2734 }
 0x5c4   : > { %v7451_v9 = vpop.permute.xlu0 %2738  ;;  %v7453_v62 = vpop.permute.xlu2 %2786 }
 0x5c8   : > { %2880 = vrot.lane.b32.xlu1 %v7455_v33, %s4047_s12  ;;  %v7481_v33 = vld [vmem:[#allocation3 + $0x48] sm:$0xff] }
 0x5c9   : > { %9301 = vst [vmem:[#allocation111_spill] sm:$0xff] %v7481_v33 }
 0x5ca   : > { %2914 = vrot.lane.b32.xlu0 %v6697_v13, %s4047_s12  ;;  %2976 = vrot.lane.b32.xlu2 %v6448_v8, %s4048_s13  ;;  %v7463_v41 = vpop.permute.xlu1 %2740 }
 0x5cc   : > { %v7465_v35 = vpop.permute.xlu0 %2744  ;;  %v7467_v36 = vpop.permute.xlu2 %2792 }
 0x5cd   : > { %9297 = vst [vmem:[#allocation193_spill] sm:$0xff] %v7465_v35 }
 0x5ce   : > { %9298 = vst [vmem:[#allocation202_spill] sm:$0xff] %v7467_v36 }
 0x5d0   : > { %3072 = vrot.lane.b32.xlu1 %v6822_v14, %s4049_s14 }
 0x5d2   : > { %3106 = vrot.lane.b32.xlu0 %v9286_v15, %s4049_s14  ;;  %3010 = vrot.lane.b32.xlu2 %v9244_v50, %s4048_s13  ;;  %v7475_v43 = vpop.permute.xlu1 %2746 }
 0x5d3   : > { %9299 = vst [vmem:[#allocation56_spill] sm:$0xff] %v7475_v43  ;;  %v9303_v43 = vld [vmem:[#allocation135_spill] sm:$0xff] }
 0x5d4   : > { %v7477_v13 = vpop.permute.xlu0 %2782  ;;  %v7479_v8 = vpop.permute.xlu2 %2798  ;;  %v3180_v35 = vsel %vm279_vm0, %v6586_v17, %v9303_v43 }
 0x5d5   : > { %9300 = vst [vmem:[#allocation93_spill] sm:$0xff] %v7479_v8  ;;  %v3212_v8 = vsel %vm1523_vm6, %v3180_v35, %v7104_v27  ;;  %v7516_v27 = vld [vmem:[#allocation3 + $0x50] sm:$0xff] }
 0x5d8   : > { %2882 = vrot.lane.b32.xlu1 %v7481_v33, %s4047_s12 }
 0x5da   : > { %2916 = vrot.lane.b32.xlu0 %v6687_v24, %s4047_s12  ;;  %2978 = vrot.lane.b32.xlu2 %v9214_v59, %s4048_s13  ;;  %v7489_v14 = vpop.permute.xlu1 %2784 }
 0x5dc   : > { %v7491_v15 = vpop.permute.xlu0 %2788  ;;  %v7493_v50 = vpop.permute.xlu2 %2804 }
 0x5dd   : > { %9302 = vst [vmem:[#allocation24_spill] sm:$0xff] %v7493_v50  ;;  %v3244_v50 = vsel %vm1556_vm7, %v3212_v8, %v7272_v45  ;;  %v7558_v8 = vld [vmem:[#allocation3 + $0x60] sm:$0xff] }
 0x5e0   : > { %3074 = vrot.lane.b32.xlu1 %v6819_v58, %s4049_s14  ;;  %v3276_v58 = vsel %vm1589_vm9, %v3244_v50, %v2715_v55  ;;  %v3186_v55 = vsel %vm279_vm0, %v6663_v3, %v7027_v61  ;;  %v7551_v61 = vld [vmem:[#allocation3 + $0x98] sm:$0xff] }
 0x5e1   : > { %v3218_v43 = vsel %vm1523_vm6, %v3186_v55, %v7128_v25  ;;  %v9304_v25 = vld [vmem:[#allocation81_spill] sm:$0xff] }
 0x5e2   : > { %3108 = vrot.lane.b32.xlu0 %v6971_v57, %s4049_s14  ;;  %3012 = vrot.lane.b32.xlu2 %v9248_v10, %s4048_s13  ;;  %v7506_v59 = vpop.permute.xlu1 %2790 }
 0x5e4   : > { %v7511_v33 = vpop.permute.xlu0 %2794  ;;  %v2811_v36 = vpop.permute.xlu2 %2810 }
 0x5e5   : > { %v7514_v17 = vsel %vm1622_vm8, %v3276_v58, %v2811_v36  ;;  %v3189_v58 = vsel %vm279_vm0, %v6687_v24, %v7042_v37 }
 0x5e8   : > { %2884 = vrot.lane.b32.xlu1 %v7516_v27, %s4047_s12 }
 0x5ea   : > { %2918 = vrot.lane.b32.xlu0 %v6667_v42, %s4047_s12  ;;  %2980 = vrot.lane.b32.xlu2 %v9215_v53, %s4048_s13  ;;  %v7524_v57 = vpop.permute.xlu1 %2796  ;;  %v3250_v53 = vsel %vm1556_vm7, %v3218_v43, %v7307_v4  ;;  %v9305_v4 = vld [vmem:[#allocation113_spill] sm:$0xff]  ;;  %v3221_v43 = vsel %vm1523_vm6, %v3189_v58, %v7140_v22 }
 0x5eb   : > { %v3253_v37 = vsel %vm1556_vm7, %v3221_v43, %v7319_v28  ;;  %v3425_v28 = vld [vmem:[%s8416_s4 + $0x18] sm:$0xff] }
 0x5ec   : > { %v7526_v10 = vpop.permute.xlu0 %2800  ;;  %v7528_v45 = vpop.permute.xlu2 %2816 }
 0x5f0   : > { %3076 = vrot.lane.b32.xlu1 %v6836_v48, %s4049_s14  ;;  %v3282_v48 = vsel %vm1589_vm9, %v3250_v53, %v2727_v23  ;;  %v7562_v23 = vld [vmem:[#allocation3 + $0xb0] sm:$0xff] }
 0x5f1   : > { %v3181_v50 = vsel %vm279_vm0, %v7562_v23, %v9305_v4 }
 0x5f2   : > { %3110 = vrot.lane.b32.xlu0 %v6968_v12, %s4049_s14  ;;  %3014 = vrot.lane.b32.xlu2 %v9249_v39, %s4048_s13  ;;  %v7541_v42 = vpop.permute.xlu1 %2802  ;;  %v3179_v12 = vsel %vm279_vm0, %v7551_v61, %v9304_v25 }
 0x5f3   : > { %v3211_v39 = vsel %vm1523_vm6, %v3179_v12, %v7136_v31  ;;  %v3213_v31 = vsel %vm1523_vm6, %v3181_v50, %v7138_v1  ;;  %v9306_v50 = vld [vmem:[#allocation192_spill] sm:$0xff] }
 0x5f4   : > { %v7546_v35 = vpop.permute.xlu0 %2806  ;;  %v2823_v36 = vpop.permute.xlu2 %2822  ;;  %v3243_v55 = vsel %vm1556_vm7, %v3211_v39, %v7262_v19  ;;  %v3245_v24 = vsel %vm1556_vm7, %v3213_v31, %v7240_v21  ;;  %v3426_v21 = vld [vmem:[%s8416_s4 + $0x20] sm:$0xf]  ;;  %v4013_v31 = vld [vmem:[#allocation3 + $0xf8] sm:$0xff] }
 0x5f5   : > { %v7549_v3 = vsel %vm1622_vm8, %v3282_v48, %v2823_v36  ;;  %v3275_v53 = vsel %vm1589_vm9, %v3243_v55, %v7369_v0  ;;  %v3277_v22 = vsel %vm1589_vm9, %v3245_v24, %v7413_v26  ;;  %v3285_v0 = vsel %vm1589_vm9, %v3253_v37, %v7439_v2  ;;  %3946 = vmatpush.msk.msra.mxu3 %vm1856_vm5, %v3426_v21  ;;  %v3424_v26 = vld [vmem:[%s8416_s4 + $0x10] sm:$0xff]  ;;  %v7645_v55 = vld [vmem:[#allocation3 + $0x68] sm:$0xff] }
 0x5f6   : > { %3904 = vmatpush.msk.msra.mxu1 %vm1856_vm5, %v3426_v21  ;;  %v3192_v2 = vsel %vm279_vm0, %v6724_v38, %v7054_v63  ;;  %v3423_v63 = vld [vmem:[%s8416_s4 + $0x8] sm:$0xff]  ;;  %v3187_v43 = vsel %vm279_vm0, %v4013_v31, %v7031_v5 }
 0x5f7   : > { %3947 = vmatpush.msra.mxu3 %v3425_v28  ;;  %v3224_v25 = vsel %vm1523_vm6, %v3192_v2, %v7152_v29  ;;  %v4015_v2 = vld [vmem:[#allocation3 + $0x120] sm:$0xff] }
 0x5f8   : > { %2886 = vrot.lane.b32.xlu1 %v7558_v8, %s4047_s12  ;;  %3538 = vmatpush.msra.mxu1 %v3425_v28  ;;  %v3256_v12 = vsel %vm1556_vm7, %v3224_v25, %v7331_v18  ;;  %v7638_v18 = vld [vmem:[#allocation3 + $0xe0] sm:$0xff]  ;;  %v9310_v28 = vld [vmem:[#allocation91_spill] sm:$0xff]  ;;  %v9311_v25 = vld [vmem:[#allocation69_spill] sm:$0xff] }
 0x5f9   : > { %3948 = vmatpush.msra.mxu3 %v3424_v26  ;;  %v3288_v29 = vsel %vm1589_vm9, %v3256_v12, %v7451_v9  ;;  %v3185_v58 = vsel %vm279_vm0, %v7638_v18, %v9306_v50  ;;  %v3190_v12 = vsel %vm279_vm0, %v4015_v2, %v9311_v25  ;;  %v9314_v50 = vld [vmem:[#allocation201_spill] sm:$0xff] }
 0x5fa   : > { %2920 = vrot.lane.b32.xlu0 %v6661_v34, %s4047_s12  ;;  %2982 = vrot.lane.b32.xlu2 %v9219_v11, %s4048_s13  ;;  %v2809_v48 = vpop.permute.xlu1 %2808  ;;  %v3217_v9 = vsel %vm1523_vm6, %v3185_v58, %v7164_v51  ;;  %v9307_v51 = vld [vmem:[#allocation66_spill] sm:$0xff] }
 0x5fb   : > { %v7587_v19 = vsel %vm1622_vm8, %v3275_v53, %v2809_v48  ;;  %3539 = vmatpush.msra.mxu1 %v3424_v26  ;;  %3949 = vmatpush.msra.mxu3 %v3423_v63  ;;  %v3249_v53 = vsel %vm1556_vm7, %v3217_v9, %v7289_v30  ;;  %v3219_v48 = vsel %vm1523_vm6, %v3187_v43, %v7166_v16 }
 0x5fc   : > { %v2813_v34 = vpop.permute.xlu0 %2812  ;;  %v2829_v1 = vpop.permute.xlu2 %2828  ;;  %v3281_v24 = vsel %vm1589_vm9, %v3249_v53, %v7393_v32  ;;  %v9315_v53 = vld [vmem:[#allocation88_spill] sm:$0xff] }
 0x5fd   : > { %v7594_v11 = vsel %vm1622_vm8, %v3277_v22, %v2813_v34  ;;  %v7597_v36 = vsel %vm1622_vm8, %v3285_v0, %v2829_v1  ;;  %3540 = vmatpush.msra.mxu1 %v3423_v63  ;;  %v9308_v22 = vld [vmem:[#allocation189_spill] sm:$0xff]  ;;  %v4014_v1 = vld [vmem:[#allocation3 + $0x108] sm:$0xff]  ;;  %v9312_v63 = vld [vmem:[#allocation94_spill] sm:$0xff] }
 0x5fe   : > { %v3251_v0 = vsel %vm1556_vm7, %v3219_v48, %v9308_v22  ;;  %v4018_v22 = vld [vmem:[#allocation3 + $0x140] sm:$0xff] }
 0x5ff   : > { %v3283_v30 = vsel %vm1589_vm9, %v3251_v0, %v7437_v56 }
 0x600   : > { %3078 = vrot.lane.b32.xlu1 %v6845_v6, %s4049_s14 }
 0x602   : > { %3112 = vrot.lane.b32.xlu0 %v9289_v7, %s4049_s14  ;;  %3016 = vrot.lane.b32.xlu2 %v9250_v49, %s4048_s13  ;;  %v7621_v6 = vpop.permute.xlu1 %2814  ;;  %v3422_v49 = vld [vmem:[%s8416_s4] sm:$0xff] }
 0x603   : > { %3950 = vmatpush.msra.mxu3 %v3422_v49  ;;  %3541 = vmatpush.msra.mxu1 %v3422_v49  ;;  %v9313_v49 = vld [vmem:[#allocation61_spill] sm:$0xff] }
 0x604   : > { %v7630_v39 = vpop.permute.xlu0 %2818  ;;  %v2835_v7 = vpop.permute.xlu2 %2834 }
 0x605   : > { %v7636_v4 = vsel %vm1622_vm8, %v3288_v29, %v2835_v7  ;;  %v3222_v29 = vsel %vm1523_vm6, %v3190_v12, %v9312_v63 }
 0x606   : > { %v3254_v58 = vsel %vm1556_vm7, %v3222_v29, %v9314_v50  ;;  %v9321_v29 = vld [vmem:[#allocation148_spill] sm:$0xff] }
 0x607   : > { %v9323_v50 = vld [vmem:[#allocation200_spill] sm:$0xff] }
 0x608   : > { %2888 = vrot.lane.b32.xlu1 %v7645_v55, %s4047_s12 }
 0x60a   : > { %2922 = vrot.lane.b32.xlu0 %v6724_v38, %s4047_s12  ;;  %2984 = vrot.lane.b32.xlu2 %v9307_v51, %s4048_s13  ;;  %v2821_v37 = vpop.permute.xlu1 %2820  ;;  %v9309_v38 = vld [vmem:[#allocation149_spill] sm:$0xff] }
 0x60b   : > { %v7664_v5 = vsel %vm1622_vm8, %v3281_v24, %v2821_v37  ;;  %v3188_v21 = vsel %vm279_vm0, %v4014_v1, %v9309_v38  ;;  %v9316_v24 = vld [vmem:[#allocation140_spill] sm:$0xff]  ;;  %v7705_v37 = vld [vmem:[#allocation3 + $0x78] sm:$0xff] }
 0x60c   : > { %v2825_v16 = vpop.permute.xlu0 %2824  ;;  %v3007_v34 = vpop.permute.xlu2 %3006  ;;  %v3220_v26 = vsel %vm1523_vm6, %v3188_v21, %v9310_v28  ;;  %v9319_v21 = vld [vmem:[#allocation115_spill] sm:$0xff] }
 0x60d   : > { %v7669_v32 = vsel %vm1622_vm8, %v3283_v30, %v2825_v16  ;;  %v3252_v56 = vsel %vm1556_vm7, %v3220_v26, %v7309_v47  ;;  %v3286_v47 = vsel %vm1589_vm9, %v3254_v58, %v7449_v52  ;;  %v9317_v52 = vld [vmem:[#allocation127_spill] sm:$0xff]  ;;  %v9318_v16 = vld [vmem:[#allocation144_spill] sm:$0xff] }
 0x60e   : > { %v3284_v7 = vsel %vm1589_vm9, %v3252_v56, %v7405_v46  ;;  %v3193_v0 = vsel %vm279_vm0, %v4018_v22, %v9317_v52  ;;  %v9320_v26 = vld [vmem:[#allocation64_spill] sm:$0xff] }
 0x60f   : > { %v3225_v1 = vsel %vm1523_vm6, %v3193_v0, %v9318_v16  ;;  %v7755_v16 = vld [vmem:[#allocation3 + $0x80] sm:$0xff] }
 0x610   : > { %3080 = vrot.lane.b32.xlu1 %v9268_v20, %s4049_s14  ;;  %v3257_v2 = vsel %vm1556_vm7, %v3225_v1, %v9320_v26  ;;  %v9328_v1 = vld [vmem:[#allocation98_spill] sm:$0xff]  ;;  %v9330_v26 = vld [vmem:[#allocation168_spill] sm:$0xff] }
 0x612   : > { %3114 = vrot.lane.b32.xlu0 %v6994_v60, %s4049_s14  ;;  %3018 = vrot.lane.b32.xlu2 %v9313_v49, %s4048_s13  ;;  %v2827_v20 = vpop.permute.xlu1 %2826  ;;  %v4016_v60 = vld [vmem:[#allocation3 + $0x128] sm:$0xff]  ;;  %v9322_v49 = vld [vmem:[#allocation204_spill] sm:$0xff] }
 0x613   : > { %v7692_v9 = vsel %vm1622_vm8, %v3284_v7, %v2827_v20  ;;  %v3191_v48 = vsel %vm279_vm0, %v4016_v60, %v9315_v53  ;;  %v9326_v53 = vld [vmem:[#allocation173_spill] sm:$0xff] }
 0x614   : > { %v2831_v31 = vpop.permute.xlu0 %2830  ;;  %v7696_v43 = vpop.permute.xlu2 %2974  ;;  %v3223_v51 = vsel %vm1523_vm6, %v3191_v48, %v9316_v24  ;;  %v9327_v48 = vld [vmem:[#allocation142_spill] sm:$0xff] }
 0x615   : > { %v7699_v46 = vsel %vm1622_vm8, %v3286_v47, %v2831_v31  ;;  %v3255_v30 = vsel %vm1556_vm7, %v3223_v51, %v7321_v40  ;;  %v3289_v40 = vsel %vm1589_vm9, %v3257_v2, %v7463_v41  ;;  %v9324_v47 = vld [vmem:[#allocation146_spill] sm:$0xff]  ;;  %v9325_v41 = vld [vmem:[#allocation97_spill] sm:$0xff] }
 0x616   : > { %v3287_v38 = vsel %vm1589_vm9, %v3255_v30, %v7415_v54  ;;  %v7730_v54 = vld [vmem:[#allocation3 + $0xc0] sm:$0xff] }
 0x617   : > { %v3182_v7 = vsel %vm279_vm0, %v7730_v54, %v9321_v29 }
 0x618   : > { %2890 = vrot.lane.b32.xlu1 %v7705_v37, %s4047_s12  ;;  %v3214_v20 = vsel %vm1523_vm6, %v3182_v7, %v9322_v49  ;;  %v9332_v7 = vld [vmem:[#allocation129_spill] sm:$0xff] }
 0x619   : > { %v3246_v58 = vsel %vm1556_vm7, %v3214_v20, %v9323_v50 }
 0x61a   : > { %2924 = vrot.lane.b32.xlu0 %v4018_v22, %s4047_s12  ;;  %2986 = vrot.lane.b32.xlu2 %v9319_v21, %s4048_s13  ;;  %v2833_v28 = vpop.permute.xlu1 %2832  ;;  %v3278_v31 = vsel %vm1589_vm9, %v3246_v58, %v9325_v41  ;;  %v7761_v21 = vld [vmem:[#allocation3 + $0x150] sm:$0xff]  ;;  %v9333_v58 = vld [vmem:[#allocation87_spill] sm:$0xff]  ;;  %v9334_v41 = vld [vmem:[#allocation198_spill] sm:$0xff] }
 0x61b   : > { %v7723_v25 = vsel %vm1622_vm8, %v3287_v38, %v2833_v28  ;;  %v3310_v60 = vsel %vm1622_vm8, %v3278_v31, %v7621_v6  ;;  %v4021_v6 = vld [vmem:[#allocation3] sm:$0xff] }
 0x61c   : > { %v2837_v12 = vpop.permute.xlu0 %2836  ;;  %v3009_v56 = vpop.permute.xlu2 %3008  ;;  %v3166_v38 = vsel %vm279_vm0, %v4021_v6, %v9328_v1  ;;  %v9338_v1 = vld [vmem:[#allocation126_spill] sm:$0xff] }
 0x61d   : > { %v7728_v63 = vsel %vm1622_vm8, %v3289_v40, %v2837_v12  ;;  %v3198_v2 = vsel %vm1523_vm6, %v3166_v38, %v9330_v26  ;;  %v7769_v40 = vld [vmem:[#allocation3 + $0xc8] sm:$0xff]  ;;  %v9331_v12 = vld [vmem:[#allocation86_spill] sm:$0xff] }
 0x61e   : > { %v3183_v29 = vsel %vm279_vm0, %v7769_v40, %v9331_v12  ;;  %v3230_v49 = vsel %vm1556_vm7, %v3198_v2, %v9332_v7  ;;  %v9339_v38 = vld [vmem:[#allocation122_spill] sm:$0xff]  ;;  %v4025_v7 = vld [vmem:[#allocation3 + $0x8] sm:$0xff] }
 0x61f   : > { %v3262_v31 = vsel %vm1589_vm9, %v3230_v49, %v9334_v41  ;;  %v9340_v49 = vld [vmem:[#allocation78_spill] sm:$0xff] }
 0x620   : > { %3082 = vrot.lane.b32.xlu1 %v9324_v47, %s4049_s14  ;;  %v3215_v47 = vsel %vm1523_vm6, %v3183_v29, %v9333_v58  ;;  %v7803_v29 = vld [vmem:[#allocation3 + $0x90] sm:$0xff] }
 0x622   : > { %3116 = vrot.lane.b32.xlu0 %v9326_v53, %s4049_s14  ;;  %3020 = vrot.lane.b32.xlu2 %v9327_v48, %s4048_s13  ;;  %v2911_v24 = vpop.permute.xlu1 %2910  ;;  %v3294_v48 = vsel %vm1622_vm8, %v3262_v31, %v7477_v13  ;;  %v7817_v31 = vld [vmem:[#allocation3 + $0xd8] sm:$0xff] }
 0x623   : > { %v3342_v51 = vsel %vm1655_vm10, %v3310_v60, %v2911_v24  ;;  %v9335_v60 = vld [vmem:[#allocation46_spill] sm:$0xff]  ;;  %v9336_v24 = vld [vmem:[#allocation55_spill] sm:$0xff] }
 0x624   : > { %v3103_v22 = vpop.permute.xlu0 %3102  ;;  %v7750_v52 = vpop.permute.xlu2 %2976  ;;  %v3374_v0 = vsel %vm1688_vm12, %v3342_v51, %v3007_v34  ;;  %v9329_v34 = vld [vmem:[#allocation73_spill] sm:$0xff]  ;;  %v3247_v53 = vsel %vm1556_vm7, %v3215_v47, %v9335_v60  ;;  %v9343_v60 = vld [vmem:[#allocation182_spill] sm:$0xff] }
 0x625   : > { %v3406_v30 = vsel %vm1721_vm11, %v3374_v0, %v3103_v22  ;;  %v3279_v51 = vsel %vm1589_vm9, %v3247_v53, %v9336_v24  ;;  %v9342_v47 = vld [vmem:[#allocation157_spill] sm:$0xff]  ;;  %v3184_v53 = vsel %vm279_vm0, %v7817_v31, %v9343_v60 }
 0x626   : > { %3921 = vmatmul.msk.f32.vlgmr.msra.gmra.mxu3 %vm1759_vm13, %v3406_v30  ;;  %v3311_v0 = vsel %vm1622_vm8, %v3279_v51, %v7528_v45  ;;  %v9337_v30 = vld [vmem:[#allocation179_spill] sm:$0xff]  ;;  %v4028_v60 = vld [vmem:[#allocation3 + $0x18] sm:$0xff] }
 0x628   : > { %2892 = vrot.lane.b32.xlu1 %v7755_v16, %s4047_s12 }
 0x62a   : > { %2926 = vrot.lane.b32.xlu0 %v7761_v21, %s4047_s12  ;;  %2988 = vrot.lane.b32.xlu2 %v9329_v34, %s4048_s13  ;;  %v2879_v28 = vpop.permute.xlu1 %2878 }
 0x62b   : > { %v3326_v22 = vsel %vm1655_vm10, %v3294_v48, %v2879_v28  ;;  %v9344_v48 = vld [vmem:[#allocation43_spill] sm:$0xff] }
 0x62c   : > { %v2913_v20 = vpop.permute.xlu0 %2912  ;;  %v3011_v50 = vpop.permute.xlu2 %3010  ;;  %v3358_v34 = vsel %vm1688_vm12, %v3326_v22, %v7696_v43  ;;  %v3167_v43 = vsel %vm279_vm0, %v4025_v7, %v9340_v49  ;;  %v9349_v49 = vld [vmem:[#allocation37_spill] sm:$0xff] }
 0x62d   : > { %v3343_v6 = vsel %vm1655_vm10, %v3311_v0, %v2913_v20  ;;  %v7809_v20 = vld [vmem:[#allocation3 + $0x158] sm:$0xff]  ;;  %v3199_v41 = vsel %vm1523_vm6, %v3167_v43, %v9342_v47  ;;  %v9345_v0 = vld [vmem:[#allocation44_spill] sm:$0xff] }
 0x62e   : > { %v3375_v45 = vsel %vm1688_vm12, %v3343_v6, %v3009_v56  ;;  %v9341_v56 = vld [vmem:[#allocation70_spill] sm:$0xff]  ;;  %v3231_v24 = vsel %vm1556_vm7, %v3199_v41, %v9344_v48  ;;  %v9346_v6 = vld [vmem:[#allocation119_spill] sm:$0xff]  ;;  %v9350_v43 = vld [vmem:[#allocation184_spill] sm:$0xff] }
 0x630   : > { %3084 = vrot.lane.b32.xlu1 %v9337_v30, %s4049_s14  ;;  %v3216_v30 = vsel %vm1523_vm6, %v3184_v53, %v9345_v0  ;;  %v9351_v53 = vld [vmem:[#allocation80_spill] sm:$0xff] }
 0x631   : > { %v3168_v48 = vsel %vm279_vm0, %v4028_v60, %v9351_v53  ;;  %v9360_v53 = vld [vmem:[#allocation117_spill] sm:$0xff] }
 0x632   : > { %3118 = vrot.lane.b32.xlu0 %v9338_v1, %s4049_s14  ;;  %3022 = vrot.lane.b32.xlu2 %v9339_v38, %s4048_s13  ;;  %v3071_v13 = vpop.permute.xlu1 %3070  ;;  %v3263_v1 = vsel %vm1589_vm9, %v3231_v24, %v9346_v6  ;;  %v9347_v38 = vld [vmem:[#allocation162_spill] sm:$0xff]  ;;  %v9352_v24 = vld [vmem:[#allocation139_spill] sm:$0xff] }
 0x633   : > { %v3390_v28 = vsel %vm1721_vm11, %v3358_v34, %v3071_v13  ;;  %v3248_v13 = vsel %vm1556_vm7, %v3216_v30, %v9347_v38  ;;  %v3295_v34 = vsel %vm1622_vm8, %v3263_v1, %v7489_v14  ;;  %v9354_v30 = vld [vmem:[#allocation68_spill] sm:$0xff]  ;;  %v9355_v38 = vld [vmem:[#allocation47_spill] sm:$0xff] }
 0x634   : > { %v3105_v26 = vpop.permute.xlu0 %3104  ;;  %v2979_v2 = vpop.permute.xlu2 %2978  ;;  %3905 = vmatmul.msk.f32.vlgmr.msra.gmra.mxu1 %vm1759_vm13, %v3390_v28  ;;  %v3280_v28 = vsel %vm1589_vm9, %v3248_v13, %v7425_v44 }
 0x635   : > { %v3407_v12 = vsel %vm1721_vm11, %v3375_v45, %v3105_v26  ;;  %v3312_v45 = vsel %vm1622_vm8, %v3280_v28, %v7630_v39 }
 0x636   : > { %3922 = vmatmul.msk.f32.gmra.mxu3 %vm1759_vm13, %v3407_v12  ;;  %v9348_v12 = vld [vmem:[#allocation76_spill] sm:$0xff] }
 0x638   : > { %2894 = vrot.lane.b32.xlu1 %v7803_v29, %s4047_s12 }
 0x63a   : > { %2928 = vrot.lane.b32.xlu0 %v7809_v20, %s4047_s12  ;;  %2990 = vrot.lane.b32.xlu2 %v9341_v56, %s4048_s13  ;;  %v2881_v58 = vpop.permute.xlu1 %2880 }
 0x63b   : > { %v3327_v26 = vsel %vm1655_vm10, %v3295_v34, %v2881_v58 }
 0x63c   : > { %v2915_v51 = vpop.permute.xlu0 %2914  ;;  %v3013_v22 = vpop.permute.xlu2 %3012  ;;  %v3359_v44 = vsel %vm1688_vm12, %v3327_v26, %v7750_v52  ;;  %v7855_v52 = vld [vmem:[#allocation3 + $0x168] sm:$0xff] }
 0x63d   : > { %v3344_v7 = vsel %vm1655_vm10, %v3312_v45, %v2915_v51  ;;  %v9353_v51 = vld [vmem:[#allocation103_spill] sm:$0xff] }
 0x63e   : > { %v3376_v39 = vsel %vm1688_vm12, %v3344_v7, %v3011_v50  ;;  %v3200_v0 = vsel %vm1523_vm6, %v3168_v48, %v9353_v51  ;;  %v9356_v26 = vld [vmem:[#allocation123_spill] sm:$0xff]  ;;  %v9358_v7 = vld [vmem:[#allocation145_spill] sm:$0xff] }
 0x63f   : > { %v3232_v6 = vsel %vm1556_vm7, %v3200_v0, %v9354_v30  ;;  %v9361_v48 = vld [vmem:[#allocation89_spill] sm:$0xff] }
 0x640   : > { %3086 = vrot.lane.b32.xlu1 %v9348_v12, %s4049_s14  ;;  %v3264_v13 = vsel %vm1589_vm9, %v3232_v6, %v9355_v38  ;;  %v9357_v12 = vld [vmem:[#allocation137_spill] sm:$0xff] }
 0x641   : > { %v3296_v34 = vsel %vm1622_vm8, %v3264_v13, %v7453_v62  ;;  %v9363_v6 = vld [vmem:[#allocation45_spill] sm:$0xff] }
 0x642   : > { %3120 = vrot.lane.b32.xlu0 %v9349_v49, %s4049_s14  ;;  %3024 = vrot.lane.b32.xlu2 %v9350_v43, %s4048_s13  ;;  %v3073_v14 = vpop.permute.xlu1 %3072 }
 0x643   : > { %v3391_v56 = vsel %vm1721_vm11, %v3359_v44, %v3073_v14 }
 0x644   : > { %v3107_v58 = vpop.permute.xlu0 %3106  ;;  %v2981_v47 = vpop.permute.xlu2 %2980  ;;  %3906 = vmatmul.msk.f32.gmra.mxu1 %vm1759_vm13, %v3391_v56 }
 0x645   : > { %v3408_v41 = vsel %vm1721_vm11, %v3376_v39, %v3107_v58  ;;  %v4031_v39 = vld [vmem:[#allocation3 + $0x20] sm:$0xff] }
 0x646   : > { %3923 = vmatmul.msk.f32.gmra.mxu3 %vm1759_vm13, %v3408_v41  ;;  %v9359_v41 = vld [vmem:[#allocation147_spill] sm:$0xff] }
 0x647   : > { %v3169_v60 = vsel %vm279_vm0, %v4031_v39, %v9359_v41  ;;  %v9370_v41 = vld [vmem:[#allocation116_spill] sm:$0xff] }
 0x648   : > { %2896 = vrot.lane.b32.xlu1 %v7551_v61, %s4047_s12 }
 0x64a   : > { %2930 = vrot.lane.b32.xlu0 %v7855_v52, %s4047_s12  ;;  %2992 = vrot.lane.b32.xlu2 %v9352_v24, %s4048_s13  ;;  %v2883_v50 = vpop.permute.xlu1 %2882  ;;  %v3201_v24 = vsel %vm1523_vm6, %v3169_v60, %v9361_v48  ;;  %v9371_v60 = vld [vmem:[#allocation74_spill] sm:$0xff] }
 0x64b   : > { %v3328_v28 = vsel %vm1655_vm10, %v3296_v34, %v2883_v50  ;;  %v9362_v50 = vld [vmem:[#allocation58_spill] sm:$0xff]  ;;  %v9364_v34 = vld [vmem:[#allocation155_spill] sm:$0xff] }
 0x64c   : > { %v2917_v61 = vpop.permute.xlu0 %2916  ;;  %v3015_v1 = vpop.permute.xlu2 %3014  ;;  %v3360_v43 = vsel %vm1688_vm12, %v3328_v28, %v2979_v2  ;;  %v7887_v2 = vld [vmem:[#allocation3 + $0x170] sm:$0xff]  ;;  %v3233_v51 = vsel %vm1556_vm7, %v3201_v24, %v9362_v50 }
 0x64d   : > { %v3345_v45 = vsel %vm1655_vm10, %v7664_v5, %v2917_v61  ;;  %v4030_v5 = vld [vmem:[#allocation3 + $0xa8] sm:$0xff]  ;;  %v3265_v61 = vsel %vm1589_vm9, %v3233_v51, %v9363_v6  ;;  %v9374_v6 = vld [vmem:[#allocation32_spill] sm:$0xff] }
 0x64e   : > { %v3377_v56 = vsel %vm1688_vm12, %v3345_v45, %v3013_v22  ;;  %v3297_v38 = vsel %vm1622_vm8, %v3265_v61, %v7491_v15  ;;  %v9366_v45 = vld [vmem:[#allocation164_spill] sm:$0xff]  ;;  %v9375_v61 = vld [vmem:[#allocation90_spill] sm:$0xff] }
 0x650   : > { %3088 = vrot.lane.b32.xlu1 %v9356_v26, %s4049_s14  ;;  %v9365_v26 = vld [vmem:[#allocation174_spill] sm:$0xff] }
 0x652   : > { %3122 = vrot.lane.b32.xlu0 %v9357_v12, %s4049_s14  ;;  %3026 = vrot.lane.b32.xlu2 %v9358_v7, %s4048_s13  ;;  %v3075_v49 = vpop.permute.xlu1 %3074 }
 0x653   : > { %v3392_v14 = vsel %vm1721_vm11, %v3360_v43, %v3075_v49 }
 0x654   : > { %v3109_v62 = vpop.permute.xlu0 %3108  ;;  %v2983_v44 = vpop.permute.xlu2 %2982  ;;  %3907 = vmatmul.msk.f32.gmra.mxu1 %vm1759_vm13, %v3392_v14 }
 0x655   : > { %v3409_v58 = vsel %vm1721_vm11, %v3377_v56, %v3109_v62 }
 0x656   : > { %3924 = vmatmul.msk.f32.gmra.mxu3 %vm1759_vm13, %v3409_v58  ;;  %v9368_v58 = vld [vmem:[#allocation109_spill] sm:$0xff] }
 0x658   : > { %2898 = vrot.lane.b32.xlu1 %v4030_v5, %s4047_s12 }
 0x65a   : > { %2932 = vrot.lane.b32.xlu0 %v7887_v2, %s4047_s12  ;;  %2994 = vrot.lane.b32.xlu2 %v9360_v53, %s4048_s13  ;;  %v2885_v22 = vpop.permute.xlu1 %2884 }
 0x65b   : > { %v3329_v13 = vsel %vm1655_vm10, %v3297_v38, %v2885_v22 }
 0x65c   : > { %v2919_v0 = vpop.permute.xlu0 %2918  ;;  %v3017_v30 = vpop.permute.xlu2 %3016  ;;  %v3361_v49 = vsel %vm1688_vm12, %v3329_v13, %v2981_v47  ;;  %v9369_v47 = vld [vmem:[#allocation72_spill] sm:$0xff] }
 0x65d   : > { %v3346_v28 = vsel %vm1655_vm10, %v7549_v3, %v2919_v0  ;;  %v9367_v3 = vld [vmem:[#allocation188_spill] sm:$0xff]  ;;  %v9373_v0 = vld [vmem:[#allocation42_spill] sm:$0xff] }
 0x65e   : > { %v3378_v62 = vsel %vm1688_vm12, %v3346_v28, %v3015_v1  ;;  %v3170_v5 = vsel %vm279_vm0, %v9368_v58, %v9367_v3  ;;  %v9379_v3 = vld [vmem:[#allocation151_spill] sm:$0xff] }
 0x65f   : > { %v3202_v1 = vsel %vm1523_vm6, %v3170_v5, %v9370_v41  ;;  %v9380_v5 = vld [vmem:[#allocation106_spill] sm:$0xff] }
 0x660   : > { %3090 = vrot.lane.b32.xlu1 %v9364_v34, %s4049_s14  ;;  %v3234_v53 = vsel %vm1556_vm7, %v3202_v1, %v9371_v60  ;;  %v9376_v34 = vld [vmem:[#allocation63_spill] sm:$0xff] }
 0x661   : > { %v2381_v28 = vrot.slane %v9376_v34, 2  ;;  %v9381_v1 = vld [vmem:[#allocation71_spill] sm:$0xff] }
 0x662   : > { %3124 = vrot.lane.b32.xlu0 %v9365_v26, %s4049_s14  ;;  %3028 = vrot.lane.b32.xlu2 %v9366_v45, %s4048_s13  ;;  %v3077_v7 = vpop.permute.xlu1 %3076 }
 0x663   : > { %v3393_v43 = vsel %vm1721_vm11, %v3361_v49, %v3077_v7 }
 0x664   : > { %v3111_v15 = vpop.permute.xlu0 %3110  ;;  %v2985_v14 = vpop.permute.xlu2 %2984  ;;  %3908 = vmatmul.msk.f32.gmra.mxu1 %vm1759_vm13, %v3393_v43 }
 0x665   : > { %v3410_v56 = vsel %vm1721_vm11, %v3378_v62, %v3111_v15  ;;  %v9378_v62 = vld [vmem:[#allocation62_spill] sm:$0xff] }
 0x666   : > { %3925 = vmatmul.msk.f32.gmra.mxu3 %vm1759_vm13, %v3410_v56 }
 0x668   : > { %2900 = vrot.lane.b32.xlu1 %v7562_v23, %s4047_s12  ;;  %v9372_v23 = vld [vmem:[#allocation154_spill] sm:$0xff] }
 0x669   : > { %v3266_v24 = vsel %vm1589_vm9, %v3234_v53, %v9372_v23  ;;  %v9382_v53 = vld [vmem:[#allocation202_spill] sm:$0xff]  ;;  %v9383_v23 = vld [vmem:[#allocation77_spill] sm:$0xff] }
 0x66a   : > { %2996 = vrot.lane.b32.xlu0 %v9369_v47, %s4048_s13  ;;  %2838 = vrot.lane.b32.xlu2 %v9357_v12, %s4046_s11  ;;  %v2887_v39 = vpop.permute.xlu1 %2886  ;;  %v3298_v50 = vsel %vm1622_vm8, %v3266_v24, %v7506_v59  ;;  %v9384_v24 = vld [vmem:[#allocation65_spill] sm:$0xff] }
 0x66b   : > { %v3330_v51 = vsel %vm1655_vm10, %v3298_v50, %v2887_v39 }
 0x66c   : > { %v2921_v22 = vpop.permute.xlu0 %2920  ;;  %v3019_v48 = vpop.permute.xlu2 %3018  ;;  %v3362_v13 = vsel %vm1688_vm12, %v3330_v51, %v2983_v44  ;;  %v9377_v44 = vld [vmem:[#allocation172_spill] sm:$0xff] }
 0x66d   : > { %v3347_v12 = vsel %vm1655_vm10, %v7669_v32, %v2921_v22  ;;  %v2380_v32 = vrot.slane %v9373_v0, 2  ;;  %v3171_v56 = vsel %vm279_vm0, %v9378_v62, %v9377_v44  ;;  %v9390_v44 = vld [vmem:[#allocation199_spill] sm:$0xff] }
 0x66e   : > { %v3379_v49 = vsel %vm1688_vm12, %v3347_v12, %v3017_v30  ;;  %v3203_v58 = vsel %vm1523_vm6, %v3171_v56, %v9379_v3  ;;  %v9391_v3 = vld [vmem:[#allocation96_spill] sm:$0xff] }
 0x66f   : > { %v2382_v15 = vsel %vm616_vm4, %v2380_v32, %v2381_v28  ;;  %v3235_v47 = vsel %vm1556_vm7, %v3203_v58, %v9380_v5  ;;  %v9389_v32 = vld [vmem:[#allocation138_spill] sm:$0xff] }
 0x670   : > { %2934 = vrot.lane.b32.xlu1 %v9373_v0, %s4047_s12  ;;  %v3267_v60 = vsel %vm1589_vm9, %v3235_v47, %v9381_v1  ;;  %v2161_v47 = vld [vmem:[#allocation3 + $0x198] sm:$0xff] }
 0x671   : > { %v3299_v22 = vsel %vm1622_vm8, %v3267_v60, %v9382_v53  ;;  %v9392_v1 = vld [vmem:[#allocation161_spill] sm:$0xff]  ;;  %v2388_v60 = vrot.slane %v2161_v47, 1 }
 0x672   : > { %3092 = vrot.lane.b32.xlu2 %v9374_v6, %s4049_s14  ;;  %3030 = vrot.lane.b32.xlu0 %v9375_v61, %s4048_s13  ;;  %v3079_v38 = vpop.permute.xlu1 %3078 }
 0x673   : > { %v3394_v59 = vsel %vm1721_vm11, %v3362_v13, %v3079_v38 }
 0x674   : > { %v3113_v45 = vpop.permute.xlu0 %3112  ;;  %v2987_v7 = vpop.permute.xlu2 %2986  ;;  %3909 = vmatmul.msk.f32.gmra.mxu1 %vm1759_vm13, %v3394_v59 }
 0x675   : > { %v3411_v43 = vsel %vm1721_vm11, %v3379_v49, %v3113_v45  ;;  %v9388_v45 = vld [vmem:[#allocation111_spill] sm:$0xff] }
 0x676   : > { %3926 = vmatmul.msk.f32.gmra.mxu3 %vm1759_vm13, %v3411_v43 }
 0x678   : > { %3126 = vrot.lane.b32.xlu1 %v2382_v15, %s4049_s14 }
 0x67a   : > { %2902 = vrot.lane.b32.xlu2 %v7730_v54, %s4047_s12  ;;  %2840 = vrot.lane.b32.xlu0 %v9365_v26, %s4046_s11  ;;  %v2889_v30 = vpop.permute.xlu1 %2888 }
 0x67b   : > { %v3331_v54 = vsel %vm1655_vm10, %v3299_v22, %v2889_v30 }
 0x67c   : > { %v2923_v39 = vpop.permute.xlu0 %2922  ;;  %v3021_v41 = vpop.permute.xlu2 %3020  ;;  %v3363_v51 = vsel %vm1688_vm12, %v3331_v54, %v2985_v14  ;;  %v9387_v14 = vld [vmem:[#allocation134_spill] sm:$0xff] }
 0x67d   : > { %v3348_v26 = vsel %vm1655_vm10, %v7692_v9, %v2923_v39  ;;  %v9385_v9 = vld [vmem:[#allocation51_spill] sm:$0xff]  ;;  %v3172_v49 = vsel %vm279_vm0, %v9388_v45, %v9387_v14 }
 0x67e   : > { %v3380_v61 = vsel %vm1688_vm12, %v3348_v26, %v3019_v48  ;;  %v2383_v13 = vrot.slane %v9385_v9, 2  ;;  %v3204_v43 = vsel %vm1523_vm6, %v3172_v49, %v9389_v32  ;;  %v9397_v49 = vld [vmem:[#allocation177_spill] sm:$0xff] }
 0x67f   : > { %v3236_v62 = vsel %vm1556_vm7, %v3204_v43, %v9390_v44  ;;  %v2163_v43 = vld [vmem:[#allocation3 + $0x1a8] sm:$0x3] }
 0x680   : > { %2998 = vrot.lane.b32.xlu1 %v9383_v23, %s4048_s13  ;;  %v2384_v59 = vsel %vm616_vm4, %v2381_v28, %v2383_v13  ;;  %v3268_v28 = vsel %vm1589_vm9, %v3236_v62, %v9391_v3  ;;  %v9396_v13 = vld [vmem:[#allocation130_spill] sm:$0xff]  ;;  %v9398_v62 = vld [vmem:[#allocation35_spill] sm:$0xff] }
 0x681   : > { %v3300_v58 = vsel %vm1622_vm8, %v3268_v28, %v7511_v33  ;;  %v2393_v33 = vrot.slane %v2161_v47, 2 }
 0x682   : > { %2936 = vrot.lane.b32.xlu2 %v9376_v34, %s4047_s12  ;;  %3094 = vrot.lane.b32.xlu0 %v9384_v24, %s4049_s14  ;;  %v3081_v50 = vpop.permute.xlu1 %3080  ;;  %v9386_v34 = vld [vmem:[#allocation95_spill] sm:$0xff] }
 0x683   : > { %v3395_v0 = vsel %vm1721_vm11, %v3363_v51, %v3081_v50 }
 0x684   : > { %v3115_v12 = vpop.permute.xlu0 %3114  ;;  %v2989_v6 = vpop.permute.xlu2 %2988  ;;  %3910 = vmatmul.msk.f32.gmra.mxu1 %vm1759_vm13, %v3395_v0  ;;  %v9393_v0 = vld [vmem:[#allocation124_spill] sm:$0xff] }
 0x685   : > { %v3412_v38 = vsel %vm1721_vm11, %v3380_v61, %v3115_v12  ;;  %v9394_v12 = vld [vmem:[#allocation132_spill] sm:$0xff] }
 0x686   : > { %3927 = vmatmul.msk.f32.gmra.mxu3 %vm1759_vm13, %v3412_v38  ;;  %v3173_v61 = vsel %vm279_vm0, %v7516_v27, %v9394_v12  ;;  %v9395_v38 = vld [vmem:[#allocation152_spill] sm:$0xff]  ;;  %v9404_v12 = vld [vmem:[#allocation93_spill] sm:$0xff] }
 0x687   : > { %v3205_v9 = vsel %vm1523_vm6, %v3173_v61, %v9395_v38 }
 0x688   : > { %3032 = vrot.lane.b32.xlu1 %v9386_v34, %s4048_s13  ;;  %v3237_v34 = vsel %vm1556_vm7, %v3205_v9, %v9396_v13 }
 0x68a   : > { %3128 = vrot.lane.b32.xlu2 %v2384_v59, %s4049_s14  ;;  %2904 = vrot.lane.b32.xlu0 %v7769_v40, %s4047_s12  ;;  %v2891_v48 = vpop.permute.xlu1 %2890  ;;  %v8002_v40 = vld [vmem:[#allocation3 + $0x1a0] sm:$0xff] }
 0x68b   : > { %v3332_v5 = vsel %vm1655_vm10, %v3300_v58, %v2891_v48  ;;  %v2389_v23 = vrot.slane %v8002_v40, 1  ;;  %v3269_v48 = vsel %vm1589_vm9, %v3237_v34, %v9397_v49  ;;  %v9406_v49 = vld [vmem:[#allocation39_spill] sm:$0xff] }
 0x68c   : > { %v2925_v56 = vpop.permute.xlu0 %2924  ;;  %v3023_v30 = vpop.permute.xlu2 %3022  ;;  %v3364_v22 = vsel %vm1688_vm12, %v3332_v5, %v2987_v7  ;;  %v3301_v32 = vsel %vm1622_vm8, %v3269_v48, %v7524_v57  ;;  %v2391_v57 = vrot.slane %v2163_v43, 1 }
 0x68d   : > { %v3349_v39 = vsel %vm1655_vm10, %v7597_v36, %v2925_v56  ;;  %v2390_v7 = vsel %vm535_vm2, %v2388_v60, %v2389_v23 }
 0x68e   : > { %v3381_v36 = vsel %vm1688_vm12, %v3349_v39, %v3021_v41  ;;  %v2396_v39 = vrot.slane %v2163_v43, 2 }
 0x690   : > { %2842 = vrot.lane.b32.xlu1 %v2382_v15, %s4046_s11  ;;  %v2394_v15 = vrot.slane %v8002_v40, 2 }
 0x692   : > { %3000 = vrot.lane.b32.xlu2 %v9392_v1, %s4048_s13  ;;  %2938 = vrot.lane.b32.xlu0 %v2161_v47, %s4047_s12  ;;  %v3083_v53 = vpop.permute.xlu1 %3082  ;;  %v2395_v51 = vsel %vm616_vm4, %v2393_v33, %v2394_v15  ;;  %v8063_v47 = vld [vmem:[%s8418_s6] ss:$0 sm:$0xff]  ;;  %v9399_v1 = vld [vmem:[#allocation125_spill] sm:$0xff]  ;;  %v9401_v33 = vld [vmem:[#allocation183_spill] sm:$0xff] }
 0x693   : > { %v3396_v54 = vsel %vm1721_vm11, %v3364_v22, %v3083_v53  ;;  %v3174_v60 = vsel %vm279_vm0, %v7558_v8, %v9399_v1  ;;  %v9400_v22 = vld [vmem:[#allocation99_spill] sm:$0xff] }
 0x694   : > { %v3117_v26 = vpop.permute.xlu0 %3116  ;;  %v8013_v24 = vpop.permute.xlu2 %2990  ;;  %3911 = vmatmul.msk.f32.gmra.mxu1 %vm1759_vm13, %v3396_v54  ;;  %v3206_v54 = vsel %vm1523_vm6, %v3174_v60, %v9401_v33 }
 0x695   : > { %v3413_v50 = vsel %vm1721_vm11, %v3381_v36, %v3117_v26 }
 0x696   : > { %3928 = vmatmul.msk.f32.gmra.mxu3 %vm1759_vm13, %v3413_v50 }
 0x698   : > { %3096 = vrot.lane.b32.xlu1 %v9393_v0, %s4049_s14  ;;  %v2397_v0 = vsel %vm616_vm4, %v2394_v15, %v2396_v39  ;;  %v9411_v39 = vld [vmem:[#allocation52_spill] sm:$0xff] }
 0x69a   : > { %3034 = vrot.lane.b32.xlu2 %v2390_v7, %s4048_s13  ;;  %3130 = vrot.lane.b32.xlu0 %v2395_v51, %s4049_s14  ;;  %v2893_v41 = vpop.permute.xlu1 %2892  ;;  %v9403_v51 = vld [vmem:[#allocation143_spill] sm:$0xff] }
 0x69b   : > { %v3333_v27 = vsel %vm1655_vm10, %v3301_v32, %v2893_v41  ;;  %v9405_v41 = vld [vmem:[#allocation20_spill] sm:$0xff] }
 0x69c   : > { %v2927_v14 = vpop.permute.xlu0 %2926  ;;  %v3025_v45 = vpop.permute.xlu2 %3024  ;;  %v3365_v3 = vsel %vm1688_vm12, %v3333_v27, %v2989_v6  ;;  %v2392_v6 = vsel %vm535_vm2, %v2389_v23, %v2391_v57  ;;  %v9402_v23 = vld [vmem:[#allocation131_spill] sm:$0xff]  ;;  %v9408_v57 = vld [vmem:[#allocation158_spill] sm:$0xff] }
 0x69d   : > { %v3350_v44 = vsel %vm1655_vm10, %v7699_v46, %v2927_v14  ;;  %v3238_v26 = vsel %vm1556_vm7, %v3206_v54, %v9402_v23  ;;  %v9413_v54 = vld [vmem:[#allocation21_spill] sm:$0xff] }
 0x69e   : > { %v3270_v8 = vsel %vm1589_vm9, %v3238_v26, %v9403_v51 }
 0x69f   : > { %v3302_v61 = vsel %vm1622_vm8, %v3270_v8, %v9404_v12 }
 0x6a0   : > { %2906 = vrot.lane.b32.xlu1 %v7817_v31, %s4047_s12  ;;  %v3382_v31 = vsel %vm1688_vm12, %v3350_v44, %v3023_v30 }
 0x6a2   : > { %2844 = vrot.lane.b32.xlu2 %v2384_v59, %s4046_s11  ;;  %3002 = vrot.lane.b32.xlu0 %v9398_v62, %s4048_s13  ;;  %v3085_v56 = vpop.permute.xlu1 %3084  ;;  %v8055_v59 = vld [vmem:[%s8417_s5] ss:$0 sm:$0xff] }
 0x6a3   : > { %v3397_v28 = vsel %vm1721_vm11, %v3365_v3, %v3085_v56  ;;  %v9407_v56 = vld [vmem:[#allocation6_spill] sm:$0xff] }
 0x6a4   : > { %v3119_v58 = vpop.permute.xlu0 %3118  ;;  %v8046_v5 = vpop.permute.xlu2 %2992  ;;  %3912 = vmatmul.msk.f32.gmra.mxu1 %vm1759_vm13, %v3397_v28 }
 0x6a5   : > { %v3414_v46 = vsel %vm1721_vm11, %v3382_v31, %v3119_v58  ;;  %v9409_v58 = vld [vmem:[#allocation190_spill] sm:$0xff] }
 0x6a6   : > { %3929 = vmatmul.msk.f32.gmra.mxu3 %vm1759_vm13, %v3414_v46  ;;  %v3175_v31 = vsel %vm279_vm0, %v7645_v55, %v9409_v58 }
 0x6a8   : > { %2940 = vrot.lane.b32.xlu1 %v8002_v40, %s4047_s12 }
 0x6a9   : > { %v3591_v30 = vpop.f32.mrf.mxu3 }
 0x6aa   : > { %v3659_v53 = vmul.f32 %v8055_v59, %v3591_v30  ;;  %3098 = vrot.lane.b32.xlu2 %v9400_v22, %s4049_s14  ;;  %3036 = vrot.lane.b32.xlu0 %v2392_v6, %s4048_s13  ;;  %v2895_v40 = vpop.permute.xlu1 %2894  ;;  %v9410_v6 = vld [vmem:[#allocation50_spill] sm:$0xff] }
 0x6ab   : > { %v3334_v9 = vsel %vm1655_vm10, %v3302_v61, %v2895_v40  ;;  %v3207_v30 = vsel %vm1523_vm6, %v3175_v31, %v9410_v6  ;;  %v9412_v40 = vld [vmem:[#allocation163_spill] sm:$0xff] }
 0x6ac   : > { %v3695_v36 = vadd.f32 %v8063_v47, %v3659_v53  ;;  %v2929_v50 = vpop.permute.xlu0 %2928  ;;  %v3027_v7 = vpop.permute.xlu2 %3026  ;;  %v3366_v32 = vsel %vm1688_vm12, %v3334_v9, %v8013_v24  ;;  %v3239_v1 = vsel %vm1556_vm7, %v3207_v30, %v9411_v39 }
 0x6ad   : > { %v3351_v15 = vsel %vm1655_vm10, %v7723_v25, %v2929_v50  ;;  %v3271_v33 = vsel %vm1589_vm9, %v3239_v1, %v9412_v40  ;;  %v9420_v40 = vld [vmem:[#allocation84_spill] sm:$0xff] }
 0x6ae   : > { %v3727_v38 = vadd.f32 %v3695_v36, %v9405_v41  ;;  %v3383_v62 = vsel %vm1688_vm12, %v3351_v15, %v3025_v45  ;;  %v3303_v55 = vsel %vm1622_vm8, %v3271_v33, %v7526_v10  ;;  %v3177_v33 = vsel %vm279_vm0, %v7755_v16, %v9420_v40  ;;  %v9433_v40 = vld [vmem:[#allocation197_spill] sm:$0xff] }
 0x6b0   : > { %v3759_v13 = vmax.f32 %v3727_v38, 0.0  ;;  %3132 = vrot.lane.b32.xlu1 %v2397_v0, %s4049_s14 }
 0x6b1   : > { %v3543_v34 = vpop.f32.mrf.mxu1 }
 0x6b2   : > { %3791 = vst.msk [vmem:[%s8088_s16 + $0x80] sm:$0xff] %vm279_vm0, %v3759_v13  ;;  %v3643_v14 = vmul.f32 %v8055_v59, %v3543_v34  ;;  %2908 = vrot.lane.b32.xlu2 %v7638_v18, %s4047_s12  ;;  %3004 = vrot.lane.b32.xlu0 %v9406_v49, %s4048_s13  ;;  %v3087_v48 = vpop.permute.xlu1 %3086  ;;  %v9414_v13 = vld [vmem:[#allocation7_spill] sm:$0xff] }
 0x6b3   : > { %v3398_v27 = vsel %vm1721_vm11, %v3366_v32, %v3087_v48  ;;  %v9416_v32 = vld [vmem:[#allocation187_spill] sm:$0xff] }
 0x6b4   : > { %v3679_v25 = vadd.f32 %v8063_v47, %v3643_v14  ;;  %v3121_v43 = vpop.permute.xlu0 %3120  ;;  %v2995_v44 = vpop.permute.xlu2 %2994  ;;  %3913 = vmatmul.msk.f32.gmra.mxu1 %vm1759_vm13, %v3398_v27 }
 0x6b5   : > { %v3415_v18 = vsel %vm1721_vm11, %v3383_v62, %v3121_v43 }
 0x6b6   : > { %v3711_v3 = vadd.f32 %v3679_v25, %v9407_v56  ;;  %3930 = vmatmul.msk.f32.gmra.mxu3 %vm1759_vm13, %v3415_v18  ;;  %v9417_v25 = vld [vmem:[#allocation153_spill] sm:$0xff]  ;;  %v9418_v56 = vld [vmem:[#allocation206_spill] sm:$0xff] }
 0x6b8   : > { %v3743_v28 = vmax.f32 %v3711_v3, 0.0  ;;  %3100 = vrot.lane.b32.xlu1 %v9408_v57, %s4049_s14 }
 0x6b9   : > { %v3594_v24 = vpop.f32.mrf.mxu3 }
 0x6ba   : > { %3775 = vst.msk [vmem:[%s8088_s16] sm:$0xff] %vm279_vm0, %v3743_v28  ;;  %v3660_v45 = vmul.f32 %v8055_v59, %v3594_v24  ;;  %v2897_v46 = vpop.permute.xlu1 %2896  ;;  %v9419_v28 = vld [vmem:[#allocation22_spill] sm:$0xff] }
 0x6bb   : > { %v3335_v26 = vsel %vm1655_vm10, %v3303_v55, %v2897_v46  ;;  %v9421_v55 = vld [vmem:[#allocation4_spill] sm:$0xff] }
 0x6bc   : > { %v3696_v60 = vadd.f32 %v8063_v47, %v3660_v45  ;;  %v2931_v53 = vpop.permute.xlu0 %2930  ;;  %v3029_v22 = vpop.permute.xlu2 %3028  ;;  %v3367_v12 = vsel %vm1688_vm12, %v3335_v26, %v8046_v5  ;;  %v9415_v5 = vld [vmem:[#allocation83_spill] sm:$0xff]  ;;  %v9423_v26 = vld [vmem:[#allocation170_spill] sm:$0xff] }
 0x6bd   : > { %v3352_v50 = vsel %vm1655_vm10, %v7636_v4, %v2931_v53  ;;  %v3176_v49 = vsel %vm279_vm0, %v7705_v37, %v9415_v5 }
 0x6be   : > { %v3728_v23 = vadd.f32 %v3696_v60, %v9413_v54  ;;  %v3384_v38 = vsel %vm1688_vm12, %v3352_v50, %v3027_v7  ;;  %v3208_v27 = vsel %vm1523_vm6, %v3176_v49, %v9416_v32 }
 0x6bf   : > { %v3240_v43 = vsel %vm1556_vm7, %v3208_v27, %v9417_v25  ;;  %v9428_v25 = vld [vmem:[#allocation176_spill] sm:$0xff] }
 0x6c0   : > { %v3760_v36 = vmax.f32 %v3728_v23, 0.0  ;;  %v3272_v3 = vsel %vm1589_vm9, %v3240_v43, %v9418_v56 }
 0x6c1   : > { %v3546_v51 = vpop.f32.mrf.mxu1  ;;  %v3304_v37 = vsel %vm1622_vm8, %v3272_v3, %v7541_v42 }
 0x6c2   : > { %3792 = vst.msk [vmem:[%s8088_s16 + $0x88] sm:$0xff] %vm279_vm0, %v3760_v36  ;;  %v3644_v8 = vmul.f32 %v8055_v59, %v3546_v51  ;;  %v3089_v0 = vpop.permute.xlu1 %3088  ;;  %v9424_v51 = vld [vmem:[#allocation178_spill] sm:$0xff] }
 0x6c3   : > { %v3399_v10 = vsel %vm1721_vm11, %v3367_v12, %v3089_v0  ;;  %v9425_v12 = vld [vmem:[#allocation24_spill] sm:$0xff] }
 0x6c4   : > { %v3680_v61 = vadd.f32 %v8063_v47, %v3644_v8  ;;  %v3123_v41 = vpop.permute.xlu0 %3122  ;;  %3914 = vmatmul.msk.f32.gmra.mxu1 %vm1759_vm13, %v3399_v10  ;;  %v8140_v4 = vpop.permute.xlu2 %2838 }
 0x6c5   : > { %v3416_v9 = vsel %vm1721_vm11, %v3384_v38, %v3123_v41 }
 0x6c6   : > { %v3712_v15 = vadd.f32 %v3680_v61, %v9414_v13  ;;  %3931 = vmatmul.msk.f32.gmra.mxu3 %vm1759_vm13, %v3416_v9 }
 0x6c8   : > { %v3744_v34 = vmax.f32 %v3712_v15, 0.0  ;;  %v9426_v15 = vld [vmem:[#allocation23_spill] sm:$0xff] }
 0x6c9   : > { %v3597_v14 = vpop.f32.mrf.mxu3 }
 0x6ca   : > { %3776 = vst.msk [vmem:[%s8088_s16 + $0x8] sm:$0xff] %vm279_vm0, %v3744_v34  ;;  %v3661_v48 = vmul.f32 %v8055_v59, %v3597_v14  ;;  %v2899_v7 = vpop.permute.xlu1 %2898 }
 0x6cb   : > { %v3336_v24 = vsel %vm1655_vm10, %v3304_v37, %v2899_v7 }
 0x6cc   : > { %v3697_v62 = vadd.f32 %v8063_v47, %v3661_v48  ;;  %v2933_v18 = vpop.permute.xlu0 %2932  ;;  %v3093_v58 = vpop.permute.xlu2 %3092  ;;  %v3368_v39 = vsel %vm1688_vm12, %v3336_v24, %v2995_v44  ;;  %v9422_v44 = vld [vmem:[#allocation105_spill] sm:$0xff]  ;;  %v9427_v48 = vld [vmem:[#allocation159_spill] sm:$0xff] }
 0x6cd   : > { %v3353_v45 = vsel %vm1655_vm10, %v7728_v63, %v2933_v18  ;;  %v3209_v23 = vsel %vm1523_vm6, %v3177_v33, %v9422_v44  ;;  %v3194_v7 = vsel %vm279_vm0, %v7761_v21, %v9427_v48  ;;  %v9429_v18 = vld [vmem:[#allocation141_spill] sm:$0xff]  ;;  %v9435_v44 = vld [vmem:[#allocation75_spill] sm:$0xff] }
 0x6ce   : > { %v3729_v57 = vadd.f32 %v3697_v62, %v9419_v28  ;;  %v3385_v53 = vsel %vm1688_vm12, %v3353_v45, %v3029_v22  ;;  %v3241_v36 = vsel %vm1556_vm7, %v3209_v23, %v9423_v26  ;;  %v3226_v43 = vsel %vm1523_vm6, %v3194_v7, %v9428_v25  ;;  %v9430_v28 = vld [vmem:[#allocation79_spill] sm:$0xff]  ;;  %v9431_v24 = vld [vmem:[#allocation5_spill] sm:$0xff] }
 0x6cf   : > { %v3273_v22 = vsel %vm1589_vm9, %v3241_v36, %v9424_v51  ;;  %v3258_v56 = vsel %vm1556_vm7, %v3226_v43, %v9429_v18  ;;  %v9436_v26 = vld [vmem:[#allocation207_spill] sm:$0xff] }
 0x6d0   : > { %v3761_v31 = vmax.f32 %v3729_v57, 0.0  ;;  %v3305_v16 = vsel %vm1622_vm8, %v3273_v22, %v9425_v12  ;;  %v3290_v57 = vsel %vm1589_vm9, %v3258_v56, %v9430_v28  ;;  %v9442_v28 = vld [vmem:[#allocation26_spill] sm:$0xff] }
 0x6d1   : > { %v3549_v46 = vpop.f32.mrf.mxu1  ;;  %v3322_v21 = vsel %vm1622_vm8, %v3290_v57, %v8140_v4  ;;  %v9432_v4 = vld [vmem:[#allocation166_spill] sm:$0xff] }
 0x6d2   : > { %3793 = vst.msk [vmem:[%s8088_s16 + $0x90] sm:$0xff] %vm279_vm0, %v3761_v31  ;;  %v3645_v6 = vmul.f32 %v8055_v59, %v3549_v46  ;;  %v3091_v30 = vpop.permute.xlu1 %3090 }
 0x6d3   : > { %v3400_v1 = vsel %vm1721_vm11, %v3368_v39, %v3091_v30 }
 0x6d4   : > { %v3681_v42 = vadd.f32 %v8063_v47, %v3645_v6  ;;  %v3125_v60 = vpop.permute.xlu0 %3124  ;;  %3915 = vmatmul.msk.f32.gmra.mxu1 %vm1759_vm13, %v3400_v1  ;;  %v2903_v8 = vpop.permute.xlu2 %2902 }
 0x6d5   : > { %v3417_v63 = vsel %vm1721_vm11, %v3385_v53, %v3125_v60  ;;  %v3178_v53 = vsel %vm279_vm0, %v7803_v29, %v9432_v4  ;;  %v9446_v4 = vld [vmem:[#allocation56_spill] sm:$0xff] }
 0x6d6   : > { %v3713_v54 = vadd.f32 %v3681_v42, %v9421_v55  ;;  %3932 = vmatmul.msk.f32.gmra.mxu3 %vm1759_vm13, %v3417_v63  ;;  %v3210_v33 = vsel %vm1523_vm6, %v3178_v53, %v9433_v40  ;;  %v9434_v55 = vld [vmem:[#allocation25_spill] sm:$0xff] }
 0x6d7   : > { %v3242_v23 = vsel %vm1556_vm7, %v3210_v33, %v9435_v44 }
 0x6d8   : > { %v3745_v50 = vmax.f32 %v3713_v54, 0.0  ;;  %v3274_v36 = vsel %vm1589_vm9, %v3242_v23, %v9436_v26 }
 0x6d9   : > { %v3600_v0 = vpop.f32.mrf.mxu3  ;;  %v3306_v51 = vsel %vm1622_vm8, %v3274_v36, %v7546_v35 }
 0x6da   : > { %3777 = vst.msk [vmem:[%s8088_s16 + $0x10] sm:$0xff] %vm279_vm0, %v3745_v50  ;;  %v3662_v10 = vmul.f32 %v8055_v59, %v3600_v0  ;;  %v2901_v61 = vpop.permute.xlu1 %2900  ;;  %v3338_v0 = vsel %vm1655_vm10, %v3306_v51, %v2903_v8 }
 0x6db   : > { %v3337_v41 = vsel %vm1655_vm10, %v3305_v16, %v2901_v61  ;;  %v9437_v16 = vld [vmem:[#allocation128_spill] sm:$0xff] }
 0x6dc   : > { %v3698_v38 = vadd.f32 %v8063_v47, %v3662_v10  ;;  %v2997_v9 = vpop.permute.xlu0 %2996  ;;  %v2937_v62 = vpop.permute.xlu2 %2936  ;;  %v3195_v10 = vsel %vm279_vm0, %v7809_v20, %v9437_v16 }
 0x6dd   : > { %v3369_v13 = vsel %vm1688_vm12, %v3337_v41, %v2997_v9  ;;  %v9438_v41 = vld [vmem:[#allocation82_spill] sm:$0xff] }
 0x6de   : > { %v3730_v34 = vadd.f32 %v3698_v38, %v9426_v15  ;;  %v3401_v14 = vsel %vm1721_vm11, %v3369_v13, %v3093_v58  ;;  %v3227_v38 = vsel %vm1523_vm6, %v3195_v10, %v9438_v41  ;;  %v9439_v13 = vld [vmem:[#allocation53_spill] sm:$0xff] }
 0x6df   : > { %3916 = vmatmul.msk.f32.gmra.mxu1 %vm1759_vm13, %v3401_v14  ;;  %v3259_v8 = vsel %vm1556_vm7, %v3227_v38, %v9439_v13 }
 0x6e0   : > { %v3762_v5 = vmax.f32 %v3730_v34, 0.0  ;;  %v9440_v34 = vld [vmem:[#allocation193_spill] sm:$0xff] }
 0x6e1   : > { %v3552_v49 = vpop.f32.mrf.mxu1  ;;  %v3291_v14 = vsel %vm1589_vm9, %v3259_v8, %v9440_v34  ;;  %v9449_v34 = vld [vmem:[#allocation10_spill] sm:$0xff] }
 0x6e2   : > { %3794 = vst.msk [vmem:[%s8088_s16 + $0x98] sm:$0xff] %vm279_vm0, %v3762_v5  ;;  %v3646_v32 = vmul.f32 %v8055_v59, %v3552_v49  ;;  %v2935_v27 = vpop.permute.xlu1 %2934  ;;  %v9441_v5 = vld [vmem:[#allocation8_spill] sm:$0xff] }
 0x6e3   : > { %v3354_v31 = vsel %vm1655_vm10, %v3322_v21, %v2935_v27 }
 0x6e4   : > { %v3682_v3 = vadd.f32 %v8063_v47, %v3646_v32  ;;  %v3031_v37 = vpop.permute.xlu0 %3030  ;;  %v3129_v63 = vpop.permute.xlu2 %3128 }
 0x6e5   : > { %v3386_v6 = vsel %vm1688_vm12, %v3354_v31, %v3031_v37  ;;  %v9443_v31 = vld [vmem:[#allocation160_spill] sm:$0xff] }
 0x6e6   : > { %v3714_v58 = vadd.f32 %v3682_v3, %v9431_v24 }
 0x6e8   : > { %v3746_v45 = vmax.f32 %v3714_v58, 0.0 }
 0x6e9   : > { %v3603_v46 = vpop.f32.mrf.mxu3 }
 0x6ea   : > { %3778 = vst.msk [vmem:[%s8088_s16 + $0x18] sm:$0xff] %vm279_vm0, %v3746_v45  ;;  %v3663_v30 = vmul.f32 %v8055_v59, %v3603_v46  ;;  %v3127_v39 = vpop.permute.xlu1 %3126 }
 0x6eb   : > { %v3418_v1 = vsel %vm1721_vm11, %v3386_v6, %v3127_v39  ;;  %v9444_v6 = vld [vmem:[#allocation92_spill] sm:$0xff] }
 0x6ec   : > { %v3699_v42 = vadd.f32 %v8063_v47, %v3663_v30  ;;  %v2841_v60 = vpop.permute.xlu0 %2840  ;;  %3933 = vmatmul.msk.f32.gmra.mxu3 %vm1759_vm13, %v3418_v1  ;;  %v3001_v20 = vpop.permute.xlu2 %3000  ;;  %v9445_v39 = vld [vmem:[#allocation108_spill] sm:$0xff] }
 0x6ed   : > { %v3323_v48 = vsel %vm1622_vm8, %v3291_v14, %v2841_v60 }
 0x6ee   : > { %v3731_v54 = vadd.f32 %v3699_v42, %v9434_v55  ;;  %v3355_v25 = vsel %vm1655_vm10, %v3323_v48, %v2937_v62  ;;  %v3196_v62 = vsel %vm279_vm0, %v7855_v52, %v9443_v31  ;;  %v9450_v48 = vld [vmem:[#allocation175_spill] sm:$0xff] }
 0x6ef   : > { %v3228_v30 = vsel %vm1523_vm6, %v3196_v62, %v9444_v6 }
 0x6f0   : > { %v3763_v50 = vmax.f32 %v3731_v54, 0.0  ;;  %v3260_v1 = vsel %vm1556_vm7, %v3228_v30, %v9445_v39 }
 0x6f1   : > { %v3555_v22 = vpop.f32.mrf.mxu1  ;;  %v3292_v53 = vsel %vm1589_vm9, %v3260_v1, %v9446_v4  ;;  %v9455_v1 = vld [vmem:[#allocation11_spill] sm:$0xff] }
 0x6f2   : > { %3795 = vst.msk [vmem:[%s8088_s16 + $0xa0] sm:$0xff] %vm279_vm0, %v3763_v50  ;;  %v3647_v29 = vmul.f32 %v8055_v59, %v3555_v22  ;;  %v2999_v12 = vpop.permute.xlu1 %2998 }
 0x6f3   : > { %v3370_v61 = vsel %vm1688_vm12, %v3338_v0, %v2999_v12  ;;  %v9448_v12 = vld [vmem:[#allocation28_spill] sm:$0xff] }
 0x6f4   : > { %v3683_v35 = vadd.f32 %v8063_v47, %v3647_v29  ;;  %v3095_v9 = vpop.permute.xlu0 %3094  ;;  %v3035_v24 = vpop.permute.xlu2 %3034 }
 0x6f5   : > { %v3402_v15 = vsel %vm1721_vm11, %v3370_v61, %v3095_v9 }
 0x6f6   : > { %v3715_v49 = vadd.f32 %v3683_v35, %v9441_v5  ;;  %3917 = vmatmul.msk.f32.gmra.mxu1 %vm1759_vm13, %v3402_v15 }
 0x6f8   : > { %v3747_v7 = vmax.f32 %v3715_v49, 0.0 }
 0x6f9   : > { %v3606_v32 = vpop.f32.mrf.mxu3 }
 0x6fa   : > { %3779 = vst.msk [vmem:[%s8088_s16 + $0x20] sm:$0xff] %vm279_vm0, %v3747_v7  ;;  %v3664_v27 = vmul.f32 %v8055_v59, %v3606_v32  ;;  %v3033_v43 = vpop.permute.xlu1 %3032  ;;  %v3197_v7 = vsel %vm279_vm0, %v7887_v2, %v9450_v48  ;;  %v9454_v2 = vld [vmem:[#allocation29_spill] sm:$0xff] }
 0x6fb   : > { %v3387_v18 = vsel %vm1688_vm12, %v3355_v25, %v3033_v43  ;;  %v9452_v43 = vld [vmem:[#allocation191_spill] sm:$0xff] }
 0x6fc   : > { %v3700_v56 = vadd.f32 %v8063_v47, %v3664_v27  ;;  %v2905_v3 = vpop.permute.xlu0 %2904  ;;  %v3419_v37 = vsel %vm1721_vm11, %v3387_v18, %v3129_v63  ;;  %v9447_v63 = vld [vmem:[#allocation9_spill] sm:$0xff]  ;;  %v2845_v50 = vpop.permute.xlu2 %2844 }
 0x6fd   : > { %3934 = vmatmul.msk.f32.gmra.mxu3 %vm1759_vm13, %v3419_v37  ;;  %v3339_v33 = vsel %vm1655_vm10, %v7587_v19, %v2905_v3  ;;  %v9451_v27 = vld [vmem:[#allocation205_spill] sm:$0xff] }
 0x6fe   : > { %v3732_v57 = vadd.f32 %v3700_v56, %v9442_v28  ;;  %v3371_v36 = vsel %vm1688_vm12, %v3339_v33, %v3001_v20  ;;  %v3229_v25 = vsel %vm1523_vm6, %v3197_v7, %v9451_v27  ;;  %v9453_v3 = vld [vmem:[#allocation133_spill] sm:$0xff] }
 0x6ff   : > { %v3261_v18 = vsel %vm1556_vm7, %v3229_v25, %v9452_v43 }
 0x700   : > { %v3764_v21 = vmax.f32 %v3732_v57, 0.0  ;;  %v3293_v37 = vsel %vm1589_vm9, %v3261_v18, %v9453_v3 }
 0x701   : > { %v3558_v58 = vpop.f32.mrf.mxu1  ;;  %v3325_v57 = vsel %vm1622_vm8, %v3293_v37, %v2845_v50 }
 0x702   : > { %3796 = vst.msk [vmem:[%s8088_s16 + $0xa8] sm:$0xff] %vm279_vm0, %v3764_v21  ;;  %v3648_v45 = vmul.f32 %v8055_v59, %v3558_v58  ;;  %v2843_v46 = vpop.permute.xlu1 %2842 }
 0x703   : > { %v3324_v52 = vsel %vm1622_vm8, %v3292_v53, %v2843_v46 }
 0x704   : > { %v3684_v42 = vadd.f32 %v8063_v47, %v3648_v45  ;;  %v2939_v60 = vpop.permute.xlu0 %2938  ;;  %v3099_v8 = vpop.permute.xlu2 %3098 }
 0x705   : > { %v3356_v54 = vsel %vm1655_vm10, %v3324_v52, %v2939_v60 }
 0x706   : > { %v3716_v40 = vadd.f32 %v3684_v42, %v9447_v63  ;;  %v3388_v19 = vsel %vm1688_vm12, %v3356_v54, %v3035_v24 }
 0x708   : > { %v3748_v55 = vmax.f32 %v3716_v40, 0.0 }
 0x709   : > { %v3609_v44 = vpop.f32.mrf.mxu3 }
 0x70a   : > { %3780 = vst.msk [vmem:[%s8088_s16 + $0x28] sm:$0xff] %vm279_vm0, %v3748_v55  ;;  %v3665_v23 = vmul.f32 %v8055_v59, %v3609_v44  ;;  %v3097_v26 = vpop.permute.xlu1 %3096  ;;  %v9456_v44 = vld [vmem:[#allocation31_spill] sm:$0xff] }
 0x70b   : > { %v3403_v51 = vsel %vm1721_vm11, %v3371_v36, %v3097_v26 }
 0x70c   : > { %v3701_v22 = vadd.f32 %v8063_v47, %v3665_v23  ;;  %v3131_v0 = vpop.permute.xlu0 %3130  ;;  %3918 = vmatmul.msk.f32.gmra.mxu1 %vm1759_vm13, %v3403_v51  ;;  %v2909_v39 = vpop.permute.xlu2 %2908  ;;  %v9457_v51 = vld [vmem:[#allocation12_spill] sm:$0xff] }
 0x70d   : > { %v3420_v29 = vsel %vm1721_vm11, %v3388_v19, %v3131_v0  ;;  %v3341_v53 = vsel %vm1655_vm10, %v7594_v11, %v2909_v39 }
 0x70e   : > { %v3733_v16 = vadd.f32 %v3701_v22, %v9448_v12  ;;  %3935 = vmatmul.msk.f32.gmra.mxu3 %vm1759_vm13, %v3420_v29 }
 0x710   : > { %v3765_v10 = vmax.f32 %v3733_v16, 0.0  ;;  %v9458_v16 = vld [vmem:[#allocation33_spill] sm:$0xff] }
 0x711   : > { %v3561_v61 = vpop.f32.mrf.mxu1 }
 0x712   : > { %3797 = vst.msk [vmem:[%s8088_s16 + $0xb0] sm:$0xff] %vm279_vm0, %v3765_v10  ;;  %v3649_v41 = vmul.f32 %v8055_v59, %v3561_v61  ;;  %v2907_v38 = vpop.permute.xlu1 %2906 }
 0x713   : > { %v3340_v35 = vsel %vm1655_vm10, %v7514_v17, %v2907_v38 }
 0x714   : > { %v3685_v9 = vadd.f32 %v8063_v47, %v3649_v41  ;;  %v3003_v13 = vpop.permute.xlu0 %3002 }
 0x715   : > { %v3372_v15 = vsel %vm1688_vm12, %v3340_v35, %v3003_v13 }
 0x716   : > { %v3717_v14 = vadd.f32 %v3685_v9, %v9449_v34  ;;  %v3404_v5 = vsel %vm1721_vm11, %v3372_v15, %v3099_v8  ;;  %v9459_v9 = vld [vmem:[#allocation13_spill] sm:$0xff] }
 0x717   : > { %3919 = vmatmul.msk.f32.gmra.mxu1 %vm1759_vm13, %v3404_v5  ;;  %v9460_v5 = vld [vmem:[#allocation36_spill] sm:$0xff] }
 0x718   : > { %v3749_v49 = vmax.f32 %v3717_v14, 0.0 }
 0x719   : > { %v3612_v20 = vpop.f32.mrf.mxu3 }
 0x71a   : > { %3781 = vst.msk [vmem:[%s8088_s16 + $0x30] sm:$0xff] %vm279_vm0, %v3749_v49  ;;  %v3666_v17 = vmul.f32 %v8055_v59, %v3612_v20  ;;  %v2941_v32 = vpop.permute.xlu1 %2940 }
 0x71b   : > { %v3357_v24 = vsel %vm1655_vm10, %v3325_v57, %v2941_v32  ;;  %v9461_v32 = vld [vmem:[#allocation14_spill] sm:$0xff] }
 0x71c   : > { %v3702_v56 = vadd.f32 %v8063_v47, %v3666_v17  ;;  %v3037_v28 = vpop.permute.xlu0 %3036 }
 0x71d   : > { %v3389_v62 = vsel %vm1688_vm12, %v3357_v24, %v3037_v28  ;;  %v9462_v28 = vld [vmem:[#allocation38_spill] sm:$0xff]  ;;  %v9463_v24 = vld [vmem:[#allocation15_spill] sm:$0xff] }
 0x71e   : > { %v3734_v21 = vadd.f32 %v3702_v56, %v9454_v2 }
 0x720   : > { %v3766_v58 = vmax.f32 %v3734_v21, 0.0 }
 0x721   : > { %v3564_v31 = vpop.f32.mrf.mxu1 }
 0x722   : > { %3798 = vst.msk [vmem:[%s8088_s16 + $0xb8] sm:$0xff] %vm279_vm0, %v3766_v58  ;;  %v3650_v45 = vmul.f32 %v8055_v59, %v3564_v31  ;;  %v3133_v46 = vpop.permute.xlu1 %3132 }
 0x723   : > { %v3421_v6 = vsel %vm1721_vm11, %v3389_v62, %v3133_v46 }
 0x724   : > { %v3686_v30 = vadd.f32 %v8063_v47, %v3650_v45  ;;  %3936 = vmatmul.msk.f32.gmra.mxu3 %vm1759_vm13, %v3421_v6  ;;  %v3005_v60 = vpop.permute.xlu0 %3004 }
 0x725   : > { %v3373_v40 = vsel %vm1688_vm12, %v3341_v53, %v3005_v60 }
 0x726   : > { %v3718_v42 = vadd.f32 %v3686_v30, %v9455_v1  ;;  %v9464_v30 = vld [vmem:[#allocation40_spill] sm:$0xff] }
 0x728   : > { %v3750_v4 = vmax.f32 %v3718_v42, 0.0 }
 0x729   : > { %v3615_v63 = vpop.f32.mrf.mxu3 }
 0x72a   : > { %3782 = vst.msk [vmem:[%s8088_s16 + $0x38] sm:$0xff] %vm279_vm0, %v3750_v4  ;;  %v3667_v52 = vmul.f32 %v8055_v59, %v3615_v63  ;;  %v3101_v33 = vpop.permute.xlu1 %3100  ;;  %v9465_v4 = vld [vmem:[#allocation16_spill] sm:$0xff] }
 0x72b   : > { %v3405_v55 = vsel %vm1721_vm11, %v3373_v40, %v3101_v33 }
 0x72c   : > { %v3703_v54 = vadd.f32 %v8063_v47, %v3667_v52  ;;  %3920 = vmatmul.msk.f32.gmra.mxu1 %vm1759_vm13, %v3405_v55  ;;  %v9466_v55 = vld [vmem:[#allocation41_spill] sm:$0xff] }
 0x72e   : > { %v3735_v23 = vadd.f32 %v3703_v54, %v9456_v44 }
 0x730   : > { %v3767_v26 = vmax.f32 %v3735_v23, 0.0 }
 0x731   : > { %v3567_v11 = vpop.f32.mrf.mxu1 }
 0x732   : > { %3799 = vst.msk [vmem:[%s8088_s16 + $0xc0] sm:$0xff] %vm279_vm0, %v3767_v26  ;;  %v3651_v36 = vmul.f32 %v8055_v59, %v3567_v11 }
 0x734   : > { %v3687_v50 = vadd.f32 %v8063_v47, %v3651_v36  ;;  %v9467_v36 = vld [vmem:[#allocation17_spill] sm:$0xff] }
 0x736   : > { %v3719_v22 = vadd.f32 %v3687_v50, %v9457_v51 }
 0x738   : > { %v3751_v0 = vmax.f32 %v3719_v22, 0.0 }
 0x739   : > { %v3618_v19 = vpop.f32.mrf.mxu3 }
 0x73a   : > { %3783 = vst.msk [vmem:[%s8088_s16 + $0x40] sm:$0xff] %vm279_vm0, %v3751_v0  ;;  %v3668_v29 = vmul.f32 %v8055_v59, %v3618_v19 }
 0x73c   : > { %v3704_v12 = vadd.f32 %v8063_v47, %v3668_v29 }
 0x73e   : > { %v3736_v10 = vadd.f32 %v3704_v12, %v9458_v16  ;;  %v9468_v16 = vld [vmem:[#allocation120_spill] sm:$0xff] }
 0x740   : > { %v3768_v61 = vmax.f32 %v3736_v10, 0.0 }
 0x741   : > { %v3570_v41 = vpop.f32.mrf.mxu1 }
 0x742   : > { %3800 = vst.msk [vmem:[%s8088_s16 + $0xc8] sm:$0xff] %vm279_vm0, %v3768_v61  ;;  %v3652_v38 = vmul.f32 %v8055_v59, %v3570_v41 }
 0x744   : > { %v3688_v35 = vadd.f32 %v8063_v47, %v3652_v38  ;;  %v9469_v38 = vld [vmem:[#allocation18_spill] sm:$0xff] }
 0x746   : > { %v3720_v13 = vadd.f32 %v3688_v35, %v9459_v9 }
 0x748   : > { %v3752_v8 = vmax.f32 %v3720_v13, 0.0 }
 0x749   : > { %v3621_v15 = vpop.f32.mrf.mxu3 }
 0x74a   : > { %3784 = vst.msk [vmem:[%s8088_s16 + $0x48] sm:$0xff] %vm279_vm0, %v3752_v8  ;;  %v3669_v34 = vmul.f32 %v8055_v59, %v3621_v15 }
 0x74c   : > { %v3705_v14 = vadd.f32 %v8063_v47, %v3669_v34 }
 0x74e   : > { %v3737_v49 = vadd.f32 %v3705_v14, %v9460_v5  ;;  %v9470_v5 = vld [vmem:[#allocation121_spill] sm:$0xff] }
 0x750   : > { %v3769_v20 = vmax.f32 %v3737_v49, 0.0 }
 0x751   : > { %v3573_v48 = vpop.f32.mrf.mxu1 }
 0x752   : > { %3801 = vst.msk [vmem:[%s8088_s16 + $0xd0] sm:$0xff] %vm279_vm0, %v3769_v20  ;;  %v3653_v7 = vmul.f32 %v8055_v59, %v3573_v48 }
 0x754   : > { %v3689_v17 = vadd.f32 %v8063_v47, %v3653_v7  ;;  %v9471_v7 = vld [vmem:[#allocation19_spill] sm:$0xff] }
 0x756   : > { %v3721_v27 = vadd.f32 %v3689_v17, %v9461_v32 }
 0x758   : > { %v3753_v25 = vmax.f32 %v3721_v27, 0.0 }
 0x759   : > { %v3624_v43 = vpop.f32.mrf.mxu3 }
 0x75a   : > { %3785 = vst.msk [vmem:[%s8088_s16 + $0x50] sm:$0xff] %vm279_vm0, %v3753_v25  ;;  %v3670_v18 = vmul.f32 %v8055_v59, %v3624_v43 }
 0x75c   : > { %v3706_v56 = vadd.f32 %v8063_v47, %v3670_v18  ;;  %v3576_v3 = vpop.f32.mrf.mxu1 }
 0x75d   : > { %v3654_v37 = vmul.f32 %v8055_v59, %v3576_v3 }
 0x75e   : > { %v3738_v57 = vadd.f32 %v3706_v56, %v9462_v28 }
 0x75f   : > { %v3690_v2 = vadd.f32 %v8063_v47, %v3654_v37 }
 0x760   : > { %v3770_v21 = vmax.f32 %v3738_v57, 0.0 }
 0x761   : > { %v3722_v58 = vadd.f32 %v3690_v2, %v9463_v24 }
 0x762   : > { %3802 = vst.msk [vmem:[%s8088_s16 + $0xd8] sm:$0xff] %vm279_vm0, %v3770_v21 }
 0x763   : > { %v3754_v31 = vmax.f32 %v3722_v58, 0.0 }
 0x765   : > { %3786 = vst.msk [vmem:[%s8088_s16 + $0x58] sm:$0xff] %vm279_vm0, %v3754_v31 }
 0x76f   : > { %v3627_v62 = vpop.f32.mrf.mxu3 }
 0x770   : > { %v3671_v45 = vmul.f32 %v8055_v59, %v3627_v62 }
 0x772   : > { %v3707_v46 = vadd.f32 %v8063_v47, %v3671_v45 }
 0x773   : > { %v3579_v6 = vpop.f32.mrf.mxu1 }
 0x774   : > { %v3739_v39 = vadd.f32 %v3707_v46, %v9464_v30  ;;  %v3655_v1 = vmul.f32 %v8055_v59, %v3579_v6 }
 0x776   : > { %v3771_v42 = vmax.f32 %v3739_v39, 0.0  ;;  %v3691_v60 = vadd.f32 %v8063_v47, %v3655_v1 }
 0x778   : > { %3803 = vst.msk [vmem:[%s8088_s16 + $0xe0] sm:$0xff] %vm279_vm0, %v3771_v42  ;;  %v3723_v53 = vadd.f32 %v3691_v60, %v9465_v4 }
 0x77a   : > { %v3755_v63 = vmax.f32 %v3723_v53, 0.0 }
 0x77c   : > { %3787 = vst.msk [vmem:[%s8088_s16 + $0x60] sm:$0xff] %vm279_vm0, %v3755_v63 }
 0x780   : > { %v3630_v40 = vpop.f32.mrf.mxu3 }
 0x781   : > { %v3672_v52 = vmul.f32 %v8055_v59, %v3630_v40 }
 0x783   : > { %v3708_v33 = vadd.f32 %v8063_v47, %v3672_v52 }
 0x785   : > { %v3740_v54 = vadd.f32 %v3708_v33, %v9466_v55 }
 0x787   : > { %v3772_v44 = vmax.f32 %v3740_v54, 0.0 }
 0x789   : > { %3804 = vst.msk [vmem:[%s8088_s16 + $0xe8] sm:$0xff] %vm279_vm0, %v3772_v44  ;;  %v3582_v23 = vpop.f32.mrf.mxu1 }
 0x78a   : > { %v3656_v26 = vmul.f32 %v8055_v59, %v3582_v23 }
 0x78c   : > { %v3692_v11 = vadd.f32 %v8063_v47, %v3656_v26 }
 0x78e   : > { %v3724_v50 = vadd.f32 %v3692_v11, %v9467_v36 }
 0x790   : > { %v3756_v51 = vmax.f32 %v3724_v50, 0.0 }
 0x791   : > { %v3633_v22 = vpop.f32.mrf.mxu3 }
 0x792   : > { %3788 = vst.msk [vmem:[%s8088_s16 + $0x68] sm:$0xff] %vm279_vm0, %v3756_v51  ;;  %v3673_v0 = vmul.f32 %v8055_v59, %v3633_v22 }
 0x794   : > { %v3709_v19 = vadd.f32 %v8063_v47, %v3673_v0  ;;  %v3585_v29 = vpop.f32.mrf.mxu1 }
 0x795   : > { %v3657_v12 = vmul.f32 %v8055_v59, %v3585_v29 }
 0x796   : > { %v3741_v10 = vadd.f32 %v3709_v19, %v9468_v16 }
 0x797   : > { %v3693_v61 = vadd.f32 %v8063_v47, %v3657_v12 }
 0x798   : > { %v3773_v41 = vmax.f32 %v3741_v10, 0.0 }
 0x799   : > { %v3725_v35 = vadd.f32 %v3693_v61, %v9469_v38 }
 0x79a   : > { %3805 = vst.msk [vmem:[%s8088_s16 + $0xf0] sm:$0xff] %vm279_vm0, %v3773_v41 }
 0x79b   : > { %v3757_v9 = vmax.f32 %v3725_v35, 0.0 }
 0x79d   : > { %3789 = vst.msk [vmem:[%s8088_s16 + $0x70] sm:$0xff] %vm279_vm0, %v3757_v9 }
 0x7a7   : > { %v3636_v13 = vpop.f32.mrf.mxu3 }
 0x7a8   : > { %v3674_v8 = vmul.f32 %v8055_v59, %v3636_v13 }
 0x7a9   : > { %v3588_v15 = vpop.f32.mrf.mxu1 }
 0x7aa   : > { %v3710_v34 = vadd.f32 %v8063_v47, %v3674_v8  ;;  %v3658_v14 = vmul.f32 %v8055_v59, %v3588_v15 }
 0x7ac   : > { %v3742_v49 = vadd.f32 %v3710_v34, %v9470_v5  ;;  %v3694_v20 = vadd.f32 %v8063_v47, %v3658_v14 }
 0x7ae   : > { %v3774_v48 = vmax.f32 %v3742_v49, 0.0  ;;  %v3726_v17 = vadd.f32 %v3694_v20, %v9471_v7 }
 0x7b0   : > { %3806 = vst.msk [vmem:[%s8088_s16 + $0xf8] sm:$0xff] %vm279_vm0, %v3774_v48  ;;  %v3758_v32 = vmax.f32 %v3726_v17, 0.0 }
 0x7b2   : > { %3790 = vst.msk [vmem:[%s8088_s16 + $0x78] sm:$0xff] %vm279_vm0, %v3758_v32 }
 0x7b3 PF: > { %s17_s24 = sadd.s32 1, %s4039_s24  }
 0x7b4   : > { %p14_p4 = scmp.ge.s32.totalorder %s17_s24, 4  }
 0x7b6   :  { %16 = sbr.rel (!%p14_p4) target bundleno = 1 (0x1), region = 82 }

</bundles_post_ra>
